<compile_context>
chip_gen: v5e
topology: v5e:2x2
jax: 0.10.0
libtpu: 0.0.40
codegen_flags: <defaults>
</compile_context>

<pallas_src>
import functools

import jax
import jax.numpy as jnp
from jax.experimental import pallas as pl
from jax.experimental.pallas import tpu as pltpu

BN_EPS = 1e-5


def _round_up(n, m):
    return ((n + m - 1) // m) * m


def _fc_bn_relu(x_bf16, w, gamma, beta):
    """Linear(no bias) -> BatchNorm1d(train mode) -> ReLU, all in vregs."""
    # MXU: bf16 x bf16 -> f32 accumulation.
    y = jnp.dot(x_bf16, w, preferred_element_type=jnp.float32)
    # Training-mode BN, single reduction pass; clamp against f32 cancellation.
    mean = jnp.mean(y, axis=0, keepdims=True)
    mean_sq = jnp.mean(y * y, axis=0, keepdims=True)
    var = jnp.maximum(mean_sq - mean * mean, 0.0)
    # Fold BN into one (1, N) affine, then a single FMA-shaped op on (B, N).
    scale = gamma * jax.lax.rsqrt(var + BN_EPS)
    shift = beta - mean * scale
    return jnp.maximum(y * scale + shift, 0.0)


def _generator_kernel(out_dims,
                      x_ref, w0_ref, w1_ref, w2_ref, gb_ref, w3_hbm, w4_hbm,
                      o_ref,
                      w3_vmem, w4_vmem, dma_sem):
    # Kick off the big-weight DMAs immediately; layers 0-2 compute under them.
    cp3 = pltpu.make_async_copy(w3_hbm, w3_vmem, dma_sem.at[0])
    cp4 = pltpu.make_async_copy(w4_hbm, w4_vmem, dma_sem.at[1])
    cp3.start()
    cp4.start()

    def gamma_beta(i):
        n = out_dims[i]
        return (gb_ref[2 * i:2 * i + 1, :n],
                gb_ref[2 * i + 1:2 * i + 2, :n])

    h = x_ref[...].astype(jnp.bfloat16)

    # Layers 0-2: small weights, already resident via BlockSpec prologue DMA.
    g, b = gamma_beta(0)
    h = _fc_bn_relu(h, w0_ref[...], g, b).astype(jnp.bfloat16)
    g, b = gamma_beta(1)
    h = _fc_bn_relu(h, w1_ref[...], g, b).astype(jnp.bfloat16)
    g, b = gamma_beta(2)
    h = _fc_bn_relu(h, w2_ref[...], g, b).astype(jnp.bfloat16)

    # Layer 3: wait only now for the 512x1024 weight.
    cp3.wait()
    g, b = gamma_beta(3)
    h = _fc_bn_relu(h, w3_vmem[...], g, b).astype(jnp.bfloat16)

    # Layer 4 (lane-dense padded fan_out): wait for the final weight.
    cp4.wait()
    g, b = gamma_beta(4)
    out = _fc_bn_relu(h, w4_vmem[...], g, b)
    o_ref[...] = out.astype(o_ref.dtype)


def init_generator_params(key, feat_dim, num_points):
    """bf16 weights in (in,out) layout + one packed f32 gamma/beta slab.

    * Linear bias is omitted: training-mode BatchNorm right after cancels it
      exactly, so the forward output is bit-identical math.
    * The last layer's fan_out (num_points*3) is zero-padded to a multiple of
      128 lanes; padded weight columns are 0 and padded gamma/beta are 0, so
      padded outputs are exactly 0 and get sliced away by the wrapper.
    * gb slab layout: row 2i = gamma of layer i, row 2i+1 = beta of layer i,
      each zero-padded to the widest layer (1024 lanes).
    """
    out_raw = num_points * 3
    out_pad = _round_up(out_raw, 128)
    in_dims = [feat_dim, 64, 128, 512, 1024]
    out_dims = [64, 128, 512, 1024, out_pad]

    weights = []
    slab_w = max(out_dims)
    gb = jnp.zeros((2 * len(out_dims), slab_w), jnp.float32)
    for i, (fan_in, fan_out) in enumerate(zip(in_dims, out_dims)):
        real_fo = out_raw if i == len(in_dims) - 1 else fan_out
        key, kw = jax.random.split(key)
        bound = 1.0 / (float(fan_in) ** 0.5)
        w = jax.random.uniform(kw, (fan_in, real_fo), jnp.float32, -bound, bound)
        if real_fo != fan_out:
            w = jnp.pad(w, ((0, 0), (0, fan_out - real_fo)))
        weights.append(w.astype(jnp.bfloat16))
        gb = gb.at[2 * i, :real_fo].set(1.0)     # BatchNorm1d default weight
        # beta row (2i+1) stays 0.0               BatchNorm1d default bias
    return weights, gb, tuple(out_dims)


def generator_forward(z, weights, gb, out_dims, num_points):
    # PyTorch: output = self.model(input.squeeze())
    x = jnp.squeeze(z)
    if x.ndim == 1:  # guard the B==1 squeeze edge case like .squeeze() would
        x = x.reshape(1, -1)
        # TODO(synk): PyTorch train-mode BatchNorm1d raises for batch size 1;
        # here it degenerates to relu(beta) instead.
    B = x.shape[0]

    out_raw = num_points * 3
    out_pad = out_dims[-1]
    w0, w1, w2, w3, w4 = weights

    vmem = pl.BlockSpec(memory_space=pltpu.MemorySpace.VMEM)
    hbm = pl.BlockSpec(memory_space=pl.ANY)   # raw HBM ref; DMA'd manually

    in_dims = [w.shape[0] for w in weights]
    flops = 2 * B * sum(fi * fo for fi, fo in zip(in_dims, out_dims))
    weight_bytes = sum(w.shape[0] * w.shape[1] * 2 for w in weights)
    bytes_accessed = (weight_bytes + gb.size * 4 + B * in_dims[0] * 4
                      + B * out_pad * 4)
    transcendentals = sum(out_dims)   # one rsqrt per BN feature

    kernel = functools.partial(_generator_kernel, out_dims)

    out_padded = pl.pallas_call(
        kernel,
        out_shape=jax.ShapeDtypeStruct((B, out_pad), jnp.float32),
        in_specs=[vmem, vmem, vmem, vmem, vmem, hbm, hbm],
        out_specs=vmem,
        scratch_shapes=[
            pltpu.VMEM(w3.shape, w3.dtype),       # 512x1024 bf16 landing buf
            pltpu.VMEM(w4.shape, w4.dtype),       # 1024xout_pad bf16 landing buf
            pltpu.SemaphoreType.DMA((2,)),
        ],
        compiler_params=pltpu.CompilerParams(
            vmem_limit_bytes=16 * 1024 * 1024),
        cost_estimate=pl.CostEstimate(
            flops=flops,
            transcendentals=transcendentals,
            bytes_accessed=bytes_accessed),
    )(x.astype(jnp.float32), w0, w1, w2, gb, w3, w4)

    # PyTorch: output.view(-1, 3, self.np)
    return out_padded[:, :out_raw].reshape(-1, 3, num_points)


if __name__ == "__main__":
    FEAT_DIM = 32      # args.feat_dim
    NUM_POINTS = 8     # args.num_points
    BATCH = 4          # NOTE: per-call cost is dispatch + weight DMA, not
                       # compute; larger batches (up to ~128-256) are ~free.

    key = jax.random.PRNGKey(0)
    key, kz = jax.random.split(key)
    # Latent code as it typically arrives from an encoder/conv stack: (B, z, 1, 1)
    z = jax.random.normal(kz, (BATCH, FEAT_DIM, 1, 1), jnp.float32)

    weights, gb, out_dims = init_generator_params(key, FEAT_DIM, NUM_POINTS)

    out = generator_forward(z, weights, gb, out_dims, NUM_POINTS)
    out = jax.block_until_ready(out)

    assert out.shape == (BATCH, 3, NUM_POINTS), out.shape
    assert out.dtype == jnp.float32
    assert bool(jnp.all(jnp.isfinite(out)))
    print("KERNEL_OK")
</pallas_src>

<mosaic_0001>
module attributes {stable_mosaic.version = 11 : i64} {
  func.func @_generator_kernel(%arg0: memref<4x32xf32, #tpu.memory_space<vmem>>, %arg1: memref<32x64xbf16, #tpu.memory_space<vmem>>, %arg2: memref<64x128xbf16, #tpu.memory_space<vmem>>, %arg3: memref<128x512xbf16, #tpu.memory_space<vmem>>, %arg4: memref<10x1024xf32, #tpu.memory_space<vmem>>, %arg5: memref<512x1024xbf16, #tpu.memory_space<any>>, %arg6: memref<1024x128xbf16, #tpu.memory_space<any>>, %arg7: memref<4x128xf32, #tpu.memory_space<vmem>>, %arg8: memref<512x1024xbf16, #tpu.memory_space<vmem>>, %arg9: memref<1024x128xbf16, #tpu.memory_space<vmem>>, %arg10: memref<2x!tpu.dma_semaphore, #tpu.memory_space<semaphore_mem>>) attributes {dimension_semantics = [], scalar_prefetch = 0 : i64, scratch_operands = 3 : i64, tpu.core_type = #tpu.core_type<tc>} {
    %c0_i32 = arith.constant 0 : i32
    %0 = tpu.memref_slice %arg10[%c0_i32] : memref<2x!tpu.dma_semaphore, #tpu.memory_space<semaphore_mem>> -> memref<1x!tpu.dma_semaphore, #tpu.memory_space<semaphore_mem>>
    %1 = tpu.memref_squeeze %0 : memref<1x!tpu.dma_semaphore, #tpu.memory_space<semaphore_mem>> -> memref<!tpu.dma_semaphore, #tpu.memory_space<semaphore_mem>>
    tpu.enqueue_dma source(%arg5 : memref<512x1024xbf16, #tpu.memory_space<any>>) target(%arg8 : memref<512x1024xbf16, #tpu.memory_space<vmem>>) target_semaphore(%1 : memref<!tpu.dma_semaphore, #tpu.memory_space<semaphore_mem>>)
    %c1_i32 = arith.constant 1 : i32
    %2 = tpu.memref_slice %arg10[%c1_i32] : memref<2x!tpu.dma_semaphore, #tpu.memory_space<semaphore_mem>> -> memref<1x!tpu.dma_semaphore, #tpu.memory_space<semaphore_mem>>
    %3 = tpu.memref_squeeze %2 : memref<1x!tpu.dma_semaphore, #tpu.memory_space<semaphore_mem>> -> memref<!tpu.dma_semaphore, #tpu.memory_space<semaphore_mem>>
    tpu.enqueue_dma source(%arg6 : memref<1024x128xbf16, #tpu.memory_space<any>>) target(%arg9 : memref<1024x128xbf16, #tpu.memory_space<vmem>>) target_semaphore(%3 : memref<!tpu.dma_semaphore, #tpu.memory_space<semaphore_mem>>)
    %c0 = arith.constant 0 : index
    %c0_0 = arith.constant 0 : index
    %4 = vector.load %arg0[%c0, %c0_0] : memref<4x32xf32, #tpu.memory_space<vmem>>, vector<4x32xf32>
    %5 = arith.truncf %4 : vector<4x32xf32> to vector<4x32xbf16>
    %c0_1 = arith.constant 0 : index
    %c0_2 = arith.constant 0 : index
    %6 = vector.load %arg4[%c0_1, %c0_2] : memref<10x1024xf32, #tpu.memory_space<vmem>>, vector<1x64xf32>
    %c1 = arith.constant 1 : index
    %c0_3 = arith.constant 0 : index
    %7 = vector.load %arg4[%c1, %c0_3] : memref<10x1024xf32, #tpu.memory_space<vmem>>, vector<1x64xf32>
    %c0_4 = arith.constant 0 : index
    %c0_5 = arith.constant 0 : index
    %8 = vector.load %arg1[%c0_4, %c0_5] : memref<32x64xbf16, #tpu.memory_space<vmem>>, vector<32x64xbf16>
    %cst = arith.constant dense<0.000000e+00> : vector<4x64xf32>
    %9 = tpu.matmul %5, %8, %cst {dimension_numbers = #tpu.dot_dimension_numbers<[1], [0], [0], [1], [0, 0, 1, 1], [], []>} : vector<4x32xbf16>, vector<32x64xbf16>, vector<4x64xf32> -> vector<4x64xf32>
    %cst_6 = arith.constant dense<0.000000e+00> : vector<64xf32>
    %10 = vector.multi_reduction <add>, %9, %cst_6 [0] : vector<4x64xf32> to vector<64xf32>
    %11 = vector.shape_cast %10 : vector<64xf32> to vector<1x64xf32>
    %cst_7 = arith.constant 4.000000e+00 : f32
    %12 = vector.broadcast %cst_7 : f32 to vector<1x64xf32>
    %13 = arith.divf %11, %12 : vector<1x64xf32>
    %14 = arith.mulf %9, %9 : vector<4x64xf32>
    %cst_8 = arith.constant dense<0.000000e+00> : vector<64xf32>
    %15 = vector.multi_reduction <add>, %14, %cst_8 [0] : vector<4x64xf32> to vector<64xf32>
    %16 = vector.shape_cast %15 : vector<64xf32> to vector<1x64xf32>
    %cst_9 = arith.constant 4.000000e+00 : f32
    %17 = vector.broadcast %cst_9 : f32 to vector<1x64xf32>
    %18 = arith.divf %16, %17 : vector<1x64xf32>
    %19 = arith.mulf %13, %13 : vector<1x64xf32>
    %20 = arith.subf %18, %19 : vector<1x64xf32>
    %cst_10 = arith.constant 0.000000e+00 : f32
    %21 = vector.broadcast %cst_10 : f32 to vector<1x64xf32>
    %22 = arith.maximumf %20, %21 : vector<1x64xf32>
    %cst_11 = arith.constant 9.99999974E-6 : f32
    %23 = vector.broadcast %cst_11 : f32 to vector<1x64xf32>
    %24 = arith.addf %22, %23 : vector<1x64xf32>
    %25 = math.rsqrt %24 : vector<1x64xf32>
    %26 = arith.mulf %6, %25 : vector<1x64xf32>
    %27 = arith.mulf %13, %26 : vector<1x64xf32>
    %28 = arith.subf %7, %27 : vector<1x64xf32>
    %29 = vector.broadcast %26 : vector<1x64xf32> to vector<4x64xf32>
    %30 = arith.mulf %9, %29 : vector<4x64xf32>
    %31 = vector.broadcast %28 : vector<1x64xf32> to vector<4x64xf32>
    %32 = arith.addf %30, %31 : vector<4x64xf32>
    %cst_12 = arith.constant 0.000000e+00 : f32
    %33 = vector.broadcast %cst_12 : f32 to vector<4x64xf32>
    %34 = arith.maximumf %32, %33 : vector<4x64xf32>
    %35 = arith.truncf %34 : vector<4x64xf32> to vector<4x64xbf16>
    %c2 = arith.constant 2 : index
    %c0_13 = arith.constant 0 : index
    %36 = vector.load %arg4[%c2, %c0_13] : memref<10x1024xf32, #tpu.memory_space<vmem>>, vector<1x128xf32>
    %c3 = arith.constant 3 : index
    %c0_14 = arith.constant 0 : index
    %37 = vector.load %arg4[%c3, %c0_14] : memref<10x1024xf32, #tpu.memory_space<vmem>>, vector<1x128xf32>
    %c0_15 = arith.constant 0 : index
    %c0_16 = arith.constant 0 : index
    %38 = vector.load %arg2[%c0_15, %c0_16] : memref<64x128xbf16, #tpu.memory_space<vmem>>, vector<64x128xbf16>
    %cst_17 = arith.constant dense<0.000000e+00> : vector<4x128xf32>
    %39 = tpu.matmul %35, %38, %cst_17 {dimension_numbers = #tpu.dot_dimension_numbers<[1], [0], [0], [1], [0, 0, 1, 1], [], []>} : vector<4x64xbf16>, vector<64x128xbf16>, vector<4x128xf32> -> vector<4x128xf32>
    %cst_18 = arith.constant dense<0.000000e+00> : vector<128xf32>
    %40 = vector.multi_reduction <add>, %39, %cst_18 [0] : vector<4x128xf32> to vector<128xf32>
    %41 = vector.shape_cast %40 : vector<128xf32> to vector<1x128xf32>
    %cst_19 = arith.constant 4.000000e+00 : f32
    %42 = vector.broadcast %cst_19 : f32 to vector<1x128xf32>
    %43 = arith.divf %41, %42 : vector<1x128xf32>
    %44 = arith.mulf %39, %39 : vector<4x128xf32>
    %cst_20 = arith.constant dense<0.000000e+00> : vector<128xf32>
    %45 = vector.multi_reduction <add>, %44, %cst_20 [0] : vector<4x128xf32> to vector<128xf32>
    %46 = vector.shape_cast %45 : vector<128xf32> to vector<1x128xf32>
    %cst_21 = arith.constant 4.000000e+00 : f32
    %47 = vector.broadcast %cst_21 : f32 to vector<1x128xf32>
    %48 = arith.divf %46, %47 : vector<1x128xf32>
    %49 = arith.mulf %43, %43 : vector<1x128xf32>
    %50 = arith.subf %48, %49 : vector<1x128xf32>
    %cst_22 = arith.constant 0.000000e+00 : f32
    %51 = vector.broadcast %cst_22 : f32 to vector<1x128xf32>
    %52 = arith.maximumf %50, %51 : vector<1x128xf32>
    %cst_23 = arith.constant 9.99999974E-6 : f32
    %53 = vector.broadcast %cst_23 : f32 to vector<1x128xf32>
    %54 = arith.addf %52, %53 : vector<1x128xf32>
    %55 = math.rsqrt %54 : vector<1x128xf32>
    %56 = arith.mulf %36, %55 : vector<1x128xf32>
    %57 = arith.mulf %43, %56 : vector<1x128xf32>
    %58 = arith.subf %37, %57 : vector<1x128xf32>
    %59 = vector.broadcast %56 : vector<1x128xf32> to vector<4x128xf32>
    %60 = arith.mulf %39, %59 : vector<4x128xf32>
    %61 = vector.broadcast %58 : vector<1x128xf32> to vector<4x128xf32>
    %62 = arith.addf %60, %61 : vector<4x128xf32>
    %cst_24 = arith.constant 0.000000e+00 : f32
    %63 = vector.broadcast %cst_24 : f32 to vector<4x128xf32>
    %64 = arith.maximumf %62, %63 : vector<4x128xf32>
    %65 = arith.truncf %64 : vector<4x128xf32> to vector<4x128xbf16>
    %c4 = arith.constant 4 : index
    %c0_25 = arith.constant 0 : index
    %66 = vector.load %arg4[%c4, %c0_25] : memref<10x1024xf32, #tpu.memory_space<vmem>>, vector<1x512xf32>
    %c5 = arith.constant 5 : index
    %c0_26 = arith.constant 0 : index
    %67 = vector.load %arg4[%c5, %c0_26] : memref<10x1024xf32, #tpu.memory_space<vmem>>, vector<1x512xf32>
    %c0_27 = arith.constant 0 : index
    %c0_28 = arith.constant 0 : index
    %68 = vector.load %arg3[%c0_27, %c0_28] : memref<128x512xbf16, #tpu.memory_space<vmem>>, vector<128x512xbf16>
    %cst_29 = arith.constant dense<0.000000e+00> : vector<4x512xf32>
    %69 = tpu.matmul %65, %68, %cst_29 {dimension_numbers = #tpu.dot_dimension_numbers<[1], [0], [0], [1], [0, 0, 1, 1], [], []>} : vector<4x128xbf16>, vector<128x512xbf16>, vector<4x512xf32> -> vector<4x512xf32>
    %cst_30 = arith.constant dense<0.000000e+00> : vector<512xf32>
    %70 = vector.multi_reduction <add>, %69, %cst_30 [0] : vector<4x512xf32> to vector<512xf32>
    %71 = vector.shape_cast %70 : vector<512xf32> to vector<1x512xf32>
    %cst_31 = arith.constant 4.000000e+00 : f32
    %72 = vector.broadcast %cst_31 : f32 to vector<1x512xf32>
    %73 = arith.divf %71, %72 : vector<1x512xf32>
    %74 = arith.mulf %69, %69 : vector<4x512xf32>
    %cst_32 = arith.constant dense<0.000000e+00> : vector<512xf32>
    %75 = vector.multi_reduction <add>, %74, %cst_32 [0] : vector<4x512xf32> to vector<512xf32>
    %76 = vector.shape_cast %75 : vector<512xf32> to vector<1x512xf32>
    %cst_33 = arith.constant 4.000000e+00 : f32
    %77 = vector.broadcast %cst_33 : f32 to vector<1x512xf32>
    %78 = arith.divf %76, %77 : vector<1x512xf32>
    %79 = arith.mulf %73, %73 : vector<1x512xf32>
    %80 = arith.subf %78, %79 : vector<1x512xf32>
    %cst_34 = arith.constant 0.000000e+00 : f32
    %81 = vector.broadcast %cst_34 : f32 to vector<1x512xf32>
    %82 = arith.maximumf %80, %81 : vector<1x512xf32>
    %cst_35 = arith.constant 9.99999974E-6 : f32
    %83 = vector.broadcast %cst_35 : f32 to vector<1x512xf32>
    %84 = arith.addf %82, %83 : vector<1x512xf32>
    %85 = math.rsqrt %84 : vector<1x512xf32>
    %86 = arith.mulf %66, %85 : vector<1x512xf32>
    %87 = arith.mulf %73, %86 : vector<1x512xf32>
    %88 = arith.subf %67, %87 : vector<1x512xf32>
    %89 = vector.broadcast %86 : vector<1x512xf32> to vector<4x512xf32>
    %90 = arith.mulf %69, %89 : vector<4x512xf32>
    %91 = vector.broadcast %88 : vector<1x512xf32> to vector<4x512xf32>
    %92 = arith.addf %90, %91 : vector<4x512xf32>
    %cst_36 = arith.constant 0.000000e+00 : f32
    %93 = vector.broadcast %cst_36 : f32 to vector<4x512xf32>
    %94 = arith.maximumf %92, %93 : vector<4x512xf32>
    %95 = arith.truncf %94 : vector<4x512xf32> to vector<4x512xbf16>
    %c0_i32_37 = arith.constant 0 : i32
    %96 = tpu.memref_slice %arg10[%c0_i32_37] : memref<2x!tpu.dma_semaphore, #tpu.memory_space<semaphore_mem>> -> memref<1x!tpu.dma_semaphore, #tpu.memory_space<semaphore_mem>>
    %97 = tpu.memref_squeeze %96 : memref<1x!tpu.dma_semaphore, #tpu.memory_space<semaphore_mem>> -> memref<!tpu.dma_semaphore, #tpu.memory_space<semaphore_mem>>
    tpu.wait_dma2 semaphore(%97 : memref<!tpu.dma_semaphore, #tpu.memory_space<semaphore_mem>>) src(%arg5 : memref<512x1024xbf16, #tpu.memory_space<any>>) dst(%arg8 : memref<512x1024xbf16, #tpu.memory_space<vmem>>)
    %c6 = arith.constant 6 : index
    %c0_38 = arith.constant 0 : index
    %98 = vector.load %arg4[%c6, %c0_38] : memref<10x1024xf32, #tpu.memory_space<vmem>>, vector<1x1024xf32>
    %c7 = arith.constant 7 : index
    %c0_39 = arith.constant 0 : index
    %99 = vector.load %arg4[%c7, %c0_39] : memref<10x1024xf32, #tpu.memory_space<vmem>>, vector<1x1024xf32>
    %c0_40 = arith.constant 0 : index
    %c0_41 = arith.constant 0 : index
    %100 = vector.load %arg8[%c0_40, %c0_41] : memref<512x1024xbf16, #tpu.memory_space<vmem>>, vector<512x1024xbf16>
    %cst_42 = arith.constant dense<0.000000e+00> : vector<4x1024xf32>
    %101 = tpu.matmul %95, %100, %cst_42 {dimension_numbers = #tpu.dot_dimension_numbers<[1], [0], [0], [1], [0, 0, 1, 1], [], []>} : vector<4x512xbf16>, vector<512x1024xbf16>, vector<4x1024xf32> -> vector<4x1024xf32>
    %cst_43 = arith.constant dense<0.000000e+00> : vector<1024xf32>
    %102 = vector.multi_reduction <add>, %101, %cst_43 [0] : vector<4x1024xf32> to vector<1024xf32>
    %103 = vector.shape_cast %102 : vector<1024xf32> to vector<1x1024xf32>
    %cst_44 = arith.constant 4.000000e+00 : f32
    %104 = vector.broadcast %cst_44 : f32 to vector<1x1024xf32>
    %105 = arith.divf %103, %104 : vector<1x1024xf32>
    %106 = arith.mulf %101, %101 : vector<4x1024xf32>
    %cst_45 = arith.constant dense<0.000000e+00> : vector<1024xf32>
    %107 = vector.multi_reduction <add>, %106, %cst_45 [0] : vector<4x1024xf32> to vector<1024xf32>
    %108 = vector.shape_cast %107 : vector<1024xf32> to vector<1x1024xf32>
    %cst_46 = arith.constant 4.000000e+00 : f32
    %109 = vector.broadcast %cst_46 : f32 to vector<1x1024xf32>
    %110 = arith.divf %108, %109 : vector<1x1024xf32>
    %111 = arith.mulf %105, %105 : vector<1x1024xf32>
    %112 = arith.subf %110, %111 : vector<1x1024xf32>
    %cst_47 = arith.constant 0.000000e+00 : f32
    %113 = vector.broadcast %cst_47 : f32 to vector<1x1024xf32>
    %114 = arith.maximumf %112, %113 : vector<1x1024xf32>
    %cst_48 = arith.constant 9.99999974E-6 : f32
    %115 = vector.broadcast %cst_48 : f32 to vector<1x1024xf32>
    %116 = arith.addf %114, %115 : vector<1x1024xf32>
    %117 = math.rsqrt %116 : vector<1x1024xf32>
    %118 = arith.mulf %98, %117 : vector<1x1024xf32>
    %119 = arith.mulf %105, %118 : vector<1x1024xf32>
    %120 = arith.subf %99, %119 : vector<1x1024xf32>
    %121 = vector.broadcast %118 : vector<1x1024xf32> to vector<4x1024xf32>
    %122 = arith.mulf %101, %121 : vector<4x1024xf32>
    %123 = vector.broadcast %120 : vector<1x1024xf32> to vector<4x1024xf32>
    %124 = arith.addf %122, %123 : vector<4x1024xf32>
    %cst_49 = arith.constant 0.000000e+00 : f32
    %125 = vector.broadcast %cst_49 : f32 to vector<4x1024xf32>
    %126 = arith.maximumf %124, %125 : vector<4x1024xf32>
    %127 = arith.truncf %126 : vector<4x1024xf32> to vector<4x1024xbf16>
    %c1_i32_50 = arith.constant 1 : i32
    %128 = tpu.memref_slice %arg10[%c1_i32_50] : memref<2x!tpu.dma_semaphore, #tpu.memory_space<semaphore_mem>> -> memref<1x!tpu.dma_semaphore, #tpu.memory_space<semaphore_mem>>
    %129 = tpu.memref_squeeze %128 : memref<1x!tpu.dma_semaphore, #tpu.memory_space<semaphore_mem>> -> memref<!tpu.dma_semaphore, #tpu.memory_space<semaphore_mem>>
    tpu.wait_dma2 semaphore(%129 : memref<!tpu.dma_semaphore, #tpu.memory_space<semaphore_mem>>) src(%arg6 : memref<1024x128xbf16, #tpu.memory_space<any>>) dst(%arg9 : memref<1024x128xbf16, #tpu.memory_space<vmem>>)
    %c8 = arith.constant 8 : index
    %c0_51 = arith.constant 0 : index
    %130 = vector.load %arg4[%c8, %c0_51] : memref<10x1024xf32, #tpu.memory_space<vmem>>, vector<1x128xf32>
    %c9 = arith.constant 9 : index
    %c0_52 = arith.constant 0 : index
    %131 = vector.load %arg4[%c9, %c0_52] : memref<10x1024xf32, #tpu.memory_space<vmem>>, vector<1x128xf32>
    %c0_53 = arith.constant 0 : index
    %c0_54 = arith.constant 0 : index
    %132 = vector.load %arg9[%c0_53, %c0_54] : memref<1024x128xbf16, #tpu.memory_space<vmem>>, vector<1024x128xbf16>
    %cst_55 = arith.constant dense<0.000000e+00> : vector<4x128xf32>
    %133 = tpu.matmul %127, %132, %cst_55 {dimension_numbers = #tpu.dot_dimension_numbers<[1], [0], [0], [1], [0, 0, 1, 1], [], []>} : vector<4x1024xbf16>, vector<1024x128xbf16>, vector<4x128xf32> -> vector<4x128xf32>
    %cst_56 = arith.constant dense<0.000000e+00> : vector<128xf32>
    %134 = vector.multi_reduction <add>, %133, %cst_56 [0] : vector<4x128xf32> to vector<128xf32>
    %135 = vector.shape_cast %134 : vector<128xf32> to vector<1x128xf32>
    %cst_57 = arith.constant 4.000000e+00 : f32
    %136 = vector.broadcast %cst_57 : f32 to vector<1x128xf32>
    %137 = arith.divf %135, %136 : vector<1x128xf32>
    %138 = arith.mulf %133, %133 : vector<4x128xf32>
    %cst_58 = arith.constant dense<0.000000e+00> : vector<128xf32>
    %139 = vector.multi_reduction <add>, %138, %cst_58 [0] : vector<4x128xf32> to vector<128xf32>
    %140 = vector.shape_cast %139 : vector<128xf32> to vector<1x128xf32>
    %cst_59 = arith.constant 4.000000e+00 : f32
    %141 = vector.broadcast %cst_59 : f32 to vector<1x128xf32>
    %142 = arith.divf %140, %141 : vector<1x128xf32>
    %143 = arith.mulf %137, %137 : vector<1x128xf32>
    %144 = arith.subf %142, %143 : vector<1x128xf32>
    %cst_60 = arith.constant 0.000000e+00 : f32
    %145 = vector.broadcast %cst_60 : f32 to vector<1x128xf32>
    %146 = arith.maximumf %144, %145 : vector<1x128xf32>
    %cst_61 = arith.constant 9.99999974E-6 : f32
    %147 = vector.broadcast %cst_61 : f32 to vector<1x128xf32>
    %148 = arith.addf %146, %147 : vector<1x128xf32>
    %149 = math.rsqrt %148 : vector<1x128xf32>
    %150 = arith.mulf %130, %149 : vector<1x128xf32>
    %151 = arith.mulf %137, %150 : vector<1x128xf32>
    %152 = arith.subf %131, %151 : vector<1x128xf32>
    %153 = vector.broadcast %150 : vector<1x128xf32> to vector<4x128xf32>
    %154 = arith.mulf %133, %153 : vector<4x128xf32>
    %155 = vector.broadcast %152 : vector<1x128xf32> to vector<4x128xf32>
    %156 = arith.addf %154, %155 : vector<4x128xf32>
    %cst_62 = arith.constant 0.000000e+00 : f32
    %157 = vector.broadcast %cst_62 : f32 to vector<4x128xf32>
    %158 = arith.maximumf %156, %157 : vector<4x128xf32>
    %c0_63 = arith.constant 0 : index
    %c0_64 = arith.constant 0 : index
    %159 = vector.load %arg7[%c0_63, %c0_64] : memref<4x128xf32, #tpu.memory_space<vmem>>, vector<4x128xf32>
    tpu.vector_store %arg7[%c0_63, %c0_64], %158 {strides = array<i32>} : memref<4x128xf32, #tpu.memory_space<vmem>>, vector<4x128xf32>,
    return
  }
}

</mosaic_0001>

<bundles_post_ra>
// kernel: tpu_custom_call.1
= control target key start
LH: loop header
LB: loop body
LE: loop exit
PB: predicated region body
PF: predicated region fallthrough
CT: control target
= control target key end

     0   :  { %12 = vsyncpa [#allocation6], 0  ;;  %s6196_s0 = inlined_call_operand.hbm [shape: f32[4,32], index: 0, kind: input, shape index: {}]   ;;  %s6197_s1 = inlined_call_operand.hbm [shape: bf16[32,64], index: 1, kind: input, shape index: {}]   ;;  %s6198_s2 = inlined_call_operand.hbm [shape: bf16[64,128], index: 2, kind: input, shape index: {}]   ;;  %s6199_s3 = inlined_call_operand.hbm [shape: bf16[128,512], index: 3, kind: input, shape index: {}]   ;;  %s6200_s4 = inlined_call_operand.hbm [shape: f32[10,1024], index: 4, kind: input, shape index: {}]   ;;  %s6201_s5 = inlined_call_operand.hbm [shape: bf16[512,1024], index: 5, kind: input, shape index: {}]   ;;  %s6202_s6 = inlined_call_operand.hbm [shape: bf16[1024,128], index: 6, kind: input, shape index: {}]   ;;  %s6203_s7 = inlined_call_operand.hbm [shape: f32[4,128], index: 7, kind: output, shape index: {}]  }
   0x1   :  { %13 = vsyncpa [#allocation9], 0 }
   0x2   :  { %14 = vsyncpa [#allocation12], 0  ;;  %s31_s26 = sshll.u32 %s6197_s1, 4  ;;  %s32_s26 = int_to_ptr.hbm [resolvable:$true] %s31_s26 }
   0x3   :  { %15 = vsyncpa [#allocation7], 0  ;;  %s5810_s27 = smov [#allocation8]   ;;  %s57_s8 = sshll.u32 %s6199_s3, 4  ;;  %s58_s8 = int_to_ptr.hbm [resolvable:$true] %s57_s8 }
   0x4   :  { %s33_s28 = sshll.u32 %s5810_s27, 4  ;;  %s5811_s9 = smov 64   ;;  %s34_s28 = int_to_ptr.vmem [resolvable:$true] %s33_s28 }
   0x5   :  { %s5812_s10 = smov 4   ;;  %s5813_s11 = smov [#allocation11]  }
   0x6   :  { %39 = dma.hbm_to_vmem [thread:$0]  %s32_s26, 256, %s34_s28, [#allocation9], %s5811_s9, %s5811_s9, %s5812_s10  }
   0x7   :  { %s59_s12 = sshll.u32 %s5813_s11, 4  ;;  %s5814_s13 = smov 256   ;;  %s60_s12 = int_to_ptr.vmem [resolvable:$true] %s59_s12 }
   0x8   :  { %s5815_s1 = smov 16   ;;  %s21_s16 = sshll.u32 %s6196_s0, 4  ;;  %s22_s16 = int_to_ptr.hbm [resolvable:$true] %s21_s16 }
   0x9   :  { %65 = dma.hbm_to_vmem [thread:$0]  %s58_s8, 4096, %s60_s12, [#allocation12], %s5814_s13, %s5814_s13, %s5815_s1  }
   0xa   :  { %s5816_s17 = smov [#allocation5]   ;;  %s44_s20 = sshll.u32 %s6198_s2, 4  ;;  %s45_s20 = int_to_ptr.hbm [resolvable:$true] %s44_s20 }
   0xb   :  { %s23_s18 = sshll.u32 %s5816_s17, 4  ;;  %s5817_s21 = smov [#allocation10]   ;;  %s24_s18 = int_to_ptr.vmem [resolvable:$true] %s23_s18 }
   0xc   :  { %26 = dma.hbm_to_vmem [thread:$0]  %s22_s16, 64, %s24_s18, [#allocation6]  }
   0xd   :  { %s46_s22 = sshll.u32 %s5817_s21, 4  ;;  %s70_s25 = sshll.u32 %s6200_s4, 4  ;;  %s47_s22 = int_to_ptr.vmem [resolvable:$true] %s46_s22  ;;  %s71_s25 = int_to_ptr.hbm [resolvable:$true] %s70_s25 }
   0xe   :  { %52 = dma.hbm_to_vmem [thread:$0]  %s45_s20, 512, %s47_s22, [#allocation9], %s5811_s9, %s5811_s9, %s5812_s10  }
   0xf   :  { %s5818_s0 = smov [#allocation13]   ;;  %s5819_s27 = smov 1024  }
  0x10   :  { %s72_s26 = sshll.u32 %s5818_s0, 4  ;;  %s73_s26 = int_to_ptr.vmem [resolvable:$true] %s72_s26 }
  0x11   :  { %78 = dma.hbm_to_vmem [thread:$0]  %s71_s25, 2048, %s73_s26, [#allocation12], %s5819_s27, %s5819_s27, %s5811_s9  }
  0x12   :  { %5798 = dma.done.wait [#allocation6], 64  }
  0x13   :  { %5799 = vsyncadd [#allocation6], 4294967232 }
  0x14   :  { %5800 = dma.done.wait [#allocation9], 768  }
  0x15   :  { %5801 = vsyncadd [#allocation9], 4294966528 }
  0x16   :  { %5802 = dma.done.wait [#allocation12], 6144  }
  0x17   :  { %5803 = vsyncadd [#allocation12], 4294961152  ;;  %v5203_v0 = vld [vmem:[#allocation8 + $0x8] sm:$0xff]  ;;  %v5202_v1 = vld [vmem:[#allocation8] sm:$0xff]  ;;  %vm147_vm0 = vcmask 261120   ;;  %v5820_v4 = vmov 4.0  }
  0x18   :  { %157 = vmatpush.bf16.msra.mxu0 %v5203_v0  ;;  %v127_v2 = vld [vmem:[#allocation5] sm:$0xf]  ;;  %5574 = vrcp.f32 %v5820_v4  ;;  %vm164_vm1 = vcmask 519168   ;;  %v5207_v16 = vld [vmem:[#allocation10 + $0x18] sm:$0xff]  ;;  %v5206_v23 = vld [vmem:[#allocation10 + $0x10] sm:$0xff]  ;;  %vm244_vm6 = vcmask 523264  }
  0x19   :  { %v128_v3 = vpack.c.bf16 %v127_v2, %v127_v2  ;;  %252 = vmatpush.bf16.msra.mxu1 %v5207_v16  ;;  %v5205_v29 = vld [vmem:[#allocation10 + $0x8] sm:$0xff]  ;;  %v5204_v32 = vld [vmem:[#allocation10] sm:$0xff]  ;;  %v5238_v55 = vld [vmem:[#allocation11 + $0xec] sm:$0xf0]  ;;  %vm261_vm7 = vcmask 1043456   ;;  %s107_s28 = sshll.u32 %s6201_s5, 4  ;;  %s108_s28 = int_to_ptr.hbm [resolvable:$true] %s107_s28 }
  0x1a   :  { %v129_v43 = vld [vmem:[#allocation13] ss:$0 sm:$0xff]  ;;  %v130_v47 = vld [vmem:[#allocation13 + $0x1] ss:$0 sm:$0xff]  ;;  %v5236_v56 = vld [vmem:[#allocation11 + $0xe4] sm:$0xf] }
  0x1b   :  { %v3906_v54 = vld [vmem:[#allocation11 + $0xe0] sm:$0xf]  ;;  %v3908_v58 = vld [vmem:[#allocation11 + $0xf0] sm:$0xf0]  ;;  %v3914_v59 = vld [vmem:[#allocation11 + $0xe8] sm:$0xf] }
  0x1c   :  { %158 = vmatpush.bf16.msra.mxu0 %v5202_v1  ;;  %v3907_v57 = vor.u32 %v5238_v55, %v3906_v54  ;;  %v5239_v60 = vld [vmem:[#allocation11 + $0xf4] sm:$0xf0]  ;;  %v3911_v61 = vor.u32 %v5236_v56, %v3908_v58  ;;  %v5237_v63 = vld [vmem:[#allocation11 + $0xec] sm:$0xf]  ;;  %v3916_v0 = vld [vmem:[#allocation11 + $0xf8] sm:$0xf0] }
  0x1d   :  { %253 = vmatpush.bf16.msra.mxu1 %v5206_v23  ;;  %v3915_v62 = vor.u32 %v5239_v60, %v3914_v59  ;;  %v3919_v1 = vor.u32 %v5237_v63, %v3916_v0  ;;  %v3890_v2 = vld [vmem:[#allocation11 + $0xc0] sm:$0xf]  ;;  %v5232_v4 = vld [vmem:[#allocation11 + $0xc4] sm:$0xf]  ;;  %v5229_v23 = vld [vmem:[#allocation11 + $0xac] sm:$0xf] }
  0x1e   :  { %v5575_v5 = vpop.eup %5574  ;;  %496 = vmatpush.bf16.msra.mxu2 %v3907_v57  ;;  %509 = vmatpush.bf16.msra.mxu3 %v3911_v61  ;;  %v5228_v16 = vld [vmem:[#allocation11 + $0xa4] sm:$0xf]  ;;  %v5223_v55 = vld [vmem:[#allocation11 + $0x74] sm:$0xf0]  ;;  %v5221_v56 = vld [vmem:[#allocation11 + $0x6c] sm:$0xf] }
  0x1f   :  { %3774 = vmatmul.msk.bf16.vlgmr.msra.gmra.mxu0 %vm147_vm0, %v128_v3  ;;  %v173_v6 = vmul.f32 4.0, %v5575_v5  ;;  %vm177_vm2 = vweird.f32 %v5575_v5  ;;  %v5234_v3 = vld [vmem:[#allocation11 + $0xcc] sm:$0xf0]  ;;  %v3852_v58 = vld [vmem:[#allocation11 + $0x78] sm:$0xf0]  ;;  %s5821_s29 = smov [#allocation2]  }
  0x20   :  { %522 = vmatpush.bf16.msrb.mxu0 %v3915_v62  ;;  %v3855_v62 = vor.u32 %v5221_v56, %v3852_v58  ;;  %v3826_v63 = vld [vmem:[#allocation11 + $0x40] sm:$0xf]  ;;  %v5218_v0 = vld [vmem:[#allocation11 + $0x4c] sm:$0xf0]  ;;  %s109_s30 = sshll.u32 %s5821_s29, 4  ;;  %s121_s10 = sshll.u32 %s6202_s6, 4  ;;  %s110_s30 = int_to_ptr.vmem [resolvable:$true] %s109_s30  ;;  %s122_s10 = int_to_ptr.hbm [resolvable:$true] %s121_s10 }
  0x21   :  { %v174_v7 = vsub.f32 1.0, %v173_v6  ;;  %254 = vmatpush.bf16.msra.mxu1 %v5205_v29  ;;  %v3892_v6 = vld [vmem:[#allocation11 + $0xd0] sm:$0xf0]  ;;  %v5226_v29 = vld [vmem:[#allocation11 + $0x8c] sm:$0xf0]  ;;  %s5822_s11 = smov [#allocation3]  }
  0x22   :  { %112 = dma.hbm_to_vmem [thread:$0]  %s108_s28, 32768, %s110_s30, [#allocation4] }
  0x23   :  { %v175_v12 = vmul.f32 %v5575_v5, %v174_v7  ;;  %v3898_v7 = vld [vmem:[#allocation11 + $0xc8] sm:$0xf]  ;;  %s123_s12 = sshll.u32 %s5822_s11, 4  ;;  %s124_s12 = int_to_ptr.vmem [resolvable:$true] %s123_s12 }
  0x24   :  { %126 = dma.hbm_to_vmem [thread:$0]  %s122_s10, 8192, %s124_s12, [#allocation4 + $0x1] }
  0x25   :  { %v176_v19 = vadd.f32 %v5575_v5, %v175_v12  ;;  %255 = vmatpush.bf16.msra.mxu1 %v5204_v32  ;;  %v3900_v12 = vld [vmem:[#allocation11 + $0xd8] sm:$0xf0] }
  0x27   :  { %v5884_v26 = vsel %vm177_vm2, %v5575_v5, %v176_v19  ;;  %v3891_v5 = vor.u32 %v5234_v3, %v3890_v2  ;;  %v3882_v19 = vld [vmem:[#allocation11 + $0xa8] sm:$0xf]  ;;  %v5216_v2 = vld [vmem:[#allocation11 + $0x44] sm:$0xf]  ;;  %v3828_v3 = vld [vmem:[#allocation11 + $0x50] sm:$0xf0] }
  0x29   :  { %535 = vmatpush.bf16.msrb.mxu1 %v3919_v1  ;;  %497 = vmatpush.bf16.msra.mxu2 %v3891_v5  ;;  %v3827_v1 = vor.u32 %v5218_v0, %v3826_v63 }
  0x9c   :  { %v160_v8 = vpop.f32.mrf.mxu0 }
  0x9d   :  { %v165_v9 = vsel %vm164_vm1, %v160_v8, 0.0  ;;  %v180_v10 = vmul.f32 %v160_v8, %v160_v8 }
  0x9e   :  { %v166_v11 = vrot.slane %v165_v9, 4 }
  0x9f   :  { %v181_v13 = vsel %vm164_vm1, %v180_v10, 0.0 }
  0xa0   :  { %v167_v14 = vadd.f32 %v166_v11, %v165_v9  ;;  %v182_v15 = vrot.slane %v181_v13, 4  ;;  %v3895_v9 = vor.u32 %v5232_v4, %v3892_v6  ;;  %v5233_v11 = vld [vmem:[#allocation11 + $0xcc] sm:$0xf]  ;;  %v3834_v4 = vld [vmem:[#allocation11 + $0x48] sm:$0xf] }
  0xa2   :  { %v168_v17 = vrot.slane %v167_v14, 2  ;;  %v183_v18 = vadd.f32 %v182_v15, %v181_v13  ;;  %v3903_v13 = vor.u32 %v5233_v11, %v3900_v12  ;;  %510 = vmatpush.bf16.msra.mxu3 %v3895_v9  ;;  %v5230_v15 = vld [vmem:[#allocation11 + $0xac] sm:$0xf0]  ;;  %v5217_v9 = vld [vmem:[#allocation11 + $0x4c] sm:$0xf] }
  0xa3   :  { %v3836_v11 = vld [vmem:[#allocation11 + $0x58] sm:$0xf0] }
  0xa4   :  { %v169_v20 = vadd.f32 %v168_v17, %v167_v14  ;;  %v184_v21 = vrot.slane %v183_v18, 2  ;;  %v162_v22 = vpop.f32.mrf.mxu0  ;;  %v3874_v14 = vld [vmem:[#allocation11 + $0xa0] sm:$0xf]  ;;  %536 = vmatpush.bf16.msrb.mxu1 %v3903_v13 }
  0xa5   :  { %v3875_v17 = vor.u32 %v5230_v15, %v3874_v14  ;;  %v3839_v14 = vor.u32 %v5217_v9, %v3836_v11  ;;  %v3810_v15 = vld [vmem:[#allocation11 + $0x20] sm:$0xf] }
  0xa6   :  { %v170_v24 = vrot.slane %v169_v20, 1  ;;  %v185_v25 = vadd.f32 %v184_v21, %v183_v18  ;;  %v3876_v18 = vld [vmem:[#allocation11 + $0xb0] sm:$0xf0] }
  0xa7   :  { %v3879_v21 = vor.u32 %v5228_v16, %v3876_v18  ;;  %498 = vmatpush.bf16.msra.mxu2 %v3875_v17  ;;  %v5214_v16 = vld [vmem:[#allocation11 + $0x2c] sm:$0xf0]  ;;  %v5212_v18 = vld [vmem:[#allocation11 + $0x24] sm:$0xf] }
  0xa8   :  { %v171_v27 = vadd.f32 %v170_v24, %v169_v20  ;;  %v186_v28 = vrot.slane %v185_v25, 1  ;;  %v5231_v20 = vld [vmem:[#allocation11 + $0xb4] sm:$0xf0]  ;;  %v3884_v24 = vld [vmem:[#allocation11 + $0xb8] sm:$0xf0]  ;;  %v3811_v17 = vor.u32 %v5214_v16, %v3810_v15 }
  0xa9   :  { %v3883_v22 = vor.u32 %v5231_v20, %v3882_v19  ;;  %511 = vmatpush.bf16.msra.mxu3 %v3879_v21  ;;  %v3812_v19 = vld [vmem:[#allocation11 + $0x30] sm:$0xf0]  ;;  %v3818_v20 = vld [vmem:[#allocation11 + $0x28] sm:$0xf] }
  0xaa   :  { %v179_v30 = vmul.f32 %v5884_v26, %v171_v27  ;;  %v187_v31 = vadd.f32 %v186_v28, %v185_v25  ;;  %v3887_v25 = vor.u32 %v5229_v23, %v3884_v24  ;;  %v3858_v28 = vld [vmem:[#allocation11 + $0x80] sm:$0xf]  ;;  %v3815_v23 = vor.u32 %v5212_v18, %v3812_v19  ;;  %v5215_v24 = vld [vmem:[#allocation11 + $0x34] sm:$0xf0] }
  0xac   :  { %v188_v33 = vmul.f32 %v187_v31, %v5884_v26  ;;  %v189_v34 = vmul.f32 %v179_v30, %v179_v30  ;;  %537 = vmatpush.bf16.msrb.mxu1 %v3887_v25  ;;  %v5213_v25 = vld [vmem:[#allocation11 + $0x2c] sm:$0xf] }
  0xae   :  { %v190_v35 = vsub.f32 %v188_v33, %v189_v34  ;;  %v3859_v33 = vor.u32 %v5226_v29, %v3858_v28  ;;  %v3860_v34 = vld [vmem:[#allocation11 + $0x90] sm:$0xf0]  ;;  %v3820_v28 = vld [vmem:[#allocation11 + $0x38] sm:$0xf0]  ;;  %v3819_v29 = vor.u32 %v5215_v24, %v3818_v20 }
  0xb0   :  { %v191_v36 = vmax.f32 %v190_v35, 0.0  ;;  %v3866_v35 = vld [vmem:[#allocation11 + $0x88] sm:$0xf]  ;;  %499 = vmatpush.bf16.msra.mxu2 %v3859_v33  ;;  %v3794_v33 = vld [vmem:[#allocation11] sm:$0xf] }
  0xb2   :  { %v192_v37 = vadd.f32 1e-05, %v191_v36 }
  0xb4   :  { %5576 = vrsqrt.f32 %v192_v37  ;;  %vm199_vm4 = vweird.f32 %v192_v37 }
  0xba   :  { %v5577_v38 = vpop.eup %5576 }
  0xbb   :  { %v194_v39 = vmul.f32 %v5577_v38, %v192_v37  ;;  %vm200_vm3 = vweird.f32 %v5577_v38 }
  0xbc   :  { %vm201_vm5 = vmor %vm199_vm4, %vm200_vm3 }
  0xbd   :  { %v195_v40 = vmul.f32 %v5577_v38, %v194_v39  ;;  %v5225_v39 = vld [vmem:[#allocation11 + $0x8c] sm:$0xf] }
  0xbf   :  { %v196_v41 = vmul.f32 0.5, %v195_v40 }
  0xc1   :  { %v197_v42 = vsub.f32 1.5, %v196_v41 }
  0xc3   :  { %v198_v44 = vmul.f32 %v5577_v38, %v197_v42  ;;  %v3868_v42 = vld [vmem:[#allocation11 + $0x98] sm:$0xf0] }
  0xc5   :  { %v202_v45 = vsel %vm201_vm5, %v5577_v38, %v198_v44  ;;  %v5227_v38 = vld [vmem:[#allocation11 + $0x94] sm:$0xf0] }
  0xc6   :  { %v203_v46 = vmul.f32 %v202_v45, %v129_v43  ;;  %v3867_v41 = vor.u32 %v5227_v38, %v3866_v35  ;;  %v3871_v45 = vor.u32 %v5225_v39, %v3868_v42  ;;  %v5208_v35 = vld [vmem:[#allocation11 + $0x4] sm:$0xf]  ;;  %v3802_v38 = vld [vmem:[#allocation11 + $0x8] sm:$0xf]  ;;  %v5211_v39 = vld [vmem:[#allocation11 + $0x14] sm:$0xf0] }
  0xc7   :  { %v3803_v42 = vor.u32 %v5211_v39, %v3802_v38 }
  0xc8   :  { %v204_v48 = vmul.f32 %v203_v46, %v179_v30  ;;  %v206_v49 = vmul.f32 %v203_v46, %v160_v8  ;;  %v5235_v8 = vld [vmem:[#allocation11 + $0xd4] sm:$0xf0]  ;;  %v5224_v30 = vld [vmem:[#allocation11 + $0x84] sm:$0xf]  ;;  %v3842_v46 = vld [vmem:[#allocation11 + $0x60] sm:$0xf]  ;;  %538 = vmatpush.bf16.msrb.mxu1 %v3871_v45 }
  0xc9   :  { %v3899_v10 = vor.u32 %v5235_v8, %v3898_v7  ;;  %v3863_v37 = vor.u32 %v5224_v30, %v3860_v34  ;;  %v3831_v7 = vor.u32 %v5216_v2, %v3828_v3  ;;  %v5219_v8 = vld [vmem:[#allocation11 + $0x54] sm:$0xf0]  ;;  %v3823_v30 = vor.u32 %v5213_v25, %v3820_v28  ;;  %v5210_v34 = vld [vmem:[#allocation11 + $0xc] sm:$0xf0] }
  0xca   :  { %v205_v50 = vsub.f32 %v130_v47, %v204_v48  ;;  %v5222_v47 = vld [vmem:[#allocation11 + $0x6c] sm:$0xf0] }
  0xcb   :  { %523 = vmatpush.bf16.msrb.mxu0 %v3899_v10  ;;  %512 = vmatpush.bf16.msra.mxu3 %v3863_v37  ;;  %v3843_v48 = vor.u32 %v5222_v47, %v3842_v46  ;;  %v3835_v10 = vor.u32 %v5219_v8, %v3834_v4  ;;  %v3796_v37 = vld [vmem:[#allocation11 + $0x10] sm:$0xf0] }
  0xcc   :  { %v207_v51 = vadd.f32 %v206_v49, %v205_v50  ;;  %v5220_v49 = vld [vmem:[#allocation11 + $0x64] sm:$0xf]  ;;  %v3844_v50 = vld [vmem:[#allocation11 + $0x70] sm:$0xf0]  ;;  %539 = vmatpush.bf16.msrb.mxu1 %v3855_v62 }
  0xcd   :  { %v3847_v54 = vor.u32 %v5220_v49, %v3844_v50  ;;  %500 = vmatpush.bf16.msra.mxu2 %v3843_v48 }
  0xce   :  { %v208_v52 = vmax.f32 %v207_v51, 0.0  ;;  %v3850_v51 = vld [vmem:[#allocation11 + $0x68] sm:$0xf] }
  0xcf   :  { %524 = vmatpush.bf16.msrb.mxu0 %v3883_v22  ;;  %v3851_v57 = vor.u32 %v5223_v55, %v3850_v51  ;;  %513 = vmatpush.bf16.msra.mxu3 %v3847_v54 }
  0xd0   :  { %v209_v53 = vpack.c.bf16 %v208_v52, %v208_v52  ;;  %540 = vmatpush.bf16.msrb.mxu1 %v3839_v14 }
  0xd1   :  { %501 = vmatpush.bf16.msra.mxu2 %v3827_v1 }
  0xd2   :  { %3791 = vmatmul.msk.bf16.vlgmr.msra.gmra.mxu1 %vm244_vm6, %v209_v53  ;;  %vm679_vm6 = vcmask 1040384  }
  0xd3   :  { %525 = vmatpush.bf16.msrb.mxu0 %v3867_v41  ;;  %514 = vmatpush.bf16.msra.mxu3 %v3831_v7  ;;  %v3799_v41 = vor.u32 %v5208_v35, %v3796_v37 }
  0xd4   :  { %541 = vmatpush.bf16.msrb.mxu1 %v3823_v30 }
  0xd5   :  { %502 = vmatpush.bf16.msra.mxu2 %v3811_v17 }
  0xd7   :  { %526 = vmatpush.bf16.msrb.mxu0 %v3851_v57  ;;  %515 = vmatpush.bf16.msra.mxu3 %v3815_v23  ;;  %v211_v57 = vld [vmem:[#allocation13 + $0x3] ss:$0 sm:$0xff] }
  0xdb   :  { %527 = vmatpush.bf16.msrb.mxu0 %v3835_v10  ;;  %516 = vmatpush.bf16.msra.mxu3 %v3799_v41 }
  0xdf   :  { %528 = vmatpush.bf16.msrb.mxu0 %v3819_v29 }
  0xe3   :  { %529 = vmatpush.bf16.msrb.mxu0 %v3803_v42 }
 0x14f   :  { %v5888_v27 = vpop.f32.mrf.mxu1 }
 0x150   :  { %v262_v31 = vsel %vm261_vm7, %v5888_v27, 0.0  ;;  %v270_v32 = vmul.f32 %v5888_v27, %v5888_v27 }
 0x151   :  { %v263_v36 = vrot.slane %v262_v31, 4 }
 0x152   :  { %v271_v40 = vsel %vm261_vm7, %v270_v32, 0.0 }
 0x153   :  { %v264_v43 = vadd.f32 %v263_v36, %v262_v31  ;;  %v272_v44 = vrot.slane %v271_v40, 4  ;;  %v3795_v36 = vor.u32 %v5210_v34, %v3794_v33 }
 0x155   :  { %v265_v52 = vrot.slane %v264_v43, 2  ;;  %v273_v53 = vadd.f32 %v272_v44, %v271_v40  ;;  %v3804_v44 = vld [vmem:[#allocation11 + $0x18] sm:$0xf0]  ;;  %503 = vmatpush.bf16.msra.mxu2 %v3795_v36 }
 0x157   :  { %v266_v59 = vadd.f32 %v265_v52, %v264_v43  ;;  %v274_v60 = vrot.slane %v273_v53, 2  ;;  %v259_v61 = vpop.f32.mrf.mxu1  ;;  %v5209_v43 = vld [vmem:[#allocation11 + $0xc] sm:$0xf] }
 0x158   :  { %v3807_v45 = vor.u32 %v5209_v43, %v3804_v44 }
 0x159   :  { %v267_v5 = vrot.slane %v266_v59, 1  ;;  %v275_v6 = vadd.f32 %v274_v60, %v273_v53  ;;  %v210_v53 = vld [vmem:[#allocation13 + $0x2] ss:$0 sm:$0xff] }
 0x15a   :  { %542 = vmatpush.bf16.msrb.mxu1 %v3807_v45 }
 0x15b   :  { %v268_v12 = vadd.f32 %v267_v5, %v266_v59  ;;  %v276_v13 = vrot.slane %v275_v6, 1 }
 0x15d   :  { %v269_v21 = vmul.f32 %v268_v12, %v5884_v26  ;;  %v277_v22 = vadd.f32 %v276_v13, %v275_v6 }
 0x15f   :  { %v278_v31 = vmul.f32 %v277_v22, %v5884_v26  ;;  %v279_v32 = vmul.f32 %v269_v21, %v269_v21 }
 0x161   :  { %v280_v40 = vsub.f32 %v278_v31, %v279_v32 }
 0x163   :  { %v281_v46 = vmax.f32 %v280_v40, 0.0 }
 0x165   :  { %v282_v47 = vadd.f32 1e-05, %v281_v46 }
 0x167   :  { %5578 = vrsqrt.f32 %v282_v47  ;;  %vm289_vm9 = vweird.f32 %v282_v47 }
 0x16d   :  { %v5579_v48 = vpop.eup %5578 }
 0x16e   :  { %v284_v49 = vmul.f32 %v5579_v48, %v282_v47  ;;  %vm290_vm8 = vweird.f32 %v5579_v48 }
 0x16f   :  { %vm291_vm10 = vmor %vm289_vm9, %vm290_vm8  ;;  %vm681_vm8 = vcmask 1042434  }
 0x170   :  { %v285_v50 = vmul.f32 %v5579_v48, %v284_v49 }
 0x172   :  { %v286_v51 = vmul.f32 0.5, %v285_v50 }
 0x174   :  { %v287_v52 = vsub.f32 1.5, %v286_v51 }
 0x176   :  { %v288_v54 = vmul.f32 %v5579_v48, %v287_v52 }
 0x178   :  { %v292_v55 = vsel %vm291_vm10, %v5579_v48, %v288_v54  ;;  %vm683_vm10 = vcmask 1041408  }
 0x179   :  { %v293_v56 = vmul.f32 %v292_v55, %v210_v53 }
 0x17b   :  { %v294_v58 = vmul.f32 %v293_v56, %v269_v21  ;;  %v296_v60 = vmul.f32 %v293_v56, %v5888_v27 }
 0x17d   :  { %v295_v59 = vsub.f32 %v211_v57, %v294_v58 }
 0x17f   :  { %v297_v61 = vadd.f32 %v296_v60, %v295_v59 }
 0x181   :  { %v298_v62 = vmax.f32 %v297_v61, 0.0 }
 0x183   :  { %v299_v63 = vpack.c.bf16 %v298_v62, %v298_v62 }
 0x185   :  { %504 = vmatmul.bf16.vlgmr.msra.gmra.mxu2 %v299_v63  ;;  %517 = vmatmul.bf16.vlgmr.msra.gmra.mxu3 %v299_v63 }
 0x186   :  { %530 = vmatmul.bf16.vlgmr.msrb.gmra.mxu0 %v299_v63  ;;  %543 = vmatmul.bf16.vlgmr.msrb.gmra.mxu1 %v299_v63 }
 0x203   :  { %v5904_v27 = vpop.f32.mrf.mxu0  ;;  %v5906_v0 = vpop.f32.mrf.mxu1 }
 0x204   :  { %v562_v1 = vsel %vm261_vm7, %v5904_v27, 0.0  ;;  %v582_v2 = vmul.f32 %v5904_v27, %v5904_v27  ;;  %v569_v3 = vsel %vm261_vm7, %v5906_v0, 0.0  ;;  %v583_v4 = vmul.f32 %v5906_v0, %v5906_v0 }
 0x205   :  { %v563_v5 = vrot.slane %v562_v1, 4  ;;  %v570_v6 = vrot.slane %v569_v3, 4 }
 0x206   :  { %v598_v7 = vsel %vm261_vm7, %v582_v2, 0.0  ;;  %v605_v8 = vsel %vm261_vm7, %v583_v4, 0.0 }
 0x207   :  { %v564_v9 = vadd.f32 %v563_v5, %v562_v1  ;;  %v599_v10 = vrot.slane %v598_v7, 4  ;;  %v571_v11 = vadd.f32 %v570_v6, %v569_v3  ;;  %v606_v12 = vrot.slane %v605_v8, 4 }
 0x208   :  { %v5918_v13 = vpop.f32.mrf.mxu2  ;;  %v5920_v14 = vpop.f32.mrf.mxu3 }
 0x209   :  { %v565_v15 = vrot.slane %v564_v9, 2  ;;  %v600_v16 = vadd.f32 %v599_v10, %v598_v7  ;;  %v572_v17 = vrot.slane %v571_v11, 2  ;;  %v607_v18 = vadd.f32 %v606_v12, %v605_v8 }
 0x20a   :  { %v548_v19 = vsel %vm261_vm7, %v5918_v13, 0.0  ;;  %v580_v20 = vmul.f32 %v5918_v13, %v5918_v13  ;;  %v555_v21 = vsel %vm261_vm7, %v5920_v14, 0.0  ;;  %v581_v22 = vmul.f32 %v5920_v14, %v5920_v14 }
 0x20b   :  { %v566_v23 = vadd.f32 %v565_v15, %v564_v9  ;;  %v601_v24 = vrot.slane %v600_v16, 2  ;;  %v573_v25 = vadd.f32 %v572_v17, %v571_v11  ;;  %v608_v28 = vrot.slane %v607_v18, 2  ;;  %v533_v29 = vpop.f32.mrf.mxu0  ;;  %v546_v30 = vpop.f32.mrf.mxu1 }
 0x20c   :  { %v549_v31 = vrot.slane %v548_v19, 4  ;;  %v584_v32 = vsel %vm261_vm7, %v580_v20, 0.0  ;;  %v556_v33 = vrot.slane %v555_v21, 4  ;;  %v591_v34 = vsel %vm261_vm7, %v581_v22, 0.0 }
 0x20d   :  { %v567_v35 = vrot.slane %v566_v23, 1  ;;  %v602_v36 = vadd.f32 %v601_v24, %v600_v16  ;;  %v574_v37 = vrot.slane %v573_v25, 1  ;;  %v609_v38 = vadd.f32 %v608_v28, %v607_v18 }
 0x20e   :  { %v550_v39 = vadd.f32 %v549_v31, %v548_v19  ;;  %v585_v40 = vrot.slane %v584_v32, 4  ;;  %v557_v41 = vadd.f32 %v556_v33, %v555_v21  ;;  %v592_v42 = vrot.slane %v591_v34, 4 }
 0x20f   :  { %v568_v43 = vadd.f32 %v567_v35, %v566_v23  ;;  %v603_v44 = vrot.slane %v602_v36, 1  ;;  %v575_v45 = vadd.f32 %v574_v37, %v573_v25  ;;  %v610_v46 = vrot.slane %v609_v38, 1 }
 0x210   :  { %v551_v47 = vrot.slane %v550_v39, 2  ;;  %v586_v48 = vadd.f32 %v585_v40, %v584_v32  ;;  %v558_v49 = vrot.slane %v557_v41, 2  ;;  %v593_v50 = vadd.f32 %v592_v42, %v591_v34  ;;  %v507_v51 = vpop.f32.mrf.mxu2  ;;  %v520_v52 = vpop.f32.mrf.mxu3 }
 0x211   :  { %v5933_v53 = vmul.f32 %v568_v43, %v5884_v26  ;;  %v604_v54 = vadd.f32 %v603_v44, %v602_v36  ;;  %v5936_v55 = vmul.f32 %v575_v45, %v5884_v26  ;;  %v611_v56 = vadd.f32 %v610_v46, %v609_v38 }
 0x212   :  { %v552_v57 = vadd.f32 %v551_v47, %v550_v39  ;;  %v587_v58 = vrot.slane %v586_v48, 2  ;;  %v559_v59 = vadd.f32 %v558_v49, %v557_v41  ;;  %v594_v60 = vrot.slane %v593_v50, 2 }
 0x213   :  { %v614_v61 = vmul.f32 %v604_v54, %v5884_v26  ;;  %v618_v62 = vmul.f32 %v5933_v53, %v5933_v53  ;;  %v615_v63 = vmul.f32 %v611_v56, %v5884_v26  ;;  %v619_v1 = vmul.f32 %v5936_v55, %v5936_v55 }
 0x214   :  { %v553_v2 = vrot.slane %v552_v57, 1  ;;  %v588_v3 = vadd.f32 %v587_v58, %v586_v48  ;;  %v560_v4 = vrot.slane %v559_v59, 1  ;;  %v595_v5 = vadd.f32 %v594_v60, %v593_v50 }
 0x215   :  { %v622_v6 = vsub.f32 %v614_v61, %v618_v62  ;;  %v623_v7 = vsub.f32 %v615_v63, %v619_v1 }
 0x216   :  { %v554_v8 = vadd.f32 %v553_v2, %v552_v57  ;;  %v589_v9 = vrot.slane %v588_v3, 1  ;;  %v561_v10 = vadd.f32 %v560_v4, %v559_v59  ;;  %v596_v11 = vrot.slane %v595_v5, 1 }
 0x217   :  { %v626_v12 = vmax.f32 %v622_v6, 0.0  ;;  %v627_v15 = vmax.f32 %v623_v7, 0.0 }
 0x218   :  { %v5945_v16 = vmul.f32 %v554_v8, %v5884_v26  ;;  %v590_v17 = vadd.f32 %v589_v9, %v588_v3  ;;  %v5948_v18 = vmul.f32 %v561_v10, %v5884_v26  ;;  %v597_v19 = vadd.f32 %v596_v11, %v595_v5  ;;  %v301_v3 = vld [vmem:[#allocation13 + $0x4] ss:$8 sm:$0xf] }
 0x219   :  { %v630_v20 = vadd.f32 1e-05, %v626_v12  ;;  %v631_v21 = vadd.f32 1e-05, %v627_v15 }
 0x21a   :  { %v612_v22 = vmul.f32 %v590_v17, %v5884_v26  ;;  %v616_v23 = vmul.f32 %v5945_v16, %v5945_v16  ;;  %v613_v24 = vmul.f32 %v597_v19, %v5884_v26  ;;  %v617_v25 = vmul.f32 %v5948_v18, %v5948_v18 }
 0x21b   :  { %5580 = vrsqrt.f32 %v630_v20  ;;  %vm658_vm13 = vweird.f32 %v630_v20  ;;  %vm668_vm15 = vweird.f32 %v631_v21 }
 0x21c   :  { %5582 = vrsqrt.f32 %v631_v21  ;;  %v620_v28 = vsub.f32 %v612_v22, %v616_v23  ;;  %v621_v29 = vsub.f32 %v613_v24, %v617_v25  ;;  %v303_v24 = vld [vmem:[#allocation13 + $0x5] ss:$8 sm:$0xf] }
 0x21e   :  { %v624_v30 = vmax.f32 %v620_v28, 0.0  ;;  %v625_v31 = vmax.f32 %v621_v29, 0.0 }
 0x220   :  { %v628_v32 = vadd.f32 1e-05, %v624_v30  ;;  %v629_v33 = vadd.f32 1e-05, %v625_v31 }
 0x221   :  { %v5581_v34 = vpop.eup %5580 }
 0x222   :  { %v5583_v35 = vpop.eup %5582  ;;  %v653_v36 = vmul.f32 %v5581_v34, %v630_v20  ;;  %5584 = vrsqrt.f32 %v628_v32  ;;  %vm659_vm11 = vweird.f32 %v5581_v34  ;;  %vm648_vm3 = vweird.f32 %v629_v33 }
 0x223   :  { %v663_v37 = vmul.f32 %v5583_v35, %v631_v21  ;;  %5586 = vrsqrt.f32 %v629_v33  ;;  %vm669_vm12 = vweird.f32 %v5583_v35  ;;  %vm660_vm14 = vmor %vm658_vm13, %vm659_vm11  ;;  %vm638_vm5 = vweird.f32 %v628_v32 }
 0x224   :  { %v654_v38 = vmul.f32 %v5581_v34, %v653_v36  ;;  %vm670_vm0 = vmor %vm668_vm15, %vm669_vm12 }
 0x225   :  { %v664_v39 = vmul.f32 %v5583_v35, %v663_v37 }
 0x226   :  { %v655_v40 = vmul.f32 0.5, %v654_v38 }
 0x227   :  { %v665_v41 = vmul.f32 0.5, %v664_v39 }
 0x228   :  { %v5585_v42 = vpop.eup %5584  ;;  %v656_v43 = vsub.f32 1.5, %v655_v40 }
 0x229   :  { %v5587_v44 = vpop.eup %5586  ;;  %v666_v45 = vsub.f32 1.5, %v665_v41  ;;  %v633_v46 = vmul.f32 %v5585_v42, %v628_v32  ;;  %vm639_vm2 = vweird.f32 %v5585_v42 }
 0x22a   :  { %v643_v47 = vmul.f32 %v5587_v44, %v629_v33  ;;  %v657_v49 = vmul.f32 %v5581_v34, %v656_v43  ;;  %vm649_vm1 = vweird.f32 %v5587_v44  ;;  %vm640_vm9 = vmor %vm638_vm5, %vm639_vm2 }
 0x22b   :  { %v634_v48 = vmul.f32 %v5585_v42, %v633_v46  ;;  %v667_v50 = vmul.f32 %v5583_v35, %v666_v45  ;;  %vm650_vm4 = vmor %vm648_vm3, %vm649_vm1 }
 0x22c   :  { %v644_v51 = vmul.f32 %v5587_v44, %v643_v47  ;;  %v661_v58 = vsel %vm660_vm14, %v5581_v34, %v657_v49 }
 0x22d   :  { %v635_v52 = vmul.f32 0.5, %v634_v48  ;;  %v671_v59 = vsel %vm670_vm0, %v5583_v35, %v667_v50  ;;  %v677_v62 = vrot.slane %v661_v58, 6 }
 0x22e   :  { %v645_v54 = vmul.f32 0.5, %v644_v51  ;;  %v678_v63 = vrot.slane %v671_v59, 5 }
 0x22f   :  { %v636_v56 = vsub.f32 1.5, %v635_v52 }
 0x230   :  { %v646_v57 = vsub.f32 1.5, %v645_v54  ;;  %v682_v6 = vsel %vm681_vm8, %v677_v62, %v678_v63 }
 0x231   :  { %v637_v60 = vmul.f32 %v5585_v42, %v636_v56 }
 0x232   :  { %v647_v61 = vmul.f32 %v5587_v44, %v646_v57 }
 0x233   :  { %v641_v4 = vsel %vm640_vm9, %v5585_v42, %v637_v60 }
 0x234   :  { %v651_v1 = vsel %vm650_vm4, %v5587_v44, %v647_v61 }
 0x235   :  { %v676_v2 = vrot.slane %v651_v1, 7 }
 0x237   :  { %v680_v5 = vsel %vm679_vm6, %v641_v4, %v676_v2 }
 0x238   :  { %v684_v7 = vsel %vm683_vm10, %v680_v5, %v682_v6 }
 0x239   :  { %v686_v8 = vmul.f32 %v684_v7, %v301_v3 }
 0x23b   :  { %v688_v9 = vperm.slane %v686_v8, 0  ;;  %v689_v10 = vperm.slane %v686_v8, 1  ;;  %v690_v11 = vperm.slane %v686_v8, 2  ;;  %v691_v12 = vperm.slane %v686_v8, 3 }
 0x23d   :  { %v697_v15 = vmul.f32 %v689_v10, %v5948_v18  ;;  %v698_v17 = vmul.f32 %v690_v11, %v5933_v53  ;;  %v699_v19 = vmul.f32 %v691_v12, %v5936_v55  ;;  %v696_v20 = vmul.f32 %v688_v9, %v5945_v16 }
 0x23e   :  { %v712_v31 = vmul.f32 %v688_v9, %v5918_v13  ;;  %v713_v18 = vmul.f32 %v689_v10, %v5920_v14  ;;  %v714_v53 = vmul.f32 %v690_v11, %v5904_v27  ;;  %v715_v55 = vmul.f32 %v691_v12, %v5906_v0 }
 0x23f   :  { %v704_v21 = vrot.slane %v697_v15, 7  ;;  %v705_v22 = vrot.slane %v698_v17, 6  ;;  %v706_v23 = vrot.slane %v699_v19, 5 }
 0x241   :  { %v707_v25 = vsel %vm679_vm6, %v696_v20, %v704_v21  ;;  %v708_v28 = vsel %vm681_vm8, %v705_v22, %v706_v23 }
 0x242   :  { %v709_v29 = vsel %vm683_vm10, %v707_v25, %v708_v28 }
 0x243   :  { %v711_v30 = vsub.f32 %v303_v24, %v709_v29 }
 0x245   :  { %v717_v16 = vperm.slane %v711_v30, 0  ;;  %v718_v32 = vperm.slane %v711_v30, 1  ;;  %v719_v33 = vperm.slane %v711_v30, 2  ;;  %v720_v34 = vperm.slane %v711_v30, 3 }
 0x247   :  { %v725_v35 = vadd.f32 %v717_v16, %v712_v31  ;;  %v726_v36 = vadd.f32 %v718_v32, %v713_v18  ;;  %v727_v37 = vadd.f32 %v719_v33, %v714_v53  ;;  %v728_v38 = vadd.f32 %v720_v34, %v715_v55 }
 0x249   :  { %v729_v39 = vmax.f32 %v725_v35, 0.0  ;;  %v730_v40 = vmax.f32 %v726_v36, 0.0  ;;  %v731_v41 = vmax.f32 %v727_v37, 0.0  ;;  %v732_v42 = vmax.f32 %v728_v38, 0.0 }
 0x24b   :  { %v5970_v43 = vpack.c.bf16 %v729_v39, %v729_v39  ;;  %v5972_v13 = vpack.c.bf16 %v730_v40, %v730_v40  ;;  %v5974_v14 = vpack.c.bf16 %v731_v41, %v731_v41  ;;  %v5976_v27 = vpack.c.bf16 %v732_v42, %v732_v42 }
 0x24c   :  { %5804 = dma.done.wait [#allocation4], 32768 }
 0x24d   :  { %5805 = vsyncadd [#allocation4], 4294934528  ;;  %v4146_v0 = vld [vmem:[#allocation2 + $0x1c0] sm:$0xf] }
 0x24e   :  { %v5300_v44 = vld [vmem:[#allocation2 + $0x1dc] sm:$0xf0] }
 0x24f   :  { %v4402_v45 = vld [vmem:[#allocation2 + $0x3c0] sm:$0xf]  ;;  %v4147_v46 = vor.u32 %v5300_v44, %v4146_v0 }
 0x250   :  { %v5364_v47 = vld [vmem:[#allocation2 + $0x3dc] sm:$0xf0] }
 0x251   :  { %v4658_v48 = vld [vmem:[#allocation2 + $0x5c0] sm:$0xf]  ;;  %v4403_v50 = vor.u32 %v5364_v47, %v4402_v45  ;;  %2285 = vmatpush.bf16.msrb.mxu2 %v4147_v46 }
 0x252   :  { %v5428_v49 = vld [vmem:[#allocation2 + $0x5dc] sm:$0xf0] }
 0x253   :  { %v4659_v51 = vor.u32 %v5428_v49, %v4658_v48  ;;  %v4914_v52 = vld [vmem:[#allocation2 + $0x7c0] sm:$0xf]  ;;  %2298 = vmatpush.bf16.msrb.mxu3 %v4403_v50 }
 0x254   :  { %v5492_v54 = vld [vmem:[#allocation2 + $0x7dc] sm:$0xf0] }
 0x255   :  { %v4114_v56 = vld [vmem:[#allocation2 + $0x180] sm:$0xf]  ;;  %v4915_v57 = vor.u32 %v5492_v54, %v4914_v52  ;;  %2311 = vmatpush.bf16.msra.mxu0 %v4659_v51 }
 0x256   :  { %v5292_v58 = vld [vmem:[#allocation2 + $0x19c] sm:$0xf0] }
 0x257   :  { %v4370_v59 = vld [vmem:[#allocation2 + $0x380] sm:$0xf]  ;;  %v4115_v61 = vor.u32 %v5292_v58, %v4114_v56  ;;  %2324 = vmatpush.bf16.msra.mxu1 %v4915_v57 }
 0x258   :  { %v5356_v60 = vld [vmem:[#allocation2 + $0x39c] sm:$0xf0] }
 0x259   :  { %v4371_v62 = vor.u32 %v5356_v60, %v4370_v59  ;;  %v4626_v63 = vld [vmem:[#allocation2 + $0x580] sm:$0xf]  ;;  %2286 = vmatpush.bf16.msrb.mxu2 %v4115_v61 }
 0x25a   :  { %v5420_v1 = vld [vmem:[#allocation2 + $0x59c] sm:$0xf0] }
 0x25b   :  { %v4882_v2 = vld [vmem:[#allocation2 + $0x780] sm:$0xf]  ;;  %v4627_v3 = vor.u32 %v5420_v1, %v4626_v63  ;;  %2299 = vmatpush.bf16.msrb.mxu3 %v4371_v62 }
 0x25c   :  { %v5484_v4 = vld [vmem:[#allocation2 + $0x79c] sm:$0xf0] }
 0x25d   :  { %v4082_v5 = vld [vmem:[#allocation2 + $0x140] sm:$0xf]  ;;  %v4883_v7 = vor.u32 %v5484_v4, %v4882_v2  ;;  %2312 = vmatpush.bf16.msra.mxu0 %v4627_v3 }
 0x25e   :  { %v5284_v6 = vld [vmem:[#allocation2 + $0x15c] sm:$0xf0] }
 0x25f   :  { %v4338_v8 = vld [vmem:[#allocation2 + $0x340] sm:$0xf]  ;;  %v4083_v11 = vor.u32 %v5284_v6, %v4082_v5  ;;  %2325 = vmatpush.bf16.msra.mxu1 %v4883_v7 }
 0x260   :  { %v5348_v9 = vld [vmem:[#allocation2 + $0x35c] sm:$0xf0] }
 0x261   :  { %v4594_v10 = vld [vmem:[#allocation2 + $0x540] sm:$0xf]  ;;  %v4339_v19 = vor.u32 %v5348_v9, %v4338_v8  ;;  %2287 = vmatpush.bf16.msrb.mxu2 %v4083_v11 }
 0x262   :  { %v5412_v12 = vld [vmem:[#allocation2 + $0x55c] sm:$0xf0] }
 0x263   :  { %v4850_v15 = vld [vmem:[#allocation2 + $0x740] sm:$0xf]  ;;  %v4595_v20 = vor.u32 %v5412_v12, %v4594_v10  ;;  %2300 = vmatpush.bf16.msrb.mxu3 %v4339_v19  ;;  %v5360_v19 = vld [vmem:[#allocation2 + $0x3c4] sm:$0xf] }
 0x264   :  { %v5476_v17 = vld [vmem:[#allocation2 + $0x75c] sm:$0xf0] }
 0x265   :  { %v4050_v21 = vld [vmem:[#allocation2 + $0x100] sm:$0xf]  ;;  %v4851_v24 = vor.u32 %v5476_v17, %v4850_v15  ;;  %2313 = vmatpush.bf16.msra.mxu0 %v4595_v20  ;;  %v5296_v15 = vld [vmem:[#allocation2 + $0x1c4] sm:$0xf] }
 0x266   :  { %v5276_v22 = vld [vmem:[#allocation2 + $0x11c] sm:$0xf0]  ;;  %v4148_v17 = vld [vmem:[#allocation2 + $0x1e0] sm:$0xf0] }
 0x267   :  { %v4306_v23 = vld [vmem:[#allocation2 + $0x300] sm:$0xf]  ;;  %v4051_v18 = vor.u32 %v5276_v22, %v4050_v21  ;;  %2326 = vmatpush.bf16.msra.mxu1 %v4851_v24  ;;  %v4404_v20 = vld [vmem:[#allocation2 + $0x3e0] sm:$0xf0] }
 0x268   :  { %v5340_v25 = vld [vmem:[#allocation2 + $0x31c] sm:$0xf0]  ;;  %v5424_v21 = vld [vmem:[#allocation2 + $0x5c4] sm:$0xf] }
 0x269   :  { %v4562_v28 = vld [vmem:[#allocation2 + $0x500] sm:$0xf]  ;;  %v4307_v53 = vor.u32 %v5340_v25, %v4306_v23  ;;  %2288 = vmatpush.bf16.msrb.mxu2 %v4051_v18  ;;  %v4660_v23 = vld [vmem:[#allocation2 + $0x5e0] sm:$0xf0]  ;;  %v4151_v18 = vor.u32 %v5296_v15, %v4148_v17 }
 0x26a   :  { %v5404_v29 = vld [vmem:[#allocation2 + $0x51c] sm:$0xf0]  ;;  %v4532_v15 = vld [vmem:[#allocation2 + $0x4e0] sm:$0xf0] }
 0x26b   :  { %v4818_v30 = vld [vmem:[#allocation2 + $0x700] sm:$0xf]  ;;  %v4563_v55 = vor.u32 %v5404_v29, %v4562_v28  ;;  %2301 = vmatpush.bf16.msrb.mxu3 %v4307_v53  ;;  %v4407_v53 = vor.u32 %v5360_v19, %v4404_v20  ;;  %v5456_v17 = vld [vmem:[#allocation2 + $0x6c4] sm:$0xf] }
 0x26c   :  { %v5468_v31 = vld [vmem:[#allocation2 + $0x71c] sm:$0xf0]  ;;  %v4788_v19 = vld [vmem:[#allocation2 + $0x6e0] sm:$0xf0] }
 0x26d   :  { %v4018_v16 = vld [vmem:[#allocation2 + $0xc0] sm:$0xf]  ;;  %v4819_v34 = vor.u32 %v5468_v31, %v4818_v30  ;;  %2314 = vmatpush.bf16.msra.mxu0 %v4563_v55  ;;  %v5488_v30 = vld [vmem:[#allocation2 + $0x7c4] sm:$0xf] }
 0x26e   :  { %v5268_v32 = vld [vmem:[#allocation2 + $0xdc] sm:$0xf0]  ;;  %v4916_v31 = vld [vmem:[#allocation2 + $0x7e0] sm:$0xf0] }
 0x26f   :  { %v4274_v33 = vld [vmem:[#allocation2 + $0x2c0] sm:$0xf]  ;;  %v4019_v40 = vor.u32 %v5268_v32, %v4018_v16  ;;  %2327 = vmatpush.bf16.msra.mxu1 %v4819_v34  ;;  %v5288_v55 = vld [vmem:[#allocation2 + $0x184] sm:$0xf]  ;;  %v4663_v16 = vor.u32 %v5424_v21, %v4660_v23 }
 0x270   :  { %v5332_v35 = vld [vmem:[#allocation2 + $0x2dc] sm:$0xf0]  ;;  %v5352_v34 = vld [vmem:[#allocation2 + $0x384] sm:$0xf] }
 0x271   :  { %v4530_v36 = vld [vmem:[#allocation2 + $0x4c0] sm:$0xf]  ;;  %v4275_v41 = vor.u32 %v5332_v35, %v4274_v33  ;;  %2289 = vmatpush.bf16.msrb.mxu2 %v4019_v40  ;;  %v4116_v33 = vld [vmem:[#allocation2 + $0x1a0] sm:$0xf0] }
 0x272   :  { %v5396_v37 = vld [vmem:[#allocation2 + $0x4dc] sm:$0xf0]  ;;  %v4372_v35 = vld [vmem:[#allocation2 + $0x3a0] sm:$0xf0] }
 0x273   :  { %v4786_v38 = vld [vmem:[#allocation2 + $0x6c0] sm:$0xf]  ;;  %v4531_v42 = vor.u32 %v5396_v37, %v4530_v36  ;;  %2302 = vmatpush.bf16.msrb.mxu3 %v4275_v41  ;;  %v4919_v36 = vor.u32 %v5488_v30, %v4916_v31  ;;  %v5416_v37 = vld [vmem:[#allocation2 + $0x584] sm:$0xf]  ;;  %v4119_v41 = vor.u32 %v5288_v55, %v4116_v33 }
 0x274   :  { %v5460_v39 = vld [vmem:[#allocation2 + $0x6dc] sm:$0xf0]  ;;  %v4884_v40 = vld [vmem:[#allocation2 + $0x7a0] sm:$0xf0] }
 0x275   :  { %v3986_v0 = vld [vmem:[#allocation2 + $0x80] sm:$0xf]  ;;  %v4787_v46 = vor.u32 %v5460_v39, %v4786_v38  ;;  %2315 = vmatpush.bf16.msra.mxu0 %v4531_v42  ;;  %v4628_v38 = vld [vmem:[#allocation2 + $0x5a0] sm:$0xf0]  ;;  %v4375_v42 = vor.u32 %v5352_v34, %v4372_v35 }
 0x276   :  { %v5260_v44 = vld [vmem:[#allocation2 + $0x9c] sm:$0xf0]  ;;  %v5480_v39 = vld [vmem:[#allocation2 + $0x784] sm:$0xf] }
 0x277   :  { %v4242_v45 = vld [vmem:[#allocation2 + $0x280] sm:$0xf]  ;;  %v3987_v52 = vor.u32 %v5260_v44, %v3986_v0  ;;  %2328 = vmatpush.bf16.msra.mxu1 %v4787_v46  ;;  %v5280_v0 = vld [vmem:[#allocation2 + $0x144] sm:$0xf]  ;;  %v4631_v44 = vor.u32 %v5416_v37, %v4628_v38 }
 0x278   :  { %v5324_v47 = vld [vmem:[#allocation2 + $0x29c] sm:$0xf0]  ;;  %v5344_v46 = vld [vmem:[#allocation2 + $0x344] sm:$0xf] }
 0x279   :  { %v4498_v48 = vld [vmem:[#allocation2 + $0x480] sm:$0xf]  ;;  %v4243_v54 = vor.u32 %v5324_v47, %v4242_v45  ;;  %2290 = vmatpush.bf16.msrb.mxu2 %v3987_v52  ;;  %v4084_v45 = vld [vmem:[#allocation2 + $0x160] sm:$0xf0] }
 0x27a   :  { %v5388_v49 = vld [vmem:[#allocation2 + $0x49c] sm:$0xf0]  ;;  %v4340_v47 = vld [vmem:[#allocation2 + $0x360] sm:$0xf0] }
 0x27b   :  { %v4754_v50 = vld [vmem:[#allocation2 + $0x680] sm:$0xf]  ;;  %v4499_v56 = vor.u32 %v5388_v49, %v4498_v48  ;;  %2303 = vmatpush.bf16.msrb.mxu3 %v4243_v54  ;;  %v4887_v48 = vor.u32 %v5480_v39, %v4884_v40  ;;  %v5408_v49 = vld [vmem:[#allocation2 + $0x544] sm:$0xf]  ;;  %v4087_v54 = vor.u32 %v5280_v0, %v4084_v45 }
 0x27c   :  { %v5452_v51 = vld [vmem:[#allocation2 + $0x69c] sm:$0xf0]  ;;  %v4852_v52 = vld [vmem:[#allocation2 + $0x760] sm:$0xf0] }
 0x27d   :  { %v3954_v57 = vld [vmem:[#allocation2 + $0x40] sm:$0xf]  ;;  %v4755_v60 = vor.u32 %v5452_v51, %v4754_v50  ;;  %2316 = vmatpush.bf16.msra.mxu0 %v4499_v56  ;;  %v4596_v50 = vld [vmem:[#allocation2 + $0x560] sm:$0xf0]  ;;  %v4343_v56 = vor.u32 %v5344_v46, %v4340_v47 }
 0x27e   :  { %v5252_v58 = vld [vmem:[#allocation2 + $0x5c] sm:$0xf0]  ;;  %v5472_v51 = vld [vmem:[#allocation2 + $0x744] sm:$0xf] }
 0x27f   :  { %v4210_v59 = vld [vmem:[#allocation2 + $0x240] sm:$0xf]  ;;  %v3955_v3 = vor.u32 %v5252_v58, %v3954_v57  ;;  %2329 = vmatpush.bf16.msra.mxu1 %v4755_v60  ;;  %v5272_v57 = vld [vmem:[#allocation2 + $0x104] sm:$0xf]  ;;  %v4599_v58 = vor.u32 %v5408_v49, %v4596_v50 }
 0x280   :  { %v5316_v61 = vld [vmem:[#allocation2 + $0x25c] sm:$0xf0]  ;;  %v5336_v60 = vld [vmem:[#allocation2 + $0x304] sm:$0xf] }
 0x281   :  { %v4466_v62 = vld [vmem:[#allocation2 + $0x440] sm:$0xf]  ;;  %v4211_v6 = vor.u32 %v5316_v61, %v4210_v59  ;;  %2291 = vmatpush.bf16.msrb.mxu2 %v3955_v3  ;;  %v4052_v59 = vld [vmem:[#allocation2 + $0x120] sm:$0xf0] }
 0x282   :  { %v5380_v63 = vld [vmem:[#allocation2 + $0x45c] sm:$0xf0]  ;;  %v4308_v61 = vld [vmem:[#allocation2 + $0x320] sm:$0xf0] }
 0x283   :  { %v4722_v1 = vld [vmem:[#allocation2 + $0x640] sm:$0xf]  ;;  %v4467_v7 = vor.u32 %v5380_v63, %v4466_v62  ;;  %2304 = vmatpush.bf16.msrb.mxu3 %v4211_v6  ;;  %v4855_v62 = vor.u32 %v5472_v51, %v4852_v52  ;;  %v5400_v63 = vld [vmem:[#allocation2 + $0x504] sm:$0xf]  ;;  %v4154_v52 = vld [vmem:[#allocation2 + $0x1c8] sm:$0xf] }
 0x284   :  { %v5444_v2 = vld [vmem:[#allocation2 + $0x65c] sm:$0xf0]  ;;  %v4820_v3 = vld [vmem:[#allocation2 + $0x720] sm:$0xf0] }
 0x285   :  { %v3922_v4 = vld [vmem:[#allocation2] sm:$0xf]  ;;  %v4723_v11 = vor.u32 %v5444_v2, %v4722_v1  ;;  %2317 = vmatpush.bf16.msra.mxu0 %v4467_v7  ;;  %v4564_v1 = vld [vmem:[#allocation2 + $0x520] sm:$0xf0] }
 0x286   :  { %v5244_v5 = vld [vmem:[#allocation2 + $0x1c] sm:$0xf0]  ;;  %v5464_v2 = vld [vmem:[#allocation2 + $0x704] sm:$0xf]  ;;  %v4567_v7 = vor.u32 %v5400_v63, %v4564_v1 }
 0x287   :  { %v4178_v8 = vld [vmem:[#allocation2 + $0x200] sm:$0xf]  ;;  %v3923_v22 = vor.u32 %v5244_v5, %v3922_v4  ;;  %2330 = vmatpush.bf16.msra.mxu1 %v4723_v11  ;;  %v4055_v4 = vor.u32 %v5272_v57, %v4052_v59  ;;  %v4311_v5 = vor.u32 %v5336_v60, %v4308_v61  ;;  %v5264_v6 = vld [vmem:[#allocation2 + $0xc4] sm:$0xf]  ;;  %v4823_v11 = vor.u32 %v5464_v2, %v4820_v3  ;;  %v5365_v57 = vld [vmem:[#allocation2 + $0x3e4] sm:$0xf0] }
 0x288   :  { %v5308_v9 = vld [vmem:[#allocation2 + $0x21c] sm:$0xf0]  ;;  %v5384_v30 = vld [vmem:[#allocation2 + $0x484] sm:$0xf]  ;;  %v5429_v59 = vld [vmem:[#allocation2 + $0x5e4] sm:$0xf0] }
 0x289   :  { %v4434_v10 = vld [vmem:[#allocation2 + $0x400] sm:$0xf]  ;;  %v4179_v28 = vor.u32 %v5308_v9, %v4178_v8  ;;  %2292 = vmatpush.bf16.msrb.mxu2 %v3923_v22  ;;  %v4020_v8 = vld [vmem:[#allocation2 + $0xe0] sm:$0xf0]  ;;  %v4922_v3 = vld [vmem:[#allocation2 + $0x7c8] sm:$0xf] }
 0x28a   :  { %v5372_v12 = vld [vmem:[#allocation2 + $0x41c] sm:$0xf0]  ;;  %v5328_v9 = vld [vmem:[#allocation2 + $0x2c4] sm:$0xf]  ;;  %v4023_v20 = vor.u32 %v5264_v6, %v4020_v8  ;;  %v5293_v8 = vld [vmem:[#allocation2 + $0x1a4] sm:$0xf0] }
 0x28b   :  { %v4690_v24 = vld [vmem:[#allocation2 + $0x600] sm:$0xf]  ;;  %v4435_v29 = vor.u32 %v5372_v12, %v4434_v10  ;;  %2305 = vmatpush.bf16.msrb.mxu3 %v4179_v28  ;;  %v4276_v10 = vld [vmem:[#allocation2 + $0x2e0] sm:$0xf0] }
 0x28c   :  { %v5436_v25 = vld [vmem:[#allocation2 + $0x61c] sm:$0xf0]  ;;  %2293 = vmatmul.bf16.vlgmr.msrb.gmra.mxu2 %v5970_v43  ;;  %v5392_v12 = vld [vmem:[#allocation2 + $0x4c4] sm:$0xf]  ;;  %v4279_v21 = vor.u32 %v5328_v9, %v4276_v10  ;;  %v4378_v9 = vld [vmem:[#allocation2 + $0x388] sm:$0xf] }
 0x28d   :  { %v4691_v32 = vor.u32 %v5436_v25, %v4690_v24  ;;  %2318 = vmatpush.bf16.msra.mxu0 %v4435_v29  ;;  %2337 = vmatpush.bf16.msra.mxu2 %v4151_v18  ;;  %v5256_v22 = vld [vmem:[#allocation2 + $0x84] sm:$0xf]  ;;  %v4535_v23 = vor.u32 %v5392_v12, %v4532_v15  ;;  %v4791_v29 = vor.u32 %v5456_v17, %v4788_v19  ;;  %v4634_v12 = vld [vmem:[#allocation2 + $0x588] sm:$0xf] }
 0x28e   :  { %2306 = vmatmul.bf16.vlgmr.msrb.gmra.mxu3 %v5972_v13  ;;  %v3988_v24 = vld [vmem:[#allocation2 + $0xa0] sm:$0xf0]  ;;  %v5421_v15 = vld [vmem:[#allocation2 + $0x5a4] sm:$0xf0] }
 0x28f   :  { %2350 = vmatpush.bf16.msra.mxu3 %v4407_v53  ;;  %2331 = vmatpush.bf16.msra.mxu1 %v4691_v32  ;;  %v5320_v25 = vld [vmem:[#allocation2 + $0x284] sm:$0xf]  ;;  %v3991_v55 = vor.u32 %v5256_v22, %v3988_v24  ;;  %v4090_v24 = vld [vmem:[#allocation2 + $0x148] sm:$0xf] }
 0x290   :  { %2319 = vmatmul.bf16.vlgmr.msra.gmra.mxu0 %v5974_v14  ;;  %v4244_v28 = vld [vmem:[#allocation2 + $0x2a0] sm:$0xf0] }
 0x291   :  { %2363 = vmatpush.bf16.msrb.mxu0 %v4663_v16  ;;  %2338 = vmatpush.bf16.msra.mxu2 %v4119_v41  ;;  %v4500_v31 = vld [vmem:[#allocation2 + $0x4a0] sm:$0xf0]  ;;  %v4247_v16 = vor.u32 %v5320_v25, %v4244_v28  ;;  %v5285_v25 = vld [vmem:[#allocation2 + $0x164] sm:$0xf0] }
 0x292   :  { %2332 = vmatmul.bf16.vlgmr.msra.gmra.mxu1 %v5976_v27  ;;  %v5448_v18 = vld [vmem:[#allocation2 + $0x684] sm:$0xf]  ;;  %v4503_v33 = vor.u32 %v5384_v30, %v4500_v31  ;;  %v4346_v28 = vld [vmem:[#allocation2 + $0x348] sm:$0xf] }
 0x293   :  { %2376 = vmatpush.bf16.msrb.mxu1 %v4919_v36  ;;  %2351 = vmatpush.bf16.msra.mxu3 %v4375_v42  ;;  %v4756_v53 = vld [vmem:[#allocation2 + $0x6a0] sm:$0xf0]  ;;  %v4602_v30 = vld [vmem:[#allocation2 + $0x548] sm:$0xf] }
 0x294   :  { %v5248_v32 = vld [vmem:[#allocation2 + $0x44] sm:$0xf]  ;;  %v4759_v37 = vor.u32 %v5448_v18, %v4756_v53  ;;  %v5413_v31 = vld [vmem:[#allocation2 + $0x564] sm:$0xf0]  ;;  %v4091_v53 = vor.u32 %v5285_v25, %v4090_v24 }
 0x295   :  { %2364 = vmatpush.bf16.msrb.mxu0 %v4631_v44  ;;  %2339 = vmatpush.bf16.msra.mxu2 %v4087_v54  ;;  %v3956_v34 = vld [vmem:[#allocation2 + $0x60] sm:$0xf0]  ;;  %v5301_v54 = vld [vmem:[#allocation2 + $0x1e4] sm:$0xf0] }
 0x296   :  { %v5312_v35 = vld [vmem:[#allocation2 + $0x244] sm:$0xf]  ;;  %v3959_v42 = vor.u32 %v5248_v32, %v3956_v34  ;;  %v4155_v2 = vor.u32 %v5301_v54, %v4154_v52  ;;  %v4058_v34 = vld [vmem:[#allocation2 + $0x108] sm:$0xf] }
 0x297   :  { %2377 = vmatpush.bf16.msrb.mxu1 %v4887_v48  ;;  %2352 = vmatpush.bf16.msra.mxu3 %v4343_v56  ;;  %v4212_v36 = vld [vmem:[#allocation2 + $0x260] sm:$0xf0]  ;;  %v4410_v56 = vld [vmem:[#allocation2 + $0x3c8] sm:$0xf] }
 0x298   :  { %v5376_v38 = vld [vmem:[#allocation2 + $0x444] sm:$0xf]  ;;  %v4215_v0 = vor.u32 %v5312_v35, %v4212_v36  ;;  %v5277_v35 = vld [vmem:[#allocation2 + $0x124] sm:$0xf0] }
 0x299   :  { %2365 = vmatpush.bf16.msrb.mxu0 %v4599_v58  ;;  %2340 = vmatpush.bf16.msra.mxu2 %v4055_v4  ;;  %v4468_v39 = vld [vmem:[#allocation2 + $0x460] sm:$0xf0]  ;;  %v4666_v58 = vld [vmem:[#allocation2 + $0x5c8] sm:$0xf] }
 0x29a   :  { %v5440_v40 = vld [vmem:[#allocation2 + $0x644] sm:$0xf]  ;;  %v4471_v47 = vor.u32 %v5376_v38, %v4468_v39  ;;  %v5493_v4 = vld [vmem:[#allocation2 + $0x7e4] sm:$0xf0]  ;;  %v4667_v6 = vor.u32 %v5429_v59, %v4666_v58 }
 0x29b   :  { %2378 = vmatpush.bf16.msrb.mxu1 %v4855_v62  ;;  %2353 = vmatpush.bf16.msra.mxu3 %v4311_v5  ;;  %v4724_v41 = vld [vmem:[#allocation2 + $0x660] sm:$0xf0]  ;;  %v4411_v5 = vor.u32 %v5365_v57, %v4410_v56  ;;  %v4923_v17 = vor.u32 %v5493_v4, %v4922_v3  ;;  %v4314_v36 = vld [vmem:[#allocation2 + $0x308] sm:$0xf] }
 0x29c   :  { %v5240_v44 = vld [vmem:[#allocation2 + $0x4] sm:$0xf]  ;;  %v4727_v51 = vor.u32 %v5440_v40, %v4724_v41  ;;  %v4570_v38 = vld [vmem:[#allocation2 + $0x508] sm:$0xf]  ;;  %v4059_v41 = vor.u32 %v5277_v35, %v4058_v34  ;;  %v5425_v34 = vld [vmem:[#allocation2 + $0x5cc] sm:$0xf] }
 0x29d   :  { %2366 = vmatpush.bf16.msrb.mxu0 %v4567_v7  ;;  %2341 = vmatpush.bf16.msra.mxu2 %v4023_v20  ;;  %v3924_v45 = vld [vmem:[#allocation2 + $0x20] sm:$0xf0]  ;;  %v4122_v7 = vld [vmem:[#allocation2 + $0x188] sm:$0xf] }
 0x29e   :  { %v5304_v46 = vld [vmem:[#allocation2 + $0x204] sm:$0xf]  ;;  %v3927_v60 = vor.u32 %v5240_v44, %v3924_v45  ;;  %v4123_v19 = vor.u32 %v5293_v8, %v4122_v7  ;;  %v4890_v20 = vld [vmem:[#allocation2 + $0x788] sm:$0xf] }
 0x29f   :  { %2379 = vmatpush.bf16.msrb.mxu1 %v4823_v11  ;;  %2354 = vmatpush.bf16.msra.mxu3 %v4279_v21  ;;  %v4180_v48 = vld [vmem:[#allocation2 + $0x220] sm:$0xf0]  ;;  %v5357_v11 = vld [vmem:[#allocation2 + $0x3a4] sm:$0xf0] }
 0x2a0   :  { %v5368_v49 = vld [vmem:[#allocation2 + $0x404] sm:$0xf]  ;;  %v4183_v61 = vor.u32 %v5304_v46, %v4180_v48  ;;  %v5485_v21 = vld [vmem:[#allocation2 + $0x7a4] sm:$0xf0]  ;;  %v4379_v22 = vor.u32 %v5357_v11, %v4378_v9 }
 0x2a1   :  { %2367 = vmatpush.bf16.msrb.mxu0 %v4535_v23  ;;  %2342 = vmatpush.bf16.msra.mxu2 %v3991_v55  ;;  %v4436_v50 = vld [vmem:[#allocation2 + $0x420] sm:$0xf0]  ;;  %v4635_v23 = vor.u32 %v5421_v15, %v4634_v12  ;;  %v4891_v18 = vor.u32 %v5485_v21, %v4890_v20  ;;  %v4858_v55 = vld [vmem:[#allocation2 + $0x748] sm:$0xf] }
 0x2a2   :  { %v5432_v62 = vld [vmem:[#allocation2 + $0x604] sm:$0xf]  ;;  %v4439_v1 = vor.u32 %v5368_v49, %v4436_v50  ;;  %v5405_v39 = vld [vmem:[#allocation2 + $0x524] sm:$0xf0] }
 0x2a3   :  { %2380 = vmatpush.bf16.msrb.mxu1 %v4791_v29  ;;  %2355 = vmatpush.bf16.msra.mxu3 %v4247_v16  ;;  %v4692_v63 = vld [vmem:[#allocation2 + $0x620] sm:$0xf0]  ;;  %v5349_v29 = vld [vmem:[#allocation2 + $0x364] sm:$0xf0]  ;;  %v4571_v45 = vor.u32 %v5405_v39, %v4570_v38 }
 0x2a4   :  { %v4695_v10 = vor.u32 %v5432_v62, %v4692_v63  ;;  %v5477_v16 = vld [vmem:[#allocation2 + $0x764] sm:$0xf0]  ;;  %v4347_v32 = vor.u32 %v5349_v29, %v4346_v28 }
 0x2a5   :  { %2368 = vmatpush.bf16.msrb.mxu0 %v4503_v33  ;;  %2343 = vmatpush.bf16.msra.mxu2 %v3959_v42  ;;  %v4603_v33 = vor.u32 %v5413_v31, %v4602_v30  ;;  %v4859_v40 = vor.u32 %v5477_v16, %v4858_v55  ;;  %v4826_v42 = vld [vmem:[#allocation2 + $0x708] sm:$0xf]  ;;  %v4156_v55 = vld [vmem:[#allocation2 + $0x1e8] sm:$0xf0] }
 0x2a6   :  { %v4026_v46 = vld [vmem:[#allocation2 + $0xc8] sm:$0xf] }
 0x2a7   :  { %2381 = vmatpush.bf16.msrb.mxu1 %v4759_v37  ;;  %2356 = vmatpush.bf16.msra.mxu3 %v4215_v0  ;;  %v5341_v37 = vld [vmem:[#allocation2 + $0x324] sm:$0xf0] }
 0x2a8   :  { %v5469_v0 = vld [vmem:[#allocation2 + $0x724] sm:$0xf0]  ;;  %v4315_v44 = vor.u32 %v5341_v37, %v4314_v36  ;;  %v4668_v36 = vld [vmem:[#allocation2 + $0x5e8] sm:$0xf0] }
 0x2a9   :  { %2369 = vmatpush.bf16.msrb.mxu0 %v4471_v47  ;;  %2344 = vmatpush.bf16.msra.mxu2 %v3927_v60  ;;  %v5269_v47 = vld [vmem:[#allocation2 + $0xe4] sm:$0xf0]  ;;  %v4827_v52 = vor.u32 %v5469_v0, %v4826_v42  ;;  %v4924_v42 = vld [vmem:[#allocation2 + $0x7e8] sm:$0xf0] }
 0x2aa   :  { %v4282_v48 = vld [vmem:[#allocation2 + $0x2c8] sm:$0xf]  ;;  %v4027_v54 = vor.u32 %v5269_v47, %v4026_v46  ;;  %v4671_v46 = vor.u32 %v5425_v34, %v4668_v36 }
 0x2ab   :  { %2382 = vmatpush.bf16.msrb.mxu1 %v4727_v51  ;;  %2357 = vmatpush.bf16.msra.mxu3 %v4183_v61  ;;  %v5333_v49 = vld [vmem:[#allocation2 + $0x2e4] sm:$0xf0] }
 0x2ac   :  { %2345 = vmatmul.bf16.vlgmr.msra.gmra.mxu2 %v5970_v43  ;;  %v4538_v50 = vld [vmem:[#allocation2 + $0x4c8] sm:$0xf]  ;;  %v4283_v58 = vor.u32 %v5333_v49, %v4282_v48  ;;  %v4124_v48 = vld [vmem:[#allocation2 + $0x1a8] sm:$0xf0] }
 0x2ad   :  { %2370 = vmatpush.bf16.msrb.mxu0 %v4439_v1  ;;  %2389 = vmatpush.bf16.msrb.mxu2 %v4155_v2  ;;  %v5397_v51 = vld [vmem:[#allocation2 + $0x4e4] sm:$0xf0]  ;;  %v5353_v49 = vld [vmem:[#allocation2 + $0x38c] sm:$0xf] }
 0x2ae   :  { %2358 = vmatmul.bf16.vlgmr.msra.gmra.mxu3 %v5972_v13  ;;  %v4794_v56 = vld [vmem:[#allocation2 + $0x6c8] sm:$0xf]  ;;  %v4539_v59 = vor.u32 %v5397_v51, %v4538_v50  ;;  %v4380_v50 = vld [vmem:[#allocation2 + $0x3a8] sm:$0xf0] }
 0x2af   :  { %2402 = vmatpush.bf16.msrb.mxu3 %v4411_v5  ;;  %2383 = vmatpush.bf16.msrb.mxu1 %v4695_v10  ;;  %v5461_v57 = vld [vmem:[#allocation2 + $0x6e4] sm:$0xf0] }
 0x2b0   :  { %2371 = vmatmul.bf16.vlgmr.msrb.gmra.mxu0 %v5974_v14  ;;  %v3994_v60 = vld [vmem:[#allocation2 + $0x88] sm:$0xf]  ;;  %v4795_v3 = vor.u32 %v5461_v57, %v4794_v56  ;;  %v5481_v56 = vld [vmem:[#allocation2 + $0x78c] sm:$0xf] }
 0x2b1   :  { %2415 = vmatpush.bf16.msra.mxu0 %v4667_v6  ;;  %2390 = vmatpush.bf16.msrb.mxu2 %v4123_v19  ;;  %v5261_v61 = vld [vmem:[#allocation2 + $0xa4] sm:$0xf0]  ;;  %v4892_v57 = vld [vmem:[#allocation2 + $0x7a8] sm:$0xf0] }
 0x2b2   :  { %2384 = vmatmul.bf16.vlgmr.msrb.gmra.mxu1 %v5976_v27  ;;  %v4250_v62 = vld [vmem:[#allocation2 + $0x288] sm:$0xf]  ;;  %v3995_v4 = vor.u32 %v5261_v61, %v3994_v60  ;;  %v5281_v60 = vld [vmem:[#allocation2 + $0x14c] sm:$0xf] }
 0x2b3   :  { %2428 = vmatpush.bf16.msra.mxu1 %v4923_v17  ;;  %2403 = vmatpush.bf16.msrb.mxu3 %v4379_v22  ;;  %v5325_v63 = vld [vmem:[#allocation2 + $0x2a4] sm:$0xf0] }
 0x2b4   :  { %v4506_v1 = vld [vmem:[#allocation2 + $0x488] sm:$0xf]  ;;  %v4251_v7 = vor.u32 %v5325_v63, %v4250_v62  ;;  %v4092_v62 = vld [vmem:[#allocation2 + $0x168] sm:$0xf0] }
 0x2b5   :  { %2416 = vmatpush.bf16.msra.mxu0 %v4635_v23  ;;  %2391 = vmatpush.bf16.msrb.mxu2 %v4091_v53  ;;  %v5389_v2 = vld [vmem:[#allocation2 + $0x4a4] sm:$0xf0]  ;;  %v5297_v53 = vld [vmem:[#allocation2 + $0x1cc] sm:$0xf] }
 0x2b6   :  { %v4762_v5 = vld [vmem:[#allocation2 + $0x688] sm:$0xf]  ;;  %v4507_v8 = vor.u32 %v5389_v2, %v4506_v1  ;;  %v4159_v0 = vor.u32 %v5297_v53, %v4156_v55  ;;  %v5345_v63 = vld [vmem:[#allocation2 + $0x34c] sm:$0xf]  ;;  %v4895_v2 = vor.u32 %v5481_v56, %v4892_v57 }
 0x2b7   :  { %2429 = vmatpush.bf16.msra.mxu1 %v4891_v18  ;;  %2404 = vmatpush.bf16.msrb.mxu3 %v4347_v32  ;;  %v5453_v6 = vld [vmem:[#allocation2 + $0x6a4] sm:$0xf0]  ;;  %v5361_v32 = vld [vmem:[#allocation2 + $0x3cc] sm:$0xf] }
 0x2b8   :  { %v3962_v9 = vld [vmem:[#allocation2 + $0x48] sm:$0xf]  ;;  %v4763_v19 = vor.u32 %v5453_v6, %v4762_v5  ;;  %v4348_v1 = vld [vmem:[#allocation2 + $0x368] sm:$0xf0] }
 0x2b9   :  { %2417 = vmatpush.bf16.msra.mxu0 %v4603_v33  ;;  %2392 = vmatpush.bf16.msrb.mxu2 %v4059_v41  ;;  %v5253_v10 = vld [vmem:[#allocation2 + $0x64] sm:$0xf0]  ;;  %v4412_v33 = vld [vmem:[#allocation2 + $0x3e8] sm:$0xf0] }
 0x2ba   :  { %v4218_v11 = vld [vmem:[#allocation2 + $0x248] sm:$0xf]  ;;  %v3963_v21 = vor.u32 %v5253_v10, %v3962_v9  ;;  %v5489_v41 = vld [vmem:[#allocation2 + $0x7cc] sm:$0xf] }
 0x2bb   :  { %2430 = vmatpush.bf16.msra.mxu1 %v4859_v40  ;;  %2405 = vmatpush.bf16.msrb.mxu3 %v4315_v44  ;;  %v5317_v12 = vld [vmem:[#allocation2 + $0x264] sm:$0xf0]  ;;  %v4415_v44 = vor.u32 %v5361_v32, %v4412_v33  ;;  %v4927_v51 = vor.u32 %v5489_v41, %v4924_v42  ;;  %v5473_v5 = vld [vmem:[#allocation2 + $0x74c] sm:$0xf] }
 0x2bc   :  { %v4474_v15 = vld [vmem:[#allocation2 + $0x448] sm:$0xf]  ;;  %v4219_v25 = vor.u32 %v5317_v12, %v4218_v11  ;;  %v4860_v6 = vld [vmem:[#allocation2 + $0x768] sm:$0xf0] }
 0x2bd   :  { %2418 = vmatpush.bf16.msra.mxu0 %v4571_v45  ;;  %2393 = vmatpush.bf16.msrb.mxu2 %v4027_v54  ;;  %v5381_v17 = vld [vmem:[#allocation2 + $0x464] sm:$0xf0]  ;;  %v5289_v45 = vld [vmem:[#allocation2 + $0x18c] sm:$0xf] }
 0x2be   :  { %v4730_v20 = vld [vmem:[#allocation2 + $0x648] sm:$0xf]  ;;  %v4475_v28 = vor.u32 %v5381_v17, %v4474_v15  ;;  %v4636_v54 = vld [vmem:[#allocation2 + $0x5a8] sm:$0xf0]  ;;  %v4863_v17 = vor.u32 %v5473_v5, %v4860_v6  ;;  %v4162_v6 = vld [vmem:[#allocation2 + $0x1d0] sm:$0xf] }
 0x2bf   :  { %2431 = vmatpush.bf16.msra.mxu1 %v4827_v52  ;;  %2406 = vmatpush.bf16.msrb.mxu3 %v4283_v58  ;;  %v5445_v22 = vld [vmem:[#allocation2 + $0x664] sm:$0xf0]  ;;  %v5417_v52 = vld [vmem:[#allocation2 + $0x58c] sm:$0xf]  ;;  %v4127_v58 = vor.u32 %v5289_v45, %v4124_v48 }
 0x2c0   :  { %v3930_v23 = vld [vmem:[#allocation2 + $0x8] sm:$0xf]  ;;  %v4731_v16 = vor.u32 %v5445_v22, %v4730_v20  ;;  %v4639_v61 = vor.u32 %v5417_v52, %v4636_v54  ;;  %v5273_v9 = vld [vmem:[#allocation2 + $0x10c] sm:$0xf] }
 0x2c1   :  { %2419 = vmatpush.bf16.msra.mxu0 %v4539_v59  ;;  %2394 = vmatpush.bf16.msrb.mxu2 %v3995_v4  ;;  %v5245_v24 = vld [vmem:[#allocation2 + $0x24] sm:$0xf0]  ;;  %v4383_v59 = vor.u32 %v5353_v49, %v4380_v50  ;;  %v4604_v4 = vld [vmem:[#allocation2 + $0x568] sm:$0xf0] }
 0x2c2   :  { %v4186_v29 = vld [vmem:[#allocation2 + $0x208] sm:$0xf]  ;;  %v3931_v35 = vor.u32 %v5245_v24, %v3930_v23  ;;  %v4060_v11 = vld [vmem:[#allocation2 + $0x128] sm:$0xf0] }
 0x2c3   :  { %2432 = vmatpush.bf16.msra.mxu1 %v4795_v3  ;;  %2407 = vmatpush.bf16.msrb.mxu3 %v4251_v7  ;;  %v5309_v30 = vld [vmem:[#allocation2 + $0x224] sm:$0xf0]  ;;  %v5409_v3 = vld [vmem:[#allocation2 + $0x54c] sm:$0xf]  ;;  %v4095_v7 = vor.u32 %v5281_v60, %v4092_v62  ;;  %v4063_v23 = vor.u32 %v5273_v9, %v4060_v11  ;;  %v5366_v9 = vld [vmem:[#allocation2 + $0x3ec] sm:$0xf0] }
 0x2c4   :  { %v4442_v31 = vld [vmem:[#allocation2 + $0x408] sm:$0xf]  ;;  %v4187_v39 = vor.u32 %v5309_v30, %v4186_v29  ;;  %v4607_v10 = vor.u32 %v5409_v3, %v4604_v4  ;;  %v5337_v12 = vld [vmem:[#allocation2 + $0x30c] sm:$0xf]  ;;  %v5430_v11 = vld [vmem:[#allocation2 + $0x5ec] sm:$0xf0] }
 0x2c5   :  { %2420 = vmatpush.bf16.msra.mxu0 %v4507_v8  ;;  %v5373_v18 = vld [vmem:[#allocation2 + $0x424] sm:$0xf0]  ;;  %2395 = vmatpush.bf16.msrb.mxu2 %v3963_v21  ;;  %v4351_v8 = vor.u32 %v5345_v63, %v4348_v1  ;;  %v4316_v15 = vld [vmem:[#allocation2 + $0x328] sm:$0xf0] }
 0x2c6   :  { %v4698_v37 = vld [vmem:[#allocation2 + $0x608] sm:$0xf]  ;;  %v4443_v40 = vor.u32 %v5373_v18, %v4442_v31  ;;  %v4572_v20 = vld [vmem:[#allocation2 + $0x528] sm:$0xf0]  ;;  %v4319_v24 = vor.u32 %v5337_v12, %v4316_v15 }
 0x2c7   :  { %2433 = vmatpush.bf16.msra.mxu1 %v4763_v19  ;;  %v5437_v38 = vld [vmem:[#allocation2 + $0x624] sm:$0xf0]  ;;  %2408 = vmatpush.bf16.msrb.mxu3 %v4219_v25  ;;  %v5401_v19 = vld [vmem:[#allocation2 + $0x50c] sm:$0xf] }
 0x2c8   :  { %v4699_v47 = vor.u32 %v5437_v38, %v4698_v37  ;;  %v5465_v21 = vld [vmem:[#allocation2 + $0x70c] sm:$0xf] }
 0x2c9   :  { %2421 = vmatpush.bf16.msra.mxu0 %v4475_v28  ;;  %2396 = vmatpush.bf16.msrb.mxu2 %v3931_v35  ;;  %v4828_v22 = vld [vmem:[#allocation2 + $0x728] sm:$0xf0]  ;;  %v4575_v28 = vor.u32 %v5401_v19, %v4572_v20 }
 0x2ca   :  { %v5265_v25 = vld [vmem:[#allocation2 + $0xcc] sm:$0xf]  ;;  %v4831_v18 = vor.u32 %v5465_v21, %v4828_v22  ;;  %v4930_v22 = vld [vmem:[#allocation2 + $0x7d0] sm:$0xf] }
 0x2cb   :  { %2434 = vmatpush.bf16.msra.mxu1 %v4731_v16  ;;  %2409 = vmatpush.bf16.msrb.mxu3 %v4187_v39  ;;  %v4028_v29 = vld [vmem:[#allocation2 + $0xe8] sm:$0xf0] }
 0x2cc   :  { %2397 = vmatmul.bf16.vlgmr.msrb.gmra.mxu2 %v5970_v43  ;;  %v5329_v30 = vld [vmem:[#allocation2 + $0x2cc] sm:$0xf]  ;;  %v4031_v33 = vor.u32 %v5265_v25, %v4028_v29  ;;  %v5294_v29 = vld [vmem:[#allocation2 + $0x1ac] sm:$0xf0] }
 0x2cd   :  { %2422 = vmatpush.bf16.msra.mxu0 %v4443_v40  ;;  %2441 = vmatpush.bf16.msra.mxu2 %v4159_v0  ;;  %v4284_v31 = vld [vmem:[#allocation2 + $0x2e8] sm:$0xf0] }
 0x2ce   :  { %2410 = vmatmul.bf16.vlgmr.msrb.gmra.mxu3 %v5972_v13  ;;  %v5393_v53 = vld [vmem:[#allocation2 + $0x4cc] sm:$0xf]  ;;  %v4287_v34 = vor.u32 %v5329_v30, %v4284_v31  ;;  %v4386_v30 = vld [vmem:[#allocation2 + $0x390] sm:$0xf] }
 0x2cf   :  { %2454 = vmatpush.bf16.msra.mxu3 %v4415_v44  ;;  %2435 = vmatpush.bf16.msra.mxu1 %v4699_v47  ;;  %v4540_v55 = vld [vmem:[#allocation2 + $0x4e8] sm:$0xf0] }
 0x2d0   :  { %2423 = vmatmul.bf16.vlgmr.msra.gmra.mxu0 %v5974_v14  ;;  %v5457_v16 = vld [vmem:[#allocation2 + $0x6cc] sm:$0xf]  ;;  %v4543_v36 = vor.u32 %v5393_v53, %v4540_v55  ;;  %v4642_v53 = vld [vmem:[#allocation2 + $0x590] sm:$0xf] }
 0x2d1   :  { %2467 = vmatpush.bf16.msrb.mxu0 %v4671_v46  ;;  %2442 = vmatpush.bf16.msra.mxu2 %v4127_v58  ;;  %v4796_v32 = vld [vmem:[#allocation2 + $0x6e8] sm:$0xf0]  ;;  %v5422_v55 = vld [vmem:[#allocation2 + $0x5ac] sm:$0xf0] }
 0x2d2   :  { %2436 = vmatmul.bf16.vlgmr.msra.gmra.mxu1 %v5976_v27  ;;  %v5257_v35 = vld [vmem:[#allocation2 + $0x8c] sm:$0xf]  ;;  %v4799_v40 = vor.u32 %v5457_v16, %v4796_v32 }
 0x2d3   :  { %2480 = vmatpush.bf16.msrb.mxu1 %v4927_v51  ;;  %2455 = vmatpush.bf16.msra.mxu3 %v4383_v59  ;;  %v3996_v37 = vld [vmem:[#allocation2 + $0xa8] sm:$0xf0] }
 0x2d4   :  { %v5321_v38 = vld [vmem:[#allocation2 + $0x28c] sm:$0xf]  ;;  %v3999_v45 = vor.u32 %v5257_v35, %v3996_v37  ;;  %v4098_v37 = vld [vmem:[#allocation2 + $0x150] sm:$0xf] }
 0x2d5   :  { %2468 = vmatpush.bf16.msrb.mxu0 %v4639_v61  ;;  %2443 = vmatpush.bf16.msra.mxu2 %v4095_v7  ;;  %v4252_v39 = vld [vmem:[#allocation2 + $0x2a8] sm:$0xf0]  ;;  %v5302_v7 = vld [vmem:[#allocation2 + $0x1ec] sm:$0xf0] }
 0x2d6   :  { %v5385_v41 = vld [vmem:[#allocation2 + $0x48c] sm:$0xf]  ;;  %v4255_v46 = vor.u32 %v5321_v38, %v4252_v39  ;;  %v4163_v21 = vor.u32 %v5302_v7, %v4162_v6  ;;  %v5286_v38 = vld [vmem:[#allocation2 + $0x16c] sm:$0xf0] }
 0x2d7   :  { %2481 = vmatpush.bf16.msrb.mxu1 %v4895_v2  ;;  %2456 = vmatpush.bf16.msra.mxu3 %v4351_v8  ;;  %v4508_v42 = vld [vmem:[#allocation2 + $0x4a8] sm:$0xf0]  ;;  %v4418_v8 = vld [vmem:[#allocation2 + $0x3d0] sm:$0xf] }
 0x2d8   :  { %v5449_v0 = vld [vmem:[#allocation2 + $0x68c] sm:$0xf]  ;;  %v4511_v48 = vor.u32 %v5385_v41, %v4508_v42  ;;  %v4354_v39 = vld [vmem:[#allocation2 + $0x350] sm:$0xf] }
 0x2d9   :  { %2469 = vmatpush.bf16.msrb.mxu0 %v4607_v10  ;;  %2444 = vmatpush.bf16.msra.mxu2 %v4063_v23  ;;  %v4764_v44 = vld [vmem:[#allocation2 + $0x6a8] sm:$0xf0]  ;;  %v4674_v10 = vld [vmem:[#allocation2 + $0x5d0] sm:$0xf] }
 0x2da   :  { %v5249_v47 = vld [vmem:[#allocation2 + $0x4c] sm:$0xf]  ;;  %v4767_v52 = vor.u32 %v5449_v0, %v4764_v44  ;;  %v5494_v23 = vld [vmem:[#allocation2 + $0x7ec] sm:$0xf0]  ;;  %v4675_v25 = vor.u32 %v5430_v11, %v4674_v10  ;;  %v4099_v44 = vor.u32 %v5286_v38, %v4098_v37 }
 0x2db   :  { %2482 = vmatpush.bf16.msrb.mxu1 %v4863_v17  ;;  %2457 = vmatpush.bf16.msra.mxu3 %v4319_v24  ;;  %v3964_v49 = vld [vmem:[#allocation2 + $0x68] sm:$0xf0]  ;;  %v4419_v24 = vor.u32 %v5366_v9, %v4418_v8  ;;  %v4931_v16 = vor.u32 %v5494_v23, %v4930_v22  ;;  %v4610_v41 = vld [vmem:[#allocation2 + $0x550] sm:$0xf] }
 0x2dc   :  { %v5313_v50 = vld [vmem:[#allocation2 + $0x24c] sm:$0xf]  ;;  %v3967_v59 = vor.u32 %v5249_v47, %v3964_v49  ;;  %v5414_v42 = vld [vmem:[#allocation2 + $0x56c] sm:$0xf0] }
 0x2dd   :  { %2470 = vmatpush.bf16.msrb.mxu0 %v4575_v28  ;;  %2445 = vmatpush.bf16.msra.mxu2 %v4031_v33  ;;  %v4220_v51 = vld [vmem:[#allocation2 + $0x268] sm:$0xf0]  ;;  %v4130_v28 = vld [vmem:[#allocation2 + $0x190] sm:$0xf] }
 0x2de   :  { %v5377_v54 = vld [vmem:[#allocation2 + $0x44c] sm:$0xf]  ;;  %v4223_v60 = vor.u32 %v5313_v50, %v4220_v51  ;;  %v4131_v32 = vor.u32 %v5294_v29, %v4130_v28  ;;  %v4898_v33 = vld [vmem:[#allocation2 + $0x790] sm:$0xf] }
 0x2df   :  { %2483 = vmatpush.bf16.msrb.mxu1 %v4831_v18  ;;  %2458 = vmatpush.bf16.msra.mxu3 %v4287_v34  ;;  %v4476_v56 = vld [vmem:[#allocation2 + $0x468] sm:$0xf0]  ;;  %v5358_v18 = vld [vmem:[#allocation2 + $0x3ac] sm:$0xf0] }
 0x2e0   :  { %v5441_v57 = vld [vmem:[#allocation2 + $0x64c] sm:$0xf]  ;;  %v4479_v1 = vor.u32 %v5377_v54, %v4476_v56  ;;  %v5486_v34 = vld [vmem:[#allocation2 + $0x7ac] sm:$0xf0]  ;;  %v4387_v35 = vor.u32 %v5358_v18, %v4386_v30 }
 0x2e1   :  { %2471 = vmatpush.bf16.msrb.mxu0 %v4543_v36  ;;  %v4732_v58 = vld [vmem:[#allocation2 + $0x668] sm:$0xf0]  ;;  %2446 = vmatpush.bf16.msra.mxu2 %v3999_v45  ;;  %v4643_v36 = vor.u32 %v5422_v55, %v4642_v53  ;;  %v4899_v0 = vor.u32 %v5486_v34, %v4898_v33  ;;  %v4866_v45 = vld [vmem:[#allocation2 + $0x750] sm:$0xf] }
 0x2e2   :  { %v5241_v61 = vld [vmem:[#allocation2 + $0xc] sm:$0xf]  ;;  %v4735_v5 = vor.u32 %v5441_v57, %v4732_v58  ;;  %v4066_v49 = vld [vmem:[#allocation2 + $0x110] sm:$0xf] }
 0x2e3   :  { %2484 = vmatpush.bf16.msrb.mxu1 %v4799_v40  ;;  %2459 = vmatpush.bf16.msra.mxu3 %v4255_v46  ;;  %v3932_v62 = vld [vmem:[#allocation2 + $0x28] sm:$0xf0]  ;;  %v5350_v40 = vld [vmem:[#allocation2 + $0x36c] sm:$0xf0] }
 0x2e4   :  { %v5305_v63 = vld [vmem:[#allocation2 + $0x20c] sm:$0xf]  ;;  %v3935_v12 = vor.u32 %v5241_v61, %v3932_v62  ;;  %v5478_v46 = vld [vmem:[#allocation2 + $0x76c] sm:$0xf0]  ;;  %v4355_v47 = vor.u32 %v5350_v40, %v4354_v39 }
 0x2e5   :  { %2472 = vmatpush.bf16.msrb.mxu0 %v4511_v48  ;;  %v4188_v2 = vld [vmem:[#allocation2 + $0x228] sm:$0xf0]  ;;  %2447 = vmatpush.bf16.msra.mxu2 %v3967_v59  ;;  %v4611_v48 = vor.u32 %v5414_v42, %v4610_v41  ;;  %v5278_v50 = vld [vmem:[#allocation2 + $0x12c] sm:$0xf0]  ;;  %v4867_v57 = vor.u32 %v5478_v46, %v4866_v45  ;;  %v4164_v45 = vld [vmem:[#allocation2 + $0x1f0] sm:$0xf0] }
 0x2e6   :  { %v5369_v3 = vld [vmem:[#allocation2 + $0x40c] sm:$0xf]  ;;  %v4191_v15 = vor.u32 %v5305_v63, %v4188_v2  ;;  %v4322_v51 = vld [vmem:[#allocation2 + $0x310] sm:$0xf]  ;;  %v4067_v58 = vor.u32 %v5278_v50, %v4066_v49  ;;  %v5426_v49 = vld [vmem:[#allocation2 + $0x5d4] sm:$0xf] }
 0x2e7   :  { %v4444_v4 = vld [vmem:[#allocation2 + $0x428] sm:$0xf0]  ;;  %2485 = vmatpush.bf16.msrb.mxu1 %v4767_v52  ;;  %2460 = vmatpush.bf16.msra.mxu3 %v4223_v60  ;;  %v5342_v52 = vld [vmem:[#allocation2 + $0x32c] sm:$0xf0] }
 0x2e8   :  { %v5433_v17 = vld [vmem:[#allocation2 + $0x60c] sm:$0xf]  ;;  %v4447_v20 = vor.u32 %v5369_v3, %v4444_v4  ;;  %v4578_v54 = vld [vmem:[#allocation2 + $0x510] sm:$0xf]  ;;  %v4323_v61 = vor.u32 %v5342_v52, %v4322_v51  ;;  %v4676_v51 = vld [vmem:[#allocation2 + $0x5f0] sm:$0xf0] }
 0x2e9   :  { %v4700_v19 = vld [vmem:[#allocation2 + $0x628] sm:$0xf0]  ;;  %2473 = vmatpush.bf16.msrb.mxu0 %v4479_v1  ;;  %2448 = vmatpush.bf16.msra.mxu2 %v3935_v12  ;;  %v5406_v56 = vld [vmem:[#allocation2 + $0x52c] sm:$0xf0] }
 0x2ea   :  { %v4703_v31 = vor.u32 %v5433_v17, %v4700_v19  ;;  %v4834_v59 = vld [vmem:[#allocation2 + $0x710] sm:$0xf]  ;;  %v4579_v62 = vor.u32 %v5406_v56, %v4578_v54 }
 0x2eb   :  { %2486 = vmatpush.bf16.msrb.mxu1 %v4735_v5  ;;  %2461 = vmatpush.bf16.msra.mxu3 %v4191_v15  ;;  %v5470_v60 = vld [vmem:[#allocation2 + $0x72c] sm:$0xf0] }
 0x2ec   :  { %2449 = vmatmul.bf16.vlgmr.msra.gmra.mxu2 %v5970_v43  ;;  %v4034_v63 = vld [vmem:[#allocation2 + $0xd0] sm:$0xf]  ;;  %v4835_v6 = vor.u32 %v5470_v60, %v4834_v59  ;;  %v4932_v59 = vld [vmem:[#allocation2 + $0x7f0] sm:$0xf0] }
 0x2ed   :  { %2474 = vmatpush.bf16.msrb.mxu0 %v4447_v20  ;;  %2493 = vmatpush.bf16.msrb.mxu2 %v4163_v21  ;;  %v5270_v1 = vld [vmem:[#allocation2 + $0xec] sm:$0xf0] }
 0x2ee   :  { %2462 = vmatmul.bf16.vlgmr.msra.gmra.mxu3 %v5972_v13  ;;  %v4290_v2 = vld [vmem:[#allocation2 + $0x2d0] sm:$0xf]  ;;  %v4035_v7 = vor.u32 %v5270_v1, %v4034_v63  ;;  %v4679_v63 = vor.u32 %v5426_v49, %v4676_v51  ;;  %v5258_v51 = vld [vmem:[#allocation2 + $0x94] sm:$0xf] }
 0x2ef   :  { %2506 = vmatpush.bf16.msrb.mxu3 %v4419_v24  ;;  %2487 = vmatpush.bf16.msrb.mxu1 %v4703_v31  ;;  %v5334_v3 = vld [vmem:[#allocation2 + $0x2ec] sm:$0xf0] }
 0x2f0   :  { %2475 = vmatmul.bf16.vlgmr.msrb.gmra.mxu0 %v5974_v14  ;;  %v4546_v4 = vld [vmem:[#allocation2 + $0x4d0] sm:$0xf]  ;;  %v4291_v10 = vor.u32 %v5334_v3, %v4290_v2  ;;  %v4132_v2 = vld [vmem:[#allocation2 + $0x1b0] sm:$0xf0] }
 0x2f1   :  { %2519 = vmatpush.bf16.msra.mxu0 %v4675_v25  ;;  %2494 = vmatpush.bf16.msrb.mxu2 %v4131_v32  ;;  %v5398_v5 = vld [vmem:[#allocation2 + $0x4ec] sm:$0xf0]  ;;  %v5354_v3 = vld [vmem:[#allocation2 + $0x394] sm:$0xf] }
 0x2f2   :  { %2488 = vmatmul.bf16.vlgmr.msrb.gmra.mxu1 %v5976_v27  ;;  %v4802_v8 = vld [vmem:[#allocation2 + $0x6d0] sm:$0xf]  ;;  %v4547_v11 = vor.u32 %v5398_v5, %v4546_v4  ;;  %v4388_v4 = vld [vmem:[#allocation2 + $0x3b0] sm:$0xf0] }
 0x2f3   :  { %2532 = vmatpush.bf16.msra.mxu1 %v4931_v16  ;;  %2507 = vmatpush.bf16.msrb.mxu3 %v4387_v35  ;;  %v5462_v9 = vld [vmem:[#allocation2 + $0x6ec] sm:$0xf0] }
 0x2f4   :  { %v4002_v12 = vld [vmem:[#allocation2 + $0x90] sm:$0xf]  ;;  %v4803_v22 = vor.u32 %v5462_v9, %v4802_v8  ;;  %v5482_v8 = vld [vmem:[#allocation2 + $0x794] sm:$0xf] }
 0x2f5   :  { %2520 = vmatpush.bf16.msra.mxu0 %v4643_v36  ;;  %2495 = vmatpush.bf16.msrb.mxu2 %v4099_v44  ;;  %v5262_v15 = vld [vmem:[#allocation2 + $0xac] sm:$0xf0]  ;;  %v5298_v44 = vld [vmem:[#allocation2 + $0x1d4] sm:$0xf] }
 0x2f6   :  { %v4258_v17 = vld [vmem:[#allocation2 + $0x290] sm:$0xf]  ;;  %v4003_v23 = vor.u32 %v5262_v15, %v4002_v12  ;;  %v4167_v60 = vor.u32 %v5298_v44, %v4164_v45  ;;  %v4900_v9 = vld [vmem:[#allocation2 + $0x7b0] sm:$0xf0] }
 0x2f7   :  { %2533 = vmatpush.bf16.msra.mxu1 %v4899_v0  ;;  %2508 = vmatpush.bf16.msrb.mxu3 %v4355_v47  ;;  %v5326_v19 = vld [vmem:[#allocation2 + $0x2ac] sm:$0xf0]  ;;  %v5362_v47 = vld [vmem:[#allocation2 + $0x3d4] sm:$0xf] }
 0x2f8   :  { %v4514_v20 = vld [vmem:[#allocation2 + $0x490] sm:$0xf]  ;;  %v4259_v28 = vor.u32 %v5326_v19, %v4258_v17  ;;  %v5282_v12 = vld [vmem:[#allocation2 + $0x154] sm:$0xf] }
 0x2f9   :  { %2521 = vmatpush.bf16.msra.mxu0 %v4611_v48  ;;  %2496 = vmatpush.bf16.msrb.mxu2 %v4067_v58  ;;  %v5390_v21 = vld [vmem:[#allocation2 + $0x4ac] sm:$0xf0]  ;;  %v4420_v48 = vld [vmem:[#allocation2 + $0x3f0] sm:$0xf0] }
 0x2fa   :  { %v4770_v24 = vld [vmem:[#allocation2 + $0x690] sm:$0xf]  ;;  %v4515_v29 = vor.u32 %v5390_v21, %v4514_v20  ;;  %v5490_v58 = vld [vmem:[#allocation2 + $0x7d4] sm:$0xf]  ;;  %v4903_v21 = vor.u32 %v5482_v8, %v4900_v9 }
 0x2fb   :  { %2534 = vmatpush.bf16.msra.mxu1 %v4867_v57  ;;  %2509 = vmatpush.bf16.msrb.mxu3 %v4323_v61  ;;  %v5454_v25 = vld [vmem:[#allocation2 + $0x6ac] sm:$0xf0]  ;;  %v4423_v61 = vor.u32 %v5362_v47, %v4420_v48  ;;  %v4935_v5 = vor.u32 %v5490_v58, %v4932_v59  ;;  %v4100_v17 = vld [vmem:[#allocation2 + $0x170] sm:$0xf0] }
 0x2fc   :  { %v3970_v30 = vld [vmem:[#allocation2 + $0x50] sm:$0xf]  ;;  %v4771_v32 = vor.u32 %v5454_v25, %v4770_v24  ;;  %v5346_v19 = vld [vmem:[#allocation2 + $0x354] sm:$0xf] }
 0x2fd   :  { %2522 = vmatpush.bf16.msra.mxu0 %v4579_v62  ;;  %2497 = vmatpush.bf16.msrb.mxu2 %v4035_v7  ;;  %v5254_v31 = vld [vmem:[#allocation2 + $0x6c] sm:$0xf0]  ;;  %v5290_v62 = vld [vmem:[#allocation2 + $0x194] sm:$0xf] }
 0x2fe   :  { %v4226_v18 = vld [vmem:[#allocation2 + $0x250] sm:$0xf]  ;;  %v3971_v34 = vor.u32 %v5254_v31, %v3970_v30  ;;  %v4644_v7 = vld [vmem:[#allocation2 + $0x5b0] sm:$0xf0] }
 0x2ff   :  { %2535 = vmatpush.bf16.msra.mxu1 %v4835_v6  ;;  %2510 = vmatpush.bf16.msrb.mxu3 %v4291_v10  ;;  %v5318_v53 = vld [vmem:[#allocation2 + $0x26c] sm:$0xf0]  ;;  %v5418_v6 = vld [vmem:[#allocation2 + $0x594] sm:$0xf]  ;;  %v4135_v10 = vor.u32 %v5290_v62, %v4132_v2 }
 0x300   :  { %v4482_v55 = vld [vmem:[#allocation2 + $0x450] sm:$0xf]  ;;  %v4227_v38 = vor.u32 %v5318_v53, %v4226_v18  ;;  %v4647_v15 = vor.u32 %v5418_v6, %v4644_v7  ;;  %v4356_v20 = vld [vmem:[#allocation2 + $0x370] sm:$0xf0] }
 0x301   :  { %2523 = vmatpush.bf16.msra.mxu0 %v4547_v11  ;;  %v5382_v16 = vld [vmem:[#allocation2 + $0x46c] sm:$0xf0]  ;;  %2498 = vmatpush.bf16.msrb.mxu2 %v4003_v23  ;;  %v4391_v11 = vor.u32 %v5354_v3, %v4388_v4  ;;  %v4612_v23 = vld [vmem:[#allocation2 + $0x570] sm:$0xf0] }
 0x302   :  { %v4738_v33 = vld [vmem:[#allocation2 + $0x650] sm:$0xf]  ;;  %v4483_v39 = vor.u32 %v5382_v16, %v4482_v55  ;;  %v5474_v24 = vld [vmem:[#allocation2 + $0x754] sm:$0xf] }
 0x303   :  { %2536 = vmatpush.bf16.msra.mxu1 %v4803_v22  ;;  %v5446_v35 = vld [vmem:[#allocation2 + $0x66c] sm:$0xf0]  ;;  %2511 = vmatpush.bf16.msrb.mxu3 %v4259_v28  ;;  %v5410_v22 = vld [vmem:[#allocation2 + $0x554] sm:$0xf]  ;;  %v4103_v28 = vor.u32 %v5282_v12, %v4100_v17 }
 0x304   :  { %v3938_v36 = vld [vmem:[#allocation2 + $0x10] sm:$0xf]  ;;  %v4739_v46 = vor.u32 %v5446_v35, %v4738_v33  ;;  %v4868_v25 = vld [vmem:[#allocation2 + $0x770] sm:$0xf0]  ;;  %v4615_v31 = vor.u32 %v5410_v22, %v4612_v23 }
 0x305   :  { %v5246_v37 = vld [vmem:[#allocation2 + $0x2c] sm:$0xf0]  ;;  %2524 = vmatpush.bf16.msra.mxu0 %v4515_v29  ;;  %2499 = vmatpush.bf16.msrb.mxu2 %v3971_v34  ;;  %v4359_v29 = vor.u32 %v5346_v19, %v4356_v20  ;;  %v5274_v30 = vld [vmem:[#allocation2 + $0x114] sm:$0xf]  ;;  %v4871_v16 = vor.u32 %v5474_v24, %v4868_v25 }
 0x306   :  { %v4194_v40 = vld [vmem:[#allocation2 + $0x210] sm:$0xf]  ;;  %v3939_v50 = vor.u32 %v5246_v37, %v3938_v36  ;;  %v4068_v18 = vld [vmem:[#allocation2 + $0x130] sm:$0xf0] }
 0x307   :  { %v5310_v41 = vld [vmem:[#allocation2 + $0x22c] sm:$0xf0]  ;;  %2537 = vmatpush.bf16.msra.mxu1 %v4771_v32  ;;  %2512 = vmatpush.bf16.msrb.mxu3 %v4227_v38  ;;  %v5338_v53 = vld [vmem:[#allocation2 + $0x314] sm:$0xf]  ;;  %v4071_v36 = vor.u32 %v5274_v30, %v4068_v18 }
 0x308   :  { %v4450_v42 = vld [vmem:[#allocation2 + $0x410] sm:$0xf]  ;;  %v4195_v56 = vor.u32 %v5310_v41, %v4194_v40  ;;  %v4324_v55 = vld [vmem:[#allocation2 + $0x330] sm:$0xf0] }
 0x309   :  { %v5374_v0 = vld [vmem:[#allocation2 + $0x42c] sm:$0xf0]  ;;  %2525 = vmatpush.bf16.msra.mxu0 %v4483_v39  ;;  %2500 = vmatpush.bf16.msrb.mxu2 %v3939_v50  ;;  %v5402_v32 = vld [vmem:[#allocation2 + $0x514] sm:$0xf]  ;;  %v4327_v37 = vor.u32 %v5338_v53, %v4324_v55 }
 0x30a   :  { %v4706_v52 = vld [vmem:[#allocation2 + $0x610] sm:$0xf]  ;;  %v4451_v57 = vor.u32 %v5374_v0, %v4450_v42  ;;  %v4580_v33 = vld [vmem:[#allocation2 + $0x530] sm:$0xf0] }
 0x30b   :  { %v5438_v54 = vld [vmem:[#allocation2 + $0x62c] sm:$0xf0]  ;;  %2538 = vmatpush.bf16.msra.mxu1 %v4739_v46  ;;  %2513 = vmatpush.bf16.msrb.mxu3 %v4195_v56  ;;  %v5466_v34 = vld [vmem:[#allocation2 + $0x714] sm:$0xf]  ;;  %v4583_v39 = vor.u32 %v5402_v32, %v4580_v33  ;;  %v5303_v32 = vld [vmem:[#allocation2 + $0x1f4] sm:$0xf0] }
 0x30c   :  { %v4707_v1 = vor.u32 %v5438_v54, %v4706_v52  ;;  %2501 = vmatmul.bf16.vlgmr.msrb.gmra.mxu2 %v5970_v43  ;;  %v4836_v35 = vld [vmem:[#allocation2 + $0x730] sm:$0xf0] }
 0x30d   :  { %2526 = vmatpush.bf16.msra.mxu0 %v4451_v57  ;;  %2545 = vmatpush.bf16.msra.mxu2 %v4167_v60  ;;  %v5266_v38 = vld [vmem:[#allocation2 + $0xd4] sm:$0xf]  ;;  %v4839_v0 = vor.u32 %v5466_v34, %v4836_v35  ;;  %v2320_v46 = vpop.f32.mrf.mxu0  ;;  %v4426_v34 = vld [vmem:[#allocation2 + $0x3d8] sm:$0xf] }
 0x30e   :  { %2514 = vmatmul.bf16.vlgmr.msrb.gmra.mxu3 %v5972_v13  ;;  %v4036_v40 = vld [vmem:[#allocation2 + $0xf0] sm:$0xf0]  ;;  %v5367_v35 = vld [vmem:[#allocation2 + $0x3f4] sm:$0xf0] }
 0x30f   :  { %2558 = vmatpush.bf16.msra.mxu3 %v4423_v61  ;;  %2539 = vmatpush.bf16.msra.mxu1 %v4707_v1  ;;  %v5330_v41 = vld [vmem:[#allocation2 + $0x2d4] sm:$0xf]  ;;  %v4039_v49 = vor.u32 %v5266_v38, %v4036_v40  ;;  %v2333_v52 = vpop.f32.mrf.mxu1  ;;  %v2294_v1 = vpop.f32.mrf.mxu2 }
 0x310   :  { %2527 = vmatmul.bf16.vlgmr.msra.gmra.mxu0 %v5974_v14  ;;  %v4292_v42 = vld [vmem:[#allocation2 + $0x2f0] sm:$0xf0] }
 0x311   :  { %2571 = vmatpush.bf16.msrb.mxu0 %v4679_v63  ;;  %2546 = vmatpush.bf16.msra.mxu2 %v4135_v10  ;;  %v5394_v44 = vld [vmem:[#allocation2 + $0x4d4] sm:$0xf]  ;;  %v4295_v50 = vor.u32 %v5330_v41, %v4292_v42  ;;  %v2307_v4 = vpop.f32.mrf.mxu3 }
 0x312   :  { %2540 = vmatmul.bf16.vlgmr.msra.gmra.mxu1 %v5976_v27  ;;  %v4548_v45 = vld [vmem:[#allocation2 + $0x4f0] sm:$0xf0]  ;;  %v2308_v7 = vadd.f32 %v2307_v4, %v2294_v1  ;;  %v5423_v1 = vld [vmem:[#allocation2 + $0x5b4] sm:$0xf0] }
 0x313   :  { %2584 = vmatpush.bf16.msrb.mxu1 %v4935_v5  ;;  %2559 = vmatpush.bf16.msra.mxu3 %v4391_v11  ;;  %v5458_v47 = vld [vmem:[#allocation2 + $0x6d4] sm:$0xf]  ;;  %v4551_v54 = vor.u32 %v5394_v44, %v4548_v45 }
 0x314   :  { %v4804_v48 = vld [vmem:[#allocation2 + $0x6f0] sm:$0xf0]  ;;  %v2321_v20 = vadd.f32 %v2320_v46, %v2308_v7  ;;  %v4938_v46 = vld [vmem:[#allocation2 + $0x7d8] sm:$0xf] }
 0x315   :  { %2572 = vmatpush.bf16.msrb.mxu0 %v4647_v15  ;;  %2547 = vmatpush.bf16.msra.mxu2 %v4103_v28  ;;  %v4004_v56 = vld [vmem:[#allocation2 + $0xb0] sm:$0xf0]  ;;  %v4807_v59 = vor.u32 %v5458_v47, %v4804_v48  ;;  %v2322_v19 = vpop.f32.mrf.mxu0  ;;  %v5487_v7 = vld [vmem:[#allocation2 + $0x7b4] sm:$0xf0] }
 0x316   :  { %v5322_v57 = vld [vmem:[#allocation2 + $0x294] sm:$0xf]  ;;  %v4007_v2 = vor.u32 %v5258_v51, %v4004_v56  ;;  %v5998_v53 = vadd.f32 %v2333_v52, %v2321_v20  ;;  %v5495_v51 = vld [vmem:[#allocation2 + $0x7f4] sm:$0xf0] }
 0x317   :  { %2585 = vmatpush.bf16.msrb.mxu1 %v4903_v21  ;;  %2560 = vmatpush.bf16.msra.mxu3 %v4359_v29  ;;  %v4260_v58 = vld [vmem:[#allocation2 + $0x2b0] sm:$0xf0]  ;;  %v2296_v41 = vpop.f32.mrf.mxu2  ;;  %v4138_v52 = vld [vmem:[#allocation2 + $0x198] sm:$0xf] }
 0x318   :  { %v5386_v60 = vld [vmem:[#allocation2 + $0x494] sm:$0xf]  ;;  %v4263_v3 = vor.u32 %v5322_v57, %v4260_v58  ;;  %v2765_v38 = vmul.f32 %v5998_v53, %v5998_v53  ;;  %v4427_v57 = vor.u32 %v5367_v35, %v4426_v34  ;;  %v5415_v19 = vld [vmem:[#allocation2 + $0x574] sm:$0xf0] }
 0x319   :  { %2573 = vmatpush.bf16.msrb.mxu0 %v4615_v31  ;;  %2548 = vmatpush.bf16.msra.mxu2 %v4071_v36  ;;  %v4516_v61 = vld [vmem:[#allocation2 + $0x4b0] sm:$0xf0]  ;;  %v2335_v31 = vpop.f32.mrf.mxu1  ;;  %v4682_v36 = vld [vmem:[#allocation2 + $0x5d8] sm:$0xf]  ;;  %v2309_v47 = vpop.f32.mrf.mxu3 }
 0x31a   :  { %v5450_v62 = vld [vmem:[#allocation2 + $0x694] sm:$0xf]  ;;  %v4519_v6 = vor.u32 %v5386_v60, %v4516_v61  ;;  %v2773_v48 = vsel %vm261_vm7, %v2765_v38, 0.0  ;;  %v4394_v60 = vld [vmem:[#allocation2 + $0x398] sm:$0xf] }
 0x31b   :  { %2586 = vmatpush.bf16.msrb.mxu1 %v4871_v16  ;;  %2561 = vmatpush.bf16.msra.mxu3 %v4327_v37  ;;  %v4772_v63 = vld [vmem:[#allocation2 + $0x6b0] sm:$0xf0]  ;;  %v4170_v16 = vld [vmem:[#allocation2 + $0x1d8] sm:$0xf]  ;;  %v2701_v37 = vsel %vm261_vm7, %v5998_v53, 0.0  ;;  %v2774_v56 = vrot.slane %v2773_v48, 4 }
 0x31c   :  { %v5250_v5 = vld [vmem:[#allocation2 + $0x54] sm:$0xf]  ;;  %v4775_v11 = vor.u32 %v5450_v62, %v4772_v63  ;;  %v2702_v42 = vrot.slane %v2701_v37, 4  ;;  %v5359_v62 = vld [vmem:[#allocation2 + $0x3b4] sm:$0xf0] }
 0x31d   :  { %2574 = vmatpush.bf16.msrb.mxu0 %v4583_v39  ;;  %2549 = vmatpush.bf16.msra.mxu2 %v4039_v49  ;;  %v3972_v8 = vld [vmem:[#allocation2 + $0x70] sm:$0xf0]  ;;  %v5431_v39 = vld [vmem:[#allocation2 + $0x5f4] sm:$0xf0]  ;;  %v2775_v4 = vadd.f32 %v2774_v56, %v2773_v48 }
 0x31e   :  { %v5314_v9 = vld [vmem:[#allocation2 + $0x254] sm:$0xf]  ;;  %v3975_v24 = vor.u32 %v5250_v5, %v3972_v8  ;;  %v4683_v58 = vor.u32 %v5431_v39, %v4682_v36  ;;  %v4650_v63 = vld [vmem:[#allocation2 + $0x598] sm:$0xf]  ;;  %v4395_v8 = vor.u32 %v5359_v62, %v4394_v60 }
 0x31f   :  { %2587 = vmatpush.bf16.msrb.mxu1 %v4839_v0  ;;  %2562 = vmatpush.bf16.msra.mxu3 %v4295_v50  ;;  %v4228_v10 = vld [vmem:[#allocation2 + $0x270] sm:$0xf0]  ;;  %v4171_v50 = vor.u32 %v5303_v32, %v4170_v16  ;;  %v5279_v31 = vld [vmem:[#allocation2 + $0x134] sm:$0xf0] }
 0x320   :  { %v5378_v12 = vld [vmem:[#allocation2 + $0x454] sm:$0xf]  ;;  %v4231_v25 = vor.u32 %v5314_v9, %v4228_v10  ;;  %v4651_v9 = vor.u32 %v5423_v1, %v4650_v63  ;;  %v4106_v10 = vld [vmem:[#allocation2 + $0x158] sm:$0xf] }
 0x321   :  { %2575 = vmatpush.bf16.msrb.mxu0 %v4551_v54  ;;  %v4484_v15 = vld [vmem:[#allocation2 + $0x470] sm:$0xf0]  ;;  %2550 = vmatpush.bf16.msra.mxu2 %v4007_v2  ;;  %v2703_v54 = vadd.f32 %v2702_v42, %v2701_v37  ;;  %v4939_v2 = vor.u32 %v5495_v51, %v4938_v46  ;;  %v4586_v16 = vld [vmem:[#allocation2 + $0x518] sm:$0xf] }
 0x322   :  { %v5442_v17 = vld [vmem:[#allocation2 + $0x654] sm:$0xf]  ;;  %v4487_v18 = vor.u32 %v5378_v12, %v4484_v15  ;;  %v4362_v12 = vld [vmem:[#allocation2 + $0x358] sm:$0xf] }
 0x323   :  { %2588 = vmatpush.bf16.msrb.mxu1 %v4807_v59  ;;  %v4740_v21 = vld [vmem:[#allocation2 + $0x670] sm:$0xf0]  ;;  %2563 = vmatpush.bf16.msra.mxu3 %v4263_v3  ;;  %v5295_v59 = vld [vmem:[#allocation2 + $0x1b4] sm:$0xf0]  ;;  %v2704_v3 = vrot.slane %v2703_v54, 2 }
 0x324   :  { %v5242_v22 = vld [vmem:[#allocation2 + $0x14] sm:$0xf]  ;;  %v4743_v33 = vor.u32 %v5442_v17, %v4740_v21  ;;  %v4139_v5 = vor.u32 %v5295_v59, %v4138_v52  ;;  %v5351_v15 = vld [vmem:[#allocation2 + $0x374] sm:$0xf0] }
 0x325   :  { %v3940_v23 = vld [vmem:[#allocation2 + $0x30] sm:$0xf0]  ;;  %2576 = vmatpush.bf16.msrb.mxu0 %v4519_v6  ;;  %2551 = vmatpush.bf16.msra.mxu2 %v3975_v24  ;;  %v4906_v6 = vld [vmem:[#allocation2 + $0x798] sm:$0xf]  ;;  %v2705_v21 = vadd.f32 %v2704_v3, %v2703_v54 }
 0x326   :  { %v5306_v28 = vld [vmem:[#allocation2 + $0x214] sm:$0xf]  ;;  %v3943_v0 = vor.u32 %v5242_v22, %v3940_v23  ;;  %v4618_v17 = vld [vmem:[#allocation2 + $0x558] sm:$0xf]  ;;  %v4907_v20 = vor.u32 %v5487_v7, %v4906_v6  ;;  %v2776_v22 = vrot.slane %v2775_v4, 2 }
 0x327   :  { %v4196_v29 = vld [vmem:[#allocation2 + $0x230] sm:$0xf0]  ;;  %2589 = vmatpush.bf16.msrb.mxu1 %v4775_v11  ;;  %2564 = vmatpush.bf16.msra.mxu3 %v4231_v25  ;;  %v5287_v11 = vld [vmem:[#allocation2 + $0x174] sm:$0xf0]  ;;  %v2706_v34 = vrot.slane %v2705_v21, 1 }
 0x328   :  { %v5370_v30 = vld [vmem:[#allocation2 + $0x414] sm:$0xf]  ;;  %v4199_v44 = vor.u32 %v5306_v28, %v4196_v29  ;;  %v4107_v23 = vor.u32 %v5287_v11, %v4106_v10  ;;  %v4874_v24 = vld [vmem:[#allocation2 + $0x758] sm:$0xf]  ;;  %v4363_v28 = vor.u32 %v5351_v15, %v4362_v12  ;;  %v4619_v29 = vor.u32 %v5415_v19, %v4618_v17 }
 0x329   :  { %v4452_v55 = vld [vmem:[#allocation2 + $0x430] sm:$0xf0]  ;;  %2577 = vmatpush.bf16.msrb.mxu0 %v4487_v18  ;;  %2552 = vmatpush.bf16.msra.mxu2 %v3943_v0  ;;  %v5479_v25 = vld [vmem:[#allocation2 + $0x774] sm:$0xf0]  ;;  %v2777_v35 = vadd.f32 %v2776_v22, %v2775_v4 }
 0x32a   :  { %v5434_v40 = vld [vmem:[#allocation2 + $0x614] sm:$0xf]  ;;  %v4455_v49 = vor.u32 %v5370_v30, %v4452_v55  ;;  %v4074_v30 = vld [vmem:[#allocation2 + $0x118] sm:$0xf] }
 0x32b   :  { %v4708_v45 = vld [vmem:[#allocation2 + $0x630] sm:$0xf0]  ;;  %2590 = vmatpush.bf16.msrb.mxu1 %v4743_v33  ;;  %2565 = vmatpush.bf16.msra.mxu3 %v4199_v44  ;;  %v4330_v18 = vld [vmem:[#allocation2 + $0x318] sm:$0xf]  ;;  %v4875_v33 = vor.u32 %v5479_v25, %v4874_v24  ;;  %v4075_v36 = vor.u32 %v5279_v31, %v4074_v30 }
 0x32c   :  { %v4711_v61 = vor.u32 %v5434_v40, %v4708_v45  ;;  %2553 = vmatmul.bf16.vlgmr.msra.gmra.mxu2 %v5970_v43  ;;  %v5343_v55 = vld [vmem:[#allocation2 + $0x334] sm:$0xf0] }
 0x32d   :  { %2578 = vmatpush.bf16.msrb.mxu0 %v4455_v49  ;;  %2597 = vmatpush.bf16.msrb.mxu2 %v4171_v50  ;;  %v5407_v32 = vld [vmem:[#allocation2 + $0x534] sm:$0xf0]  ;;  %v4331_v39 = vor.u32 %v5343_v55, %v4330_v18  ;;  %v2372_v48 = vpop.f32.mrf.mxu0  ;;  %v2707_v49 = vadd.f32 %v2706_v34, %v2705_v21  ;;  %v2778_v50 = vrot.slane %v2777_v35, 1 }
 0x32e   :  { %2566 = vmatmul.bf16.vlgmr.msra.gmra.mxu3 %v5972_v13  ;;  %v4842_v37 = vld [vmem:[#allocation2 + $0x718] sm:$0xf]  ;;  %v4587_v40 = vor.u32 %v5407_v32, %v4586_v16 }
 0x32f   :  { %2610 = vmatpush.bf16.msrb.mxu3 %v4427_v57  ;;  %2591 = vmatpush.bf16.msrb.mxu1 %v4711_v61  ;;  %v5471_v38 = vld [vmem:[#allocation2 + $0x734] sm:$0xf0]  ;;  %v2385_v61 = vpop.f32.mrf.mxu1  ;;  %v6010_v4 = vmul.f32 %v2707_v49, %v5884_v26 }
 0x330   :  { %2579 = vmatmul.bf16.vlgmr.msrb.gmra.mxu0 %v5974_v14  ;;  %v4042_v41 = vld [vmem:[#allocation2 + $0xd8] sm:$0xf]  ;;  %v4843_v47 = vor.u32 %v5471_v38, %v4842_v37 }
 0x331   :  { %2623 = vmatpush.bf16.msra.mxu0 %v4683_v58  ;;  %2598 = vmatpush.bf16.msrb.mxu2 %v4139_v5  ;;  %v5271_v42 = vld [vmem:[#allocation2 + $0xf4] sm:$0xf0]  ;;  %v2779_v5 = vadd.f32 %v2778_v50, %v2777_v35  ;;  %v2359_v6 = vpop.f32.mrf.mxu3  ;;  %v2837_v18 = vmul.f32 %v6010_v4, %v6010_v4 }
 0x332   :  { %2592 = vmatmul.bf16.vlgmr.msrb.gmra.mxu1 %v5976_v27  ;;  %v4298_v0 = vld [vmem:[#allocation2 + $0x2d8] sm:$0xf]  ;;  %v4043_v51 = vor.u32 %v5271_v42, %v4042_v41  ;;  %v4172_v41 = vld [vmem:[#allocation2 + $0x1f8] sm:$0xf0] }
 0x333   :  { %2636 = vmatpush.bf16.msra.mxu1 %v4939_v2  ;;  %2611 = vmatpush.bf16.msrb.mxu3 %v4395_v8  ;;  %v5335_v44 = vld [vmem:[#allocation2 + $0x2f4] sm:$0xf0]  ;;  %v2346_v2 = vpop.f32.mrf.mxu2  ;;  %v2829_v31 = vmul.f32 %v2779_v5, %v5884_v26  ;;  %v5363_v42 = vld [vmem:[#allocation2 + $0x3dc] sm:$0xf] }
 0x334   :  { %v4554_v45 = vld [vmem:[#allocation2 + $0x4d8] sm:$0xf]  ;;  %v4299_v56 = vor.u32 %v5335_v44, %v4298_v0  ;;  %v2360_v10 = vadd.f32 %v2359_v6, %v2346_v2  ;;  %v4428_v0 = vld [vmem:[#allocation2 + $0x3f8] sm:$0xf0] }
 0x335   :  { %2624 = vmatpush.bf16.msra.mxu0 %v4651_v9  ;;  %2599 = vmatpush.bf16.msrb.mxu2 %v4107_v23  ;;  %v5399_v46 = vld [vmem:[#allocation2 + $0x4f4] sm:$0xf0]  ;;  %v2374_v30 = vpop.f32.mrf.mxu0  ;;  %v2845_v50 = vsub.f32 %v2829_v31, %v2837_v18  ;;  %v4431_v2 = vor.u32 %v5363_v42, %v4428_v0  ;;  %v5291_v5 = vld [vmem:[#allocation2 + $0x19c] sm:$0xf] }
 0x336   :  { %v4810_v52 = vld [vmem:[#allocation2 + $0x6d8] sm:$0xf]  ;;  %v4555_v57 = vor.u32 %v5399_v46, %v4554_v45  ;;  %v2373_v23 = vadd.f32 %v2372_v48, %v2360_v10  ;;  %v4684_v48 = vld [vmem:[#allocation2 + $0x5f8] sm:$0xf0] }
 0x337   :  { %2637 = vmatpush.bf16.msra.mxu1 %v4907_v20  ;;  %2612 = vmatpush.bf16.msrb.mxu3 %v4363_v28  ;;  %v5463_v54 = vld [vmem:[#allocation2 + $0x6f4] sm:$0xf0]  ;;  %v4396_v10 = vld [vmem:[#allocation2 + $0x3b8] sm:$0xf0] }
 0x338   :  { %v4010_v58 = vld [vmem:[#allocation2 + $0x98] sm:$0xf]  ;;  %v4811_v3 = vor.u32 %v5463_v54, %v4810_v52  ;;  %v6015_v34 = vadd.f32 %v2385_v61, %v2373_v23  ;;  %v5491_v61 = vld [vmem:[#allocation2 + $0x7dc] sm:$0xf] }
 0x339   :  { %2625 = vmatpush.bf16.msra.mxu0 %v4619_v29  ;;  %2600 = vmatpush.bf16.msrb.mxu2 %v4075_v36  ;;  %v5263_v59 = vld [vmem:[#allocation2 + $0xb4] sm:$0xf0]  ;;  %v4108_v30 = vld [vmem:[#allocation2 + $0x178] sm:$0xf0] }
 0x33a   :  { %v4266_v60 = vld [vmem:[#allocation2 + $0x298] sm:$0xf]  ;;  %v4011_v7 = vor.u32 %v5263_v59, %v4010_v58  ;;  %v2708_v44 = vsel %vm261_vm7, %v6015_v34, 0.0  ;;  %v2766_v45 = vmul.f32 %v6015_v34, %v6015_v34  ;;  %v5347_v18 = vld [vmem:[#allocation2 + $0x35c] sm:$0xf] }
 0x33b   :  { %2638 = vmatpush.bf16.msra.mxu1 %v4875_v33  ;;  %2613 = vmatpush.bf16.msrb.mxu3 %v4331_v39  ;;  %v5327_v62 = vld [vmem:[#allocation2 + $0x2b4] sm:$0xf0]  ;;  %v5299_v39 = vld [vmem:[#allocation2 + $0x1dc] sm:$0xf]  ;;  %v2348_v49 = vpop.f32.mrf.mxu2 }
 0x33c   :  { %v4522_v63 = vld [vmem:[#allocation2 + $0x498] sm:$0xf]  ;;  %v4267_v11 = vor.u32 %v5327_v62, %v4266_v60  ;;  %v2780_v58 = vsel %vm261_vm7, %v2766_v45, 0.0  ;;  %v4076_v45 = vld [vmem:[#allocation2 + $0x138] sm:$0xf0] }
 0x33d   :  { %2626 = vmatpush.bf16.msra.mxu0 %v4587_v40  ;;  %v5391_v1 = vld [vmem:[#allocation2 + $0x4b4] sm:$0xf0]  ;;  %2601 = vmatpush.bf16.msrb.mxu2 %v4043_v51  ;;  %v2387_v40 = vpop.f32.mrf.mxu1  ;;  %v2709_v51 = vrot.slane %v2708_v44, 4 }
 0x33e   :  { %v4778_v8 = vld [vmem:[#allocation2 + $0x698] sm:$0xf]  ;;  %v4523_v12 = vor.u32 %v5391_v1, %v4522_v63  ;;  %v2781_v63 = vrot.slane %v2780_v58, 4  ;;  %v4175_v1 = vor.u32 %v5299_v39, %v4172_v41  ;;  %v4876_v39 = vld [vmem:[#allocation2 + $0x778] sm:$0xf0] }
 0x33f   :  { %2639 = vmatpush.bf16.msra.mxu1 %v4843_v47  ;;  %v5455_v9 = vld [vmem:[#allocation2 + $0x6b4] sm:$0xf0]  ;;  %2614 = vmatpush.bf16.msrb.mxu3 %v4299_v56  ;;  %v5427_v47 = vld [vmem:[#allocation2 + $0x5dc] sm:$0xf]  ;;  %v2710_v62 = vadd.f32 %v2709_v51, %v2708_v44 }
 0x340   :  { %v3978_v15 = vld [vmem:[#allocation2 + $0x58] sm:$0xf]  ;;  %v4779_v24 = vor.u32 %v5455_v9, %v4778_v8  ;;  %v4687_v6 = vor.u32 %v5427_v47, %v4684_v48  ;;  %v4140_v8 = vld [vmem:[#allocation2 + $0x1b8] sm:$0xf0] }
 0x341   :  { %2627 = vmatpush.bf16.msra.mxu0 %v4555_v57  ;;  %v5255_v17 = vld [vmem:[#allocation2 + $0x74] sm:$0xf0]  ;;  %2602 = vmatpush.bf16.msrb.mxu2 %v4011_v7  ;;  %v2361_v57 = vpop.f32.mrf.mxu3  ;;  %v5355_v9 = vld [vmem:[#allocation2 + $0x39c] sm:$0xf] }
 0x342   :  { %v4234_v19 = vld [vmem:[#allocation2 + $0x258] sm:$0xf]  ;;  %v3979_v55 = vor.u32 %v5255_v17, %v3978_v15  ;;  %v2782_v15 = vadd.f32 %v2781_v63, %v2780_v58  ;;  %v5419_v17 = vld [vmem:[#allocation2 + $0x59c] sm:$0xf] }
 0x343   :  { %v5319_v20 = vld [vmem:[#allocation2 + $0x274] sm:$0xf0]  ;;  %2640 = vmatpush.bf16.msra.mxu1 %v4811_v3  ;;  %2615 = vmatpush.bf16.msrb.mxu3 %v4267_v11  ;;  %v4940_v3 = vld [vmem:[#allocation2 + $0x7f8] sm:$0xf0]  ;;  %v2853_v11 = vmax.f32 %v2845_v50, 0.0 }
 0x344   :  { %v4490_v21 = vld [vmem:[#allocation2 + $0x458] sm:$0xf]  ;;  %v4235_v35 = vor.u32 %v5319_v20, %v4234_v19  ;;  %v4652_v19 = vld [vmem:[#allocation2 + $0x5b8] sm:$0xf0]  ;;  %v4943_v20 = vor.u32 %v5491_v61, %v4940_v3 }
 0x345   :  { %v5383_v22 = vld [vmem:[#allocation2 + $0x474] sm:$0xf0]  ;;  %2628 = vmatpush.bf16.msra.mxu0 %v4523_v12  ;;  %2603 = vmatpush.bf16.msrb.mxu2 %v3979_v55  ;;  %v2711_v12 = vrot.slane %v2710_v62, 2  ;;  %v4655_v31 = vor.u32 %v5419_v17, %v4652_v19  ;;  %v4364_v55 = vld [vmem:[#allocation2 + $0x378] sm:$0xf0] }
 0x346   :  { %v4746_v25 = vld [vmem:[#allocation2 + $0x658] sm:$0xf]  ;;  %v4491_v36 = vor.u32 %v5383_v22, %v4490_v21  ;;  %v5483_v21 = vld [vmem:[#allocation2 + $0x79c] sm:$0xf]  ;;  %v4367_v0 = vor.u32 %v5347_v18, %v4364_v55 }
 0x347   :  { %v5447_v28 = vld [vmem:[#allocation2 + $0x674] sm:$0xf0]  ;;  %2641 = vmatpush.bf16.msra.mxu1 %v4779_v24  ;;  %2616 = vmatpush.bf16.msrb.mxu3 %v4235_v35  ;;  %v4908_v22 = vld [vmem:[#allocation2 + $0x7b8] sm:$0xf0]  ;;  %v2712_v23 = vadd.f32 %v2711_v12, %v2710_v62  ;;  %v2783_v24 = vrot.slane %v2782_v15, 2 }
 0x348   :  { %v3946_v29 = vld [vmem:[#allocation2 + $0x18] sm:$0xf]  ;;  %v4747_v46 = vor.u32 %v5447_v28, %v4746_v25  ;;  %v4143_v25 = vor.u32 %v5291_v5, %v4140_v8  ;;  %v4399_v28 = vor.u32 %v5355_v9, %v4396_v10  ;;  %v5275_v44 = vld [vmem:[#allocation2 + $0x11c] sm:$0xf] }
 0x349   :  { %v5247_v16 = vld [vmem:[#allocation2 + $0x34] sm:$0xf0]  ;;  %2629 = vmatpush.bf16.msra.mxu0 %v4491_v36  ;;  %v2784_v35 = vadd.f32 %v2783_v24, %v2782_v15  ;;  %v4620_v36 = vld [vmem:[#allocation2 + $0x578] sm:$0xf0] }
 0x34a   :  { %v4202_v32 = vld [vmem:[#allocation2 + $0x218] sm:$0xf]  ;;  %v3947_v52 = vor.u32 %v5247_v16, %v3946_v29  ;;  %v5283_v29 = vld [vmem:[#allocation2 + $0x15c] sm:$0xf] }
 0x34b   :  { %v5311_v33 = vld [vmem:[#allocation2 + $0x234] sm:$0xf0]  ;;  %2642 = vmatpush.bf16.msra.mxu1 %v4747_v46  ;;  %v5411_v16 = vld [vmem:[#allocation2 + $0x55c] sm:$0xf]  ;;  %v2785_v41 = vrot.slane %v2784_v35, 1  ;;  %v4111_v42 = vor.u32 %v5283_v29, %v4108_v30 }
 0x34c   :  { %v4458_v37 = vld [vmem:[#allocation2 + $0x418] sm:$0xf]  ;;  %v4203_v59 = vor.u32 %v5311_v33, %v4202_v32  ;;  %2604 = vmatpush.bf16.msrb.mxu2 %v3947_v52  ;;  %v6022_v32 = vadd.f32 1e-05, %v2853_v11  ;;  %v2713_v33 = vrot.slane %v2712_v23, 1  ;;  %v4623_v46 = vor.u32 %v5411_v16, %v4620_v36 }
 0x34d   :  { %v5375_v38 = vld [vmem:[#allocation2 + $0x434] sm:$0xf0]  ;;  %v5339_v47 = vld [vmem:[#allocation2 + $0x31c] sm:$0xf]  ;;  %v2786_v50 = vadd.f32 %v2785_v41, %v2784_v35  ;;  %v2424_v8 = vpop.f32.mrf.mxu0 }
 0x34e   :  { %v4714_v54 = vld [vmem:[#allocation2 + $0x618] sm:$0xf]  ;;  %v4459_v60 = vor.u32 %v5375_v38, %v4458_v37  ;;  %2617 = vmatpush.bf16.msrb.mxu3 %v4203_v59  ;;  %v4911_v37 = vor.u32 %v5483_v21, %v4908_v22  ;;  %v5475_v38 = vld [vmem:[#allocation2 + $0x75c] sm:$0xf]  ;;  %v2714_v40 = vadd.f32 %v2713_v33, %v2712_v23  ;;  %5588 = vrsqrt.f32 %v6022_v32 }
 0x34f   :  { %v5439_v56 = vld [vmem:[#allocation2 + $0x634] sm:$0xf0]  ;;  %2605 = vmatmul.bf16.vlgmr.msrb.gmra.mxu2 %v5970_v43  ;;  %v4332_v48 = vld [vmem:[#allocation2 + $0x338] sm:$0xf0]  ;;  %v2830_v57 = vmul.f32 %v2786_v50, %v5884_v26  ;;  %v2437_v21 = vpop.f32.mrf.mxu1  ;;  %v2398_v55 = vpop.f32.mrf.mxu2  ;;  %vm2875_vm13 = vweird.f32 %v6022_v32 }
 0x350   :  { %v4715_v7 = vor.u32 %v5439_v56, %v4714_v54  ;;  %2630 = vmatpush.bf16.msra.mxu0 %v4459_v60  ;;  %2649 = vmatpush.bf16.msra.mxu2 %v4175_v1  ;;  %v6030_v49 = vmul.f32 %v2714_v40, %v5884_v26  ;;  %v5403_v51 = vld [vmem:[#allocation2 + $0x51c] sm:$0xf]  ;;  %v4879_v54 = vor.u32 %v5475_v38, %v4876_v39 }
 0x351   :  { %2618 = vmatmul.bf16.vlgmr.msrb.gmra.mxu3 %v5972_v13  ;;  %v4588_v52 = vld [vmem:[#allocation2 + $0x538] sm:$0xf0]  ;;  %v4079_v56 = vor.u32 %v5275_v44, %v4076_v45  ;;  %v4335_v59 = vor.u32 %v5339_v47, %v4332_v48 }
 0x352   :  { %2662 = vmatpush.bf16.msra.mxu3 %v4431_v2  ;;  %2643 = vmatpush.bf16.msra.mxu1 %v4715_v7  ;;  %v2838_v58 = vmul.f32 %v6030_v49, %v6030_v49  ;;  %v5467_v60 = vld [vmem:[#allocation2 + $0x71c] sm:$0xf]  ;;  %v4591_v63 = vor.u32 %v5403_v51, %v4588_v52 }
 0x353   :  { %2631 = vmatmul.bf16.vlgmr.msra.gmra.mxu0 %v5974_v14  ;;  %v4844_v61 = vld [vmem:[#allocation2 + $0x738] sm:$0xf0] }
 0x354   :  { %2675 = vmatpush.bf16.msrb.mxu0 %v4687_v6  ;;  %2650 = vmatpush.bf16.msra.mxu2 %v4143_v25  ;;  %v5267_v62 = vld [vmem:[#allocation2 + $0xdc] sm:$0xf]  ;;  %v2846_v5 = vsub.f32 %v2830_v57, %v2838_v58  ;;  %v4847_v9 = vor.u32 %v5467_v60, %v4844_v61  ;;  %v6035_v11 = vpop.eup %5588 }
 0x355   :  { %2644 = vmatmul.bf16.vlgmr.msra.gmra.mxu1 %v5976_v27  ;;  %v4044_v1 = vld [vmem:[#allocation2 + $0xf8] sm:$0xf0]  ;;  %vm2876_vm14 = vweird.f32 %v6035_v11 }
 0x356   :  { %2688 = vmatpush.bf16.msrb.mxu1 %v4943_v20  ;;  %2663 = vmatpush.bf16.msra.mxu3 %v4399_v28  ;;  %v5331_v2 = vld [vmem:[#allocation2 + $0x2dc] sm:$0xf]  ;;  %v2854_v12 = vmax.f32 %v2846_v5, 0.0  ;;  %v4047_v15 = vor.u32 %v5267_v62, %v4044_v1  ;;  %vm2877_vm0 = vmor %vm2875_vm13, %vm2876_vm14 }
 0x357   :  { %v4300_v3 = vld [vmem:[#allocation2 + $0x2f8] sm:$0xf0]  ;;  %v2439_v58 = vpop.f32.mrf.mxu1 }
 0x358   :  { %2676 = vmatpush.bf16.msrb.mxu0 %v4655_v31  ;;  %2651 = vmatpush.bf16.msra.mxu2 %v4111_v42  ;;  %v5395_v6 = vld [vmem:[#allocation2 + $0x4dc] sm:$0xf]  ;;  %v4303_v17 = vor.u32 %v5331_v2, %v4300_v3  ;;  %v6037_v28 = vadd.f32 1e-05, %v2854_v12  ;;  %v2870_v31 = vmul.f32 %v6035_v11, %v6022_v32 }
 0x359   :  { %v4556_v7 = vld [vmem:[#allocation2 + $0x4f8] sm:$0xf0] }
 0x35a   :  { %2689 = vmatpush.bf16.msrb.mxu1 %v4911_v37  ;;  %2664 = vmatpush.bf16.msra.mxu3 %v4367_v0  ;;  %v5459_v10 = vld [vmem:[#allocation2 + $0x6dc] sm:$0xf]  ;;  %v4559_v22 = vor.u32 %v5395_v6, %v4556_v7  ;;  %5590 = vrsqrt.f32 %v6037_v28  ;;  %v2411_v37 = vpop.f32.mrf.mxu3  ;;  %v2871_v47 = vmul.f32 %v6035_v11, %v2870_v31  ;;  %vm2885_vm11 = vweird.f32 %v6037_v28 }
 0x35b   :  { %v4812_v19 = vld [vmem:[#allocation2 + $0x6f8] sm:$0xf0]  ;;  %v2412_v40 = vadd.f32 %v2411_v37, %v2398_v55 }
 0x35c   :  { %2677 = vmatpush.bf16.msrb.mxu0 %v4623_v46  ;;  %2652 = vmatpush.bf16.msra.mxu2 %v4079_v56  ;;  %v5259_v20 = vld [vmem:[#allocation2 + $0x9c] sm:$0xf]  ;;  %v4815_v18 = vor.u32 %v5459_v10, %v4812_v19  ;;  %v2426_v46 = vpop.f32.mrf.mxu0  ;;  %v2872_v6 = vmul.f32 0.5, %v2871_v47 }
 0x35d   :  { %v4012_v23 = vld [vmem:[#allocation2 + $0xb8] sm:$0xf0]  ;;  %v2425_v50 = vadd.f32 %v2424_v8, %v2412_v40 }
 0x35e   :  { %2690 = vmatpush.bf16.msrb.mxu1 %v4879_v54  ;;  %2665 = vmatpush.bf16.msra.mxu3 %v4335_v59  ;;  %v5323_v24 = vld [vmem:[#allocation2 + $0x29c] sm:$0xf]  ;;  %v4015_v16 = vor.u32 %v5259_v20, %v4012_v23  ;;  %v2873_v31 = vsub.f32 1.5, %v2872_v6 }
 0x35f   :  { %v4268_v25 = vld [vmem:[#allocation2 + $0x2b8] sm:$0xf0]  ;;  %v6043_v60 = vadd.f32 %v2437_v21, %v2425_v50 }
 0x360   :  { %2678 = vmatpush.bf16.msrb.mxu0 %v4591_v63  ;;  %v5387_v29 = vld [vmem:[#allocation2 + $0x49c] sm:$0xf]  ;;  %2653 = vmatpush.bf16.msra.mxu2 %v4047_v15  ;;  %v4271_v33 = vor.u32 %v5323_v24, %v4268_v25  ;;  %v5591_v1 = vpop.eup %5590  ;;  %v2400_v15 = vpop.f32.mrf.mxu2  ;;  %v2874_v37 = vmul.f32 %v6035_v11, %v2873_v31 }
 0x361   :  { %v4524_v30 = vld [vmem:[#allocation2 + $0x4b8] sm:$0xf0]  ;;  %v2880_v7 = vmul.f32 %v5591_v1, %v6037_v28  ;;  %v2715_v8 = vsel %vm261_vm7, %v6043_v60, 0.0  ;;  %vm2886_vm12 = vweird.f32 %v5591_v1 }
 0x362   :  { %2691 = vmatpush.bf16.msrb.mxu1 %v4847_v9  ;;  %2666 = vmatpush.bf16.msra.mxu3 %v4303_v17  ;;  %v5451_v35 = vld [vmem:[#allocation2 + $0x69c] sm:$0xf]  ;;  %v4527_v39 = vor.u32 %v5387_v29, %v4524_v30  ;;  %v2767_v9 = vmul.f32 %v6043_v60, %v6043_v60  ;;  %v2716_v17 = vrot.slane %v2715_v8, 4  ;;  %v2413_v21 = vpop.f32.mrf.mxu3  ;;  %vm2887_vm15 = vmor %vm2885_vm11, %vm2886_vm12 }
 0x363   :  { %v4780_v36 = vld [vmem:[#allocation2 + $0x6b8] sm:$0xf0] }
 0x364   :  { %v5251_v38 = vld [vmem:[#allocation2 + $0x5c] sm:$0xf]  ;;  %2679 = vmatpush.bf16.msrb.mxu0 %v4559_v22  ;;  %v4783_v48 = vor.u32 %v5451_v35, %v4780_v36  ;;  %2654 = vmatpush.bf16.msra.mxu2 %v4015_v16  ;;  %v2881_v22 = vmul.f32 %v5591_v1, %v2880_v7  ;;  %v2787_v23 = vsel %vm261_vm7, %v2767_v9, 0.0  ;;  %v2717_v25 = vadd.f32 %v2716_v17, %v2715_v8 }
 0x365   :  { %v3980_v41 = vld [vmem:[#allocation2 + $0x78] sm:$0xf0]  ;;  %v2788_v29 = vrot.slane %v2787_v23, 4 }
 0x366   :  { %v5315_v42 = vld [vmem:[#allocation2 + $0x25c] sm:$0xf]  ;;  %2692 = vmatpush.bf16.msrb.mxu1 %v4815_v18  ;;  %2667 = vmatpush.bf16.msra.mxu3 %v4271_v33  ;;  %v3983_v54 = vor.u32 %v5251_v38, %v3980_v41  ;;  %v2882_v18 = vmul.f32 0.5, %v2881_v22  ;;  %v2718_v55 = vrot.slane %v2717_v25, 2  ;;  %v2878_v41 = vsel %vm2877_vm0, %v6035_v11, %v2874_v37 }
 0x367   :  { %v4236_v0 = vld [vmem:[#allocation2 + $0x278] sm:$0xf0]  ;;  %v2789_v16 = vadd.f32 %v2788_v29, %v2787_v23 }
 0x368   :  { %v5379_v44 = vld [vmem:[#allocation2 + $0x45c] sm:$0xf]  ;;  %v4239_v56 = vor.u32 %v5315_v42, %v4236_v0  ;;  %2680 = vmatpush.bf16.msrb.mxu0 %v4527_v39  ;;  %2655 = vmatpush.bf16.msra.mxu2 %v3983_v54  ;;  %v2883_v33 = vsub.f32 1.5, %v2882_v18  ;;  %v2719_v35 = vadd.f32 %v2718_v55, %v2717_v25 }
 0x369   :  { %v4492_v45 = vld [vmem:[#allocation2 + $0x478] sm:$0xf0]  ;;  %v2790_v36 = vrot.slane %v2789_v16, 2 }
 0x36a   :  { %v5443_v51 = vld [vmem:[#allocation2 + $0x65c] sm:$0xf]  ;;  %v4495_v59 = vor.u32 %v5379_v44, %v4492_v45  ;;  %2693 = vmatpush.bf16.msrb.mxu1 %v4783_v48  ;;  %2668 = vmatpush.bf16.msra.mxu3 %v4239_v56  ;;  %v2884_v38 = vmul.f32 %v5591_v1, %v2883_v33  ;;  %v2720_v32 = vrot.slane %v2719_v35, 1 }
 0x36b   :  { %v4748_v52 = vld [vmem:[#allocation2 + $0x678] sm:$0xf0]  ;;  %v2791_v39 = vadd.f32 %v2790_v36, %v2789_v16 }
 0x36c   :  { %v5243_v57 = vld [vmem:[#allocation2 + $0x1c] sm:$0xf]  ;;  %v4751_v2 = vor.u32 %v5443_v51, %v4748_v52  ;;  %2681 = vmatpush.bf16.msrb.mxu0 %v4495_v59  ;;  %v2888_v28 = vsel %vm2887_vm15, %v5591_v1, %v2884_v38  ;;  %v2721_v0 = vadd.f32 %v2720_v32, %v2719_v35 }
 0x36d   :  { %v3948_v61 = vld [vmem:[#allocation2 + $0x38] sm:$0xf0]  ;;  %v2957_v40 = vrot.slane %v2888_v28, 7  ;;  %v2792_v44 = vrot.slane %v2791_v39, 1  ;;  %v2476_v45 = vpop.f32.mrf.mxu0 }
 0x36e   :  { %v5307_v62 = vld [vmem:[#allocation2 + $0x21c] sm:$0xf]  ;;  %v3951_v19 = vor.u32 %v5243_v57, %v3948_v61  ;;  %2694 = vmatpush.bf16.msrb.mxu1 %v4751_v2 }
 0x36f   :  { %v4204_v63 = vld [vmem:[#allocation2 + $0x238] sm:$0xf0]  ;;  %v6061_v42 = vsel %vm679_vm6, %v2878_v41, %v2957_v40  ;;  %v2489_v46 = vpop.f32.mrf.mxu1 }
 0x370   :  { %v5371_v3 = vld [vmem:[#allocation2 + $0x41c] sm:$0xf]  ;;  %v4207_v20 = vor.u32 %v5307_v62, %v4204_v63  ;;  %2656 = vmatpush.bf16.msra.mxu2 %v3951_v19 }
 0x371   :  { %v4460_v5 = vld [vmem:[#allocation2 + $0x438] sm:$0xf0] }
 0x372   :  { %v5435_v10 = vld [vmem:[#allocation2 + $0x61c] sm:$0xf]  ;;  %v4463_v24 = vor.u32 %v5371_v3, %v4460_v5  ;;  %2669 = vmatpush.bf16.msra.mxu3 %v4207_v20 }
 0x373   :  { %v4716_v12 = vld [vmem:[#allocation2 + $0x638] sm:$0xf0]  ;;  %2657 = vmatmul.bf16.vlgmr.msra.gmra.mxu2 %v5970_v43  ;;  %v6064_v43 = vmul.f32 %v2721_v0, %v5884_v26 }
 0x374   :  { %v4719_v30 = vor.u32 %v5435_v10, %v4716_v12  ;;  %2682 = vmatpush.bf16.msrb.mxu0 %v4463_v24 }
 0x375   :  { %2670 = vmatmul.bf16.vlgmr.msra.gmra.mxu3 %v5972_v13  ;;  %v2793_v13 = vadd.f32 %v2792_v44, %v2791_v39  ;;  %v2839_v48 = vmul.f32 %v6064_v43, %v6064_v43  ;;  %v2478_v51 = vpop.f32.mrf.mxu0 }
 0x376   :  { %2695 = vmatpush.bf16.msrb.mxu1 %v4719_v30 }
 0x377   :  { %2683 = vmatmul.bf16.vlgmr.msrb.gmra.mxu0 %v5974_v14  ;;  %v2450_v14 = vpop.f32.mrf.mxu2  ;;  %v2831_v47 = vmul.f32 %v2793_v13, %v5884_v26  ;;  %v2491_v56 = vpop.f32.mrf.mxu1 }
 0x379   :  { %2696 = vmatmul.bf16.vlgmr.msrb.gmra.mxu1 %v5976_v27  ;;  %v2463_v27 = vpop.f32.mrf.mxu3  ;;  %v2847_v52 = vsub.f32 %v2831_v47, %v2839_v48 }
 0x37a   :  { %v2464_v50 = vadd.f32 %v2463_v27, %v2450_v14 }
 0x37b   :  { %v2855_v61 = vmax.f32 %v2847_v52, 0.0 }
 0x37c   :  { %v2477_v11 = vadd.f32 %v2476_v45, %v2464_v50 }
 0x37d   :  { %v2863_v5 = vadd.f32 1e-05, %v2855_v61 }
 0x37e   :  { %v6069_v54 = vadd.f32 %v2489_v46, %v2477_v11 }
 0x37f   :  { %v2452_v59 = vpop.f32.mrf.mxu2  ;;  %5592 = vrsqrt.f32 %v2863_v5  ;;  %vm2895_vm1 = vweird.f32 %v2863_v5 }
 0x380   :  { %v2722_v57 = vsel %vm261_vm7, %v6069_v54, 0.0  ;;  %v2768_v58 = vmul.f32 %v6069_v54, %v6069_v54 }
 0x381   :  { %v2723_v62 = vrot.slane %v2722_v57, 4  ;;  %v2465_v63 = vpop.f32.mrf.mxu3 }
 0x382   :  { %v2794_v1 = vsel %vm261_vm7, %v2768_v58, 0.0 }
 0x383   :  { %v2724_v2 = vadd.f32 %v2723_v62, %v2722_v57  ;;  %v2795_v3 = vrot.slane %v2794_v1, 4 }
 0x385   :  { %v2725_v6 = vrot.slane %v2724_v2, 2  ;;  %v2796_v7 = vadd.f32 %v2795_v3, %v2794_v1  ;;  %v5593_v21 = vpop.eup %5592 }
 0x386   :  { %v2890_v29 = vmul.f32 %v5593_v21, %v2863_v5  ;;  %vm2896_vm2 = vweird.f32 %v5593_v21 }
 0x387   :  { %v2726_v8 = vadd.f32 %v2725_v6, %v2724_v2  ;;  %v2797_v9 = vrot.slane %v2796_v7, 2  ;;  %vm2897_vm5 = vmor %vm2895_vm1, %vm2896_vm2  ;;  %vm2967_vm1 = vcmask 1044484  }
 0x388   :  { %v2891_v55 = vmul.f32 %v5593_v21, %v2890_v29 }
 0x389   :  { %v2727_v10 = vrot.slane %v2726_v8, 1  ;;  %v2798_v12 = vadd.f32 %v2797_v9, %v2796_v7 }
 0x38a   :  { %v2892_v37 = vmul.f32 0.5, %v2891_v55 }
 0x38b   :  { %v2728_v15 = vadd.f32 %v2727_v10, %v2726_v8  ;;  %v2799_v17 = vrot.slane %v2798_v12, 1 }
 0x38c   :  { %v2893_v40 = vsub.f32 1.5, %v2892_v37 }
 0x38d   :  { %v6077_v19 = vmul.f32 %v2728_v15, %v5884_v26  ;;  %v2800_v20 = vadd.f32 %v2799_v17, %v2798_v12  ;;  %v2528_v25 = vpop.f32.mrf.mxu0 }
 0x38e   :  { %v2894_v50 = vmul.f32 %v5593_v21, %v2893_v40 }
 0x38f   :  { %v2832_v22 = vmul.f32 %v2800_v20, %v5884_v26  ;;  %v2840_v23 = vmul.f32 %v6077_v19, %v6077_v19  ;;  %v2541_v31 = vpop.f32.mrf.mxu1  ;;  %v2502_v16 = vpop.f32.mrf.mxu2 }
 0x390   :  { %v2898_v59 = vsel %vm2897_vm5, %v5593_v21, %v2894_v50 }
 0x391   :  { %v2848_v24 = vsub.f32 %v2832_v22, %v2840_v23  ;;  %v2515_v33 = vpop.f32.mrf.mxu3  ;;  %v2958_v2 = vrot.slane %v2898_v59, 6 }
 0x392   :  { %v2516_v35 = vadd.f32 %v2515_v33, %v2502_v16 }
 0x393   :  { %v2856_v30 = vmax.f32 %v2848_v24, 0.0 }
 0x394   :  { %v2529_v38 = vadd.f32 %v2528_v25, %v2516_v35 }
 0x395   :  { %v2864_v18 = vadd.f32 1e-05, %v2856_v30  ;;  %v2530_v36 = vpop.f32.mrf.mxu0 }
 0x396   :  { %v6082_v32 = vadd.f32 %v2541_v31, %v2529_v38 }
 0x397   :  { %5594 = vrsqrt.f32 %v2864_v18  ;;  %v2543_v28 = vpop.f32.mrf.mxu1  ;;  %v2504_v45 = vpop.f32.mrf.mxu2  ;;  %vm2905_vm3 = vweird.f32 %v2864_v18 }
 0x398   :  { %v2729_v0 = vsel %vm261_vm7, %v6082_v32, 0.0  ;;  %v2769_v44 = vmul.f32 %v6082_v32, %v6082_v32 }
 0x399   :  { %v2730_v13 = vrot.slane %v2729_v0, 4  ;;  %v2517_v46 = vpop.f32.mrf.mxu3 }
 0x39a   :  { %v2801_v47 = vsel %vm261_vm7, %v2769_v44, 0.0 }
 0x39b   :  { %v2731_v48 = vadd.f32 %v2730_v13, %v2729_v0  ;;  %v2802_v27 = vrot.slane %v2801_v47, 4 }
 0x39d   :  { %v5595_v39 = vpop.eup %5594  ;;  %v2732_v51 = vrot.slane %v2731_v48, 2  ;;  %v2803_v52 = vadd.f32 %v2802_v27, %v2801_v47 }
 0x39e   :  { %v2900_v41 = vmul.f32 %v5595_v39, %v2864_v18  ;;  %vm2906_vm4 = vweird.f32 %v5595_v39 }
 0x39f   :  { %vm2907_vm9 = vmor %vm2905_vm3, %vm2906_vm4  ;;  %v2733_v57 = vadd.f32 %v2732_v51, %v2731_v48  ;;  %v2804_v58 = vrot.slane %v2803_v52, 2 }
 0x3a0   :  { %v2901_v14 = vmul.f32 %v5595_v39, %v2900_v41 }
 0x3a1   :  { %v2734_v62 = vrot.slane %v2733_v57, 1  ;;  %v2805_v63 = vadd.f32 %v2804_v58, %v2803_v52 }
 0x3a2   :  { %v2902_v11 = vmul.f32 0.5, %v2901_v14 }
 0x3a3   :  { %v2735_v6 = vadd.f32 %v2734_v62, %v2733_v57  ;;  %v2806_v7 = vrot.slane %v2805_v63, 1 }
 0x3a4   :  { %v2903_v56 = vsub.f32 1.5, %v2902_v11 }
 0x3a5   :  { %v6095_v9 = vmul.f32 %v2735_v6, %v5884_v26  ;;  %v2807_v10 = vadd.f32 %v2806_v7, %v2805_v63 }
 0x3a6   :  { %v2904_v61 = vmul.f32 %v5595_v39, %v2903_v56 }
 0x3a7   :  { %v2833_v17 = vmul.f32 %v2807_v10, %v5884_v26  ;;  %v2841_v20 = vmul.f32 %v6095_v9, %v6095_v9 }
 0x3a8   :  { %v2908_v1 = vsel %vm2907_vm9, %v5595_v39, %v2904_v61 }
 0x3a9   :  { %v2959_v3 = vrot.slane %v2908_v1, 5  ;;  %v2849_v24 = vsub.f32 %v2833_v17, %v2841_v20 }
 0x3ab   :  { %v2965_v5 = vsel %vm681_vm8, %v2958_v2, %v2959_v3  ;;  %v2857_v31 = vmax.f32 %v2849_v24, 0.0 }
 0x3ac   :  { %v6092_v8 = vsel %vm683_vm10, %v6061_v42, %v2965_v5 }
 0x3ad   :  { %v2580_v12 = vpop.f32.mrf.mxu0  ;;  %v2865_v28 = vadd.f32 1e-05, %v2857_v31 }
 0x3af   :  { %v2593_v15 = vpop.f32.mrf.mxu1  ;;  %v2554_v21 = vpop.f32.mrf.mxu2  ;;  %5596 = vrsqrt.f32 %v2865_v28  ;;  %vm2915_vm11 = vweird.f32 %v2865_v28 }
 0x3b1   :  { %v2567_v22 = vpop.f32.mrf.mxu3 }
 0x3b2   :  { %v2568_v23 = vadd.f32 %v2567_v22, %v2554_v21 }
 0x3b4   :  { %v2581_v25 = vadd.f32 %v2580_v12, %v2568_v23 }
 0x3b5   :  { %v2582_v29 = vpop.f32.mrf.mxu0  ;;  %v5597_v48 = vpop.eup %5596 }
 0x3b6   :  { %v6100_v30 = vadd.f32 %v2593_v15, %v2581_v25  ;;  %v2910_v11 = vmul.f32 %v5597_v48, %v2865_v28  ;;  %vm2916_vm12 = vweird.f32 %v5597_v48 }
 0x3b7   :  { %v2595_v42 = vpop.f32.mrf.mxu1  ;;  %v2556_v16 = vpop.f32.mrf.mxu2  ;;  %vm2917_vm15 = vmor %vm2915_vm11, %vm2916_vm12  ;;  %vm2969_vm12 = vcmask 1046534  }
 0x3b8   :  { %v2736_v18 = vsel %vm261_vm7, %v6100_v30, 0.0  ;;  %v2770_v55 = vmul.f32 %v6100_v30, %v6100_v30  ;;  %v2911_v58 = vmul.f32 %v5597_v48, %v2910_v11 }
 0x3b9   :  { %v2737_v33 = vrot.slane %v2736_v18, 4  ;;  %v2569_v35 = vpop.f32.mrf.mxu3 }
 0x3ba   :  { %v2808_v36 = vsel %vm261_vm7, %v2770_v55, 0.0  ;;  %v2912_v1 = vmul.f32 0.5, %v2911_v58 }
 0x3bb   :  { %v2738_v37 = vadd.f32 %v2737_v33, %v2736_v18  ;;  %v2809_v38 = vrot.slane %v2808_v36, 4 }
 0x3bc   :  { %v2913_v10 = vsub.f32 1.5, %v2912_v1 }
 0x3bd   :  { %v2739_v39 = vrot.slane %v2738_v37, 2  ;;  %v2810_v40 = vadd.f32 %v2809_v38, %v2808_v36 }
 0x3be   :  { %v2914_v42 = vmul.f32 %v5597_v48, %v2913_v10 }
 0x3bf   :  { %v2740_v41 = vadd.f32 %v2739_v39, %v2738_v37  ;;  %v2811_v0 = vrot.slane %v2810_v40, 2 }
 0x3c0   :  { %v2918_v36 = vsel %vm2917_vm15, %v5597_v48, %v2914_v42 }
 0x3c1   :  { %v2741_v44 = vrot.slane %v2740_v41, 1  ;;  %v2812_v45 = vadd.f32 %v2811_v0, %v2810_v40  ;;  %v2960_v40 = vrot.slane %v2918_v36, 4 }
 0x3c3   :  { %v2742_v13 = vadd.f32 %v2741_v44, %v2740_v41  ;;  %v2813_v46 = vrot.slane %v2812_v45, 1 }
 0x3c5   :  { %v6108_v14 = vmul.f32 %v2742_v13, %v5884_v26  ;;  %v2814_v47 = vadd.f32 %v2813_v46, %v2812_v45 }
 0x3c7   :  { %v2834_v27 = vmul.f32 %v2814_v47, %v5884_v26  ;;  %v2842_v50 = vmul.f32 %v6108_v14, %v6108_v14 }
 0x3c9   :  { %v2850_v51 = vsub.f32 %v2834_v27, %v2842_v50 }
 0x3cb   :  { %v2858_v56 = vmax.f32 %v2850_v51, 0.0 }
 0x3cd   :  { %v2866_v59 = vadd.f32 1e-05, %v2858_v56 }
 0x3cf   :  { %5598 = vrsqrt.f32 %v2866_v59  ;;  %vm2925_vm13 = vweird.f32 %v2866_v59 }
 0x3d0   :  { %v2632_v52 = vpop.f32.mrf.mxu0 }
 0x3d2   :  { %v2645_v57 = vpop.f32.mrf.mxu1  ;;  %v2606_v61 = vpop.f32.mrf.mxu2 }
 0x3d4   :  { %v2619_v62 = vpop.f32.mrf.mxu3 }
 0x3d5   :  { %v2620_v63 = vadd.f32 %v2619_v62, %v2606_v61  ;;  %v5599_v7 = vpop.eup %5598 }
 0x3d6   :  { %v2920_v17 = vmul.f32 %v5599_v7, %v2866_v59  ;;  %vm2926_vm14 = vweird.f32 %v5599_v7 }
 0x3d7   :  { %v2633_v2 = vadd.f32 %v2632_v52, %v2620_v63  ;;  %vm2927_vm0 = vmor %vm2925_vm13, %vm2926_vm14  ;;  %vm2971_vm13 = vcmask 1045508  }
 0x3d8   :  { %v2634_v3 = vpop.f32.mrf.mxu0  ;;  %v2921_v24 = vmul.f32 %v5599_v7, %v2920_v17 }
 0x3d9   :  { %v6113_v5 = vadd.f32 %v2645_v57, %v2633_v2 }
 0x3da   :  { %v2647_v6 = vpop.f32.mrf.mxu1  ;;  %v2608_v21 = vpop.f32.mrf.mxu2  ;;  %v2922_v31 = vmul.f32 0.5, %v2921_v24 }
 0x3db   :  { %v2743_v12 = vsel %vm261_vm7, %v6113_v5, 0.0  ;;  %v2771_v15 = vmul.f32 %v6113_v5, %v6113_v5 }
 0x3dc   :  { %v2744_v20 = vrot.slane %v2743_v12, 4  ;;  %v2621_v22 = vpop.f32.mrf.mxu3  ;;  %v2923_v16 = vsub.f32 1.5, %v2922_v31 }
 0x3dd   :  { %v2815_v23 = vsel %vm261_vm7, %v2771_v15, 0.0 }
 0x3de   :  { %v2745_v25 = vadd.f32 %v2744_v20, %v2743_v12  ;;  %v2816_v29 = vrot.slane %v2815_v23, 4  ;;  %v2924_v37 = vmul.f32 %v5599_v7, %v2923_v16 }
 0x3e0   :  { %v2746_v18 = vrot.slane %v2745_v25, 2  ;;  %v2817_v55 = vadd.f32 %v2816_v29, %v2815_v23  ;;  %v2928_v38 = vsel %vm2927_vm0, %v5599_v7, %v2924_v37 }
 0x3e1   :  { %v2961_v41 = vrot.slane %v2928_v38, 3 }
 0x3e2   :  { %v2747_v33 = vadd.f32 %v2746_v18, %v2745_v25  ;;  %v2818_v35 = vrot.slane %v2817_v55, 2 }
 0x3e3   :  { %v6121_v0 = vsel %vm2967_vm1, %v2960_v40, %v2961_v41 }
 0x3e4   :  { %v2748_v28 = vrot.slane %v2747_v33, 1  ;;  %v2819_v39 = vadd.f32 %v2818_v35, %v2817_v55 }
 0x3e6   :  { %v2749_v44 = vadd.f32 %v2748_v28, %v2747_v33  ;;  %v2820_v45 = vrot.slane %v2819_v39, 1 }
 0x3e8   :  { %v6124_v46 = vmul.f32 %v2749_v44, %v5884_v26  ;;  %v2821_v47 = vadd.f32 %v2820_v45, %v2819_v39 }
 0x3ea   :  { %v2835_v48 = vmul.f32 %v2821_v47, %v5884_v26  ;;  %v2843_v11 = vmul.f32 %v6124_v46, %v6124_v46 }
 0x3ec   :  { %v2851_v58 = vsub.f32 %v2835_v48, %v2843_v11  ;;  %v742_v48 = vld [vmem:[#allocation13 + $0x6] ss:$8 sm:$0xf] }
 0x3ed   :  { %v743_v11 = vld [vmem:[#allocation13 + $0x6] ss:$8 sm:$0xf0] }
 0x3ee   :  { %v2859_v2 = vmax.f32 %v2851_v58, 0.0 }
 0x3f0   :  { %v2867_v15 = vadd.f32 1e-05, %v2859_v2 }
 0x3f2   :  { %5600 = vrsqrt.f32 %v2867_v15  ;;  %vm2935_vm2 = vweird.f32 %v2867_v15 }
 0x3f4   :  { %v2684_v13 = vpop.f32.mrf.mxu0 }
 0x3f6   :  { %v2697_v27 = vpop.f32.mrf.mxu1  ;;  %v2658_v50 = vpop.f32.mrf.mxu2 }
 0x3f8   :  { %v2671_v51 = vpop.f32.mrf.mxu3  ;;  %v5601_v18 = vpop.eup %5600 }
 0x3f9   :  { %v2672_v52 = vadd.f32 %v2671_v51, %v2658_v50  ;;  %v2930_v35 = vmul.f32 %v5601_v18, %v2867_v15  ;;  %vm2936_vm3 = vweird.f32 %v5601_v18 }
 0x3fa   :  { %vm2937_vm5 = vmor %vm2935_vm2, %vm2936_vm3 }
 0x3fb   :  { %v2685_v57 = vadd.f32 %v2684_v13, %v2672_v52  ;;  %v2931_v38 = vmul.f32 %v5601_v18, %v2930_v35 }
 0x3fc   :  { %v2686_v56 = vpop.f32.mrf.mxu0 }
 0x3fd   :  { %v6129_v61 = vadd.f32 %v2697_v27, %v2685_v57  ;;  %v2932_v28 = vmul.f32 0.5, %v2931_v38  ;;  %v744_v57 = vor.u32 %v743_v11, %v742_v48 }
 0x3fe   :  { %v2699_v59 = vpop.f32.mrf.mxu1  ;;  %v2660_v1 = vpop.f32.mrf.mxu2 }
 0x3ff   :  { %v2750_v62 = vsel %vm261_vm7, %v6129_v61, 0.0  ;;  %v2772_v63 = vmul.f32 %v6129_v61, %v6129_v61  ;;  %v2933_v40 = vsub.f32 1.5, %v2932_v28  ;;  %v746_v59 = vld [vmem:[#allocation13 + $0x7] ss:$8 sm:$0xf] }
 0x400   :  { %v2751_v3 = vrot.slane %v2750_v62, 4  ;;  %v2673_v6 = vpop.f32.mrf.mxu3 }
 0x401   :  { %v2822_v7 = vsel %vm261_vm7, %v2772_v63, 0.0  ;;  %v2934_v45 = vmul.f32 %v5601_v18, %v2933_v40 }
 0x402   :  { %v2752_v10 = vadd.f32 %v2751_v3, %v2750_v62  ;;  %v2823_v12 = vrot.slane %v2822_v7, 4  ;;  %v747_v62 = vld [vmem:[#allocation13 + $0x7] ss:$8 sm:$0xf0] }
 0x403   :  { %v2938_v27 = vsel %vm2937_vm5, %v5601_v18, %v2934_v45  ;;  %v748_v3 = vor.u32 %v747_v62, %v746_v59 }
 0x404   :  { %v2753_v17 = vrot.slane %v2752_v10, 2  ;;  %v2824_v20 = vadd.f32 %v2823_v12, %v2822_v7  ;;  %v2962_v52 = vrot.slane %v2938_v27, 2 }
 0x406   :  { %v2754_v21 = vadd.f32 %v2753_v17, %v2752_v10  ;;  %v2825_v22 = vrot.slane %v2824_v20, 2 }
 0x408   :  { %v2755_v23 = vrot.slane %v2754_v21, 1  ;;  %v2826_v24 = vadd.f32 %v2825_v22, %v2824_v20 }
 0x40a   :  { %v2756_v25 = vadd.f32 %v2755_v23, %v2754_v21  ;;  %v2827_v29 = vrot.slane %v2826_v24, 1 }
 0x40c   :  { %v2764_v42 = vmul.f32 %v2756_v25, %v5884_v26  ;;  %v2828_v31 = vadd.f32 %v2827_v29, %v2826_v24 }
 0x40e   :  { %v2836_v55 = vmul.f32 %v2828_v31, %v5884_v26  ;;  %v2844_v16 = vmul.f32 %v2764_v42, %v2764_v42 }
 0x410   :  { %v2852_v33 = vsub.f32 %v2836_v55, %v2844_v16 }
 0x412   :  { %v2860_v36 = vmax.f32 %v2852_v33, 0.0 }
 0x414   :  { %v2868_v37 = vadd.f32 1e-05, %v2860_v36 }
 0x416   :  { %5602 = vrsqrt.f32 %v2868_v37  ;;  %vm2945_vm9 = vweird.f32 %v2868_v37 }
 0x41c   :  { %v5603_v39 = vpop.eup %5602 }
 0x41d   :  { %v2940_v41 = vmul.f32 %v5603_v39, %v2868_v37  ;;  %vm2946_vm4 = vweird.f32 %v5603_v39 }
 0x41e   :  { %vm2947_vm11 = vmor %vm2945_vm9, %vm2946_vm4 }
 0x41f   :  { %v2941_v44 = vmul.f32 %v5603_v39, %v2940_v41 }
 0x421   :  { %v2942_v13 = vmul.f32 0.5, %v2941_v44 }
 0x423   :  { %v2943_v47 = vsub.f32 1.5, %v2942_v13 }
 0x425   :  { %v2944_v50 = vmul.f32 %v5603_v39, %v2943_v47 }
 0x427   :  { %v2948_v51 = vsel %vm2947_vm11, %v5603_v39, %v2944_v50 }
 0x428   :  { %v2963_v56 = vrot.slane %v2948_v51, 1 }
 0x42a   :  { %v2970_v58 = vsel %vm2969_vm12, %v2962_v52, %v2963_v56 }
 0x42b   :  { %v2972_v63 = vsel %vm2971_vm13, %v6121_v0, %v2970_v58 }
 0x42c   :  { %v2973_v1 = vsel %vm261_vm7, %v6092_v8, %v2972_v63 }
 0x42d   :  { %v2975_v2 = vmul.f32 %v2973_v1, %v744_v57 }
 0x42f   :  { %v2977_v6 = vperm.slane %v2975_v2, 0  ;;  %v2978_v7 = vperm.slane %v2975_v2, 1  ;;  %v2979_v10 = vperm.slane %v2975_v2, 2  ;;  %v2980_v12 = vperm.slane %v2975_v2, 3 }
 0x430   :  { %v2981_v15 = vperm.slane %v2975_v2, 4  ;;  %v2982_v17 = vperm.slane %v2975_v2, 5  ;;  %v2983_v20 = vperm.slane %v2975_v2, 6  ;;  %v2984_v21 = vperm.slane %v2975_v2, 7 }
 0x431   :  { %v2993_v22 = vmul.f32 %v2977_v6, %v6010_v4  ;;  %v2994_v23 = vmul.f32 %v2978_v7, %v6030_v49  ;;  %v2995_v24 = vmul.f32 %v2979_v10, %v6064_v43  ;;  %v2996_v0 = vmul.f32 %v2980_v12, %v6077_v19 }
 0x432   :  { %v2997_v8 = vmul.f32 %v2981_v15, %v6095_v9  ;;  %v2998_v25 = vmul.f32 %v2982_v17, %v6108_v14  ;;  %v2999_v29 = vmul.f32 %v2983_v20, %v6124_v46  ;;  %v3000_v31 = vmul.f32 %v2984_v21, %v2764_v42 }
 0x433   :  { %v3009_v18 = vrot.slane %v2994_v23, 7  ;;  %v3010_v55 = vrot.slane %v2995_v24, 6  ;;  %v3011_v16 = vrot.slane %v2996_v0, 5  ;;  %v3025_v33 = vmul.f32 %v2977_v6, %v5998_v53 }
 0x434   :  { %v3012_v35 = vrot.slane %v2997_v8, 4  ;;  %v3013_v4 = vrot.slane %v2998_v25, 3  ;;  %v3014_v36 = vrot.slane %v2999_v29, 2  ;;  %v3015_v49 = vrot.slane %v3000_v31, 1 }
 0x435   :  { %v3016_v43 = vsel %vm679_vm6, %v2993_v22, %v3009_v18  ;;  %v3017_v19 = vsel %vm681_vm8, %v3010_v55, %v3011_v16  ;;  %v3026_v9 = vmul.f32 %v2978_v7, %v6015_v34  ;;  %v3027_v14 = vmul.f32 %v2979_v10, %v6043_v60 }
 0x436   :  { %v3018_v46 = vsel %vm683_vm10, %v3016_v43, %v3017_v19  ;;  %v3019_v42 = vsel %vm2967_vm1, %v3012_v35, %v3013_v4  ;;  %v3020_v37 = vsel %vm2969_vm12, %v3014_v36, %v3015_v49  ;;  %v3028_v53 = vmul.f32 %v2980_v12, %v6069_v54 }
 0x437   :  { %v3021_v38 = vsel %vm2971_vm13, %v3019_v42, %v3020_v37  ;;  %v3029_v28 = vmul.f32 %v2981_v15, %v6082_v32  ;;  %v3030_v39 = vmul.f32 %v2982_v17, %v6100_v30  ;;  %v3031_v34 = vmul.f32 %v2983_v20, %v6113_v5 }
 0x438   :  { %v3022_v40 = vsel %vm261_vm7, %v3018_v46, %v3021_v38  ;;  %v3032_v60 = vmul.f32 %v2984_v21, %v6129_v61 }
 0x439   :  { %v3024_v41 = vsub.f32 %v748_v3, %v3022_v40 }
 0x43b   :  { %v3034_v44 = vperm.slane %v3024_v41, 0  ;;  %v3035_v45 = vperm.slane %v3024_v41, 1  ;;  %v3036_v13 = vperm.slane %v3024_v41, 2  ;;  %v3037_v47 = vperm.slane %v3024_v41, 3 }
 0x43c   :  { %v3038_v27 = vperm.slane %v3024_v41, 4  ;;  %v3039_v50 = vperm.slane %v3024_v41, 5  ;;  %v3040_v54 = vperm.slane %v3024_v41, 6  ;;  %v3041_v48 = vperm.slane %v3024_v41, 7 }
 0x43d   :  { %v3050_v11 = vadd.f32 %v3034_v44, %v3025_v33  ;;  %v3051_v51 = vadd.f32 %v3035_v45, %v3026_v9  ;;  %v3052_v32 = vadd.f32 %v3036_v13, %v3027_v14  ;;  %v3053_v52 = vadd.f32 %v3037_v47, %v3028_v53 }
 0x43e   :  { %v3054_v30 = vadd.f32 %v3038_v27, %v3029_v28  ;;  %v3055_v56 = vadd.f32 %v3039_v50, %v3030_v39  ;;  %v3056_v57 = vadd.f32 %v3040_v54, %v3031_v34  ;;  %v3057_v58 = vadd.f32 %v3041_v48, %v3032_v60 }
 0x43f   :  { %v3058_v59 = vmax.f32 %v3050_v11, 0.0  ;;  %v3059_v5 = vmax.f32 %v3051_v51, 0.0  ;;  %v3060_v62 = vmax.f32 %v3052_v32, 0.0  ;;  %v3061_v61 = vmax.f32 %v3053_v52, 0.0 }
 0x440   :  { %v3062_v63 = vmax.f32 %v3054_v30, 0.0  ;;  %v3063_v1 = vmax.f32 %v3055_v56, 0.0  ;;  %v3064_v2 = vmax.f32 %v3056_v57, 0.0  ;;  %v3065_v3 = vmax.f32 %v3057_v58, 0.0 }
 0x441   :  { %v6165_v6 = vpack.c.bf16 %v3058_v59, %v3058_v59  ;;  %v6167_v7 = vpack.c.bf16 %v3059_v5, %v3059_v5  ;;  %v6169_v10 = vpack.c.bf16 %v3060_v62, %v3060_v62  ;;  %v6171_v12 = vpack.c.bf16 %v3061_v61, %v3061_v61 }
 0x442   :  { %v6173_v15 = vpack.c.bf16 %v3062_v63, %v3062_v63  ;;  %v6175_v17 = vpack.c.bf16 %v3063_v1, %v3063_v1  ;;  %v6177_v20 = vpack.c.bf16 %v3064_v2, %v3064_v2  ;;  %v6179_v21 = vpack.c.bf16 %v3065_v3, %v3065_v3 }
 0x443   :  { %5806 = dma.done.wait [#allocation4 + $0x1], 8192 }
 0x444   :  { %5807 = vsyncadd [#allocation4 + $0x1], 4294959104  ;;  %v5503_v22 = vld [vmem:[#allocation3 + $0x38] sm:$0xff]  ;;  %v5502_v8 = vld [vmem:[#allocation3 + $0x30] sm:$0xff]  ;;  %s5823_s5 = smov [#allocation14]   ;;  %s3741_s14 = sshll.u32 %s6203_s7, 4  ;;  %s3742_s14 = int_to_ptr.hbm [resolvable:$true] %s3741_s14 }
 0x445   :  { %v5511_v23 = vld [vmem:[#allocation3 + $0x78] sm:$0xff]  ;;  %3592 = vmatpush.bf16.msrb.mxu2 %v5503_v22  ;;  %v5510_v25 = vld [vmem:[#allocation3 + $0x70] sm:$0xff]  ;;  %v5501_v18 = vld [vmem:[#allocation3 + $0x28] sm:$0xff]  ;;  %s3739_s6 = sshll.u32 %s5823_s5, 4  ;;  %s3740_s6 = int_to_ptr.vmem [resolvable:$true] %s3739_s6 }
 0x446   :  { %v5519_v24 = vld [vmem:[#allocation3 + $0xb8] sm:$0xff]  ;;  %3605 = vmatpush.bf16.msrb.mxu3 %v5511_v23  ;;  %v5518_v29 = vld [vmem:[#allocation3 + $0xb0] sm:$0xff]  ;;  %v5509_v55 = vld [vmem:[#allocation3 + $0x68] sm:$0xff] }
 0x447   :  { %v5527_v0 = vld [vmem:[#allocation3 + $0xf8] sm:$0xff]  ;;  %3618 = vmatpush.bf16.msra.mxu0 %v5519_v24  ;;  %v5526_v31 = vld [vmem:[#allocation3 + $0xf0] sm:$0xff]  ;;  %v5517_v16 = vld [vmem:[#allocation3 + $0xa8] sm:$0xff] }
 0x448   :  { %3631 = vmatpush.bf16.msra.mxu1 %v5527_v0  ;;  %v5525_v33 = vld [vmem:[#allocation3 + $0xe8] sm:$0xff]  ;;  %v5500_v35 = vld [vmem:[#allocation3 + $0x20] sm:$0xff]  ;;  %v5499_v43 = vld [vmem:[#allocation3 + $0x18] sm:$0xff] }
 0x449   :  { %3593 = vmatpush.bf16.msrb.mxu2 %v5502_v8  ;;  %v5508_v4 = vld [vmem:[#allocation3 + $0x60] sm:$0xff]  ;;  %v5507_v19 = vld [vmem:[#allocation3 + $0x58] sm:$0xff]  ;;  %v5498_v46 = vld [vmem:[#allocation3 + $0x10] sm:$0xff] }
 0x44a   :  { %3606 = vmatpush.bf16.msrb.mxu3 %v5510_v25  ;;  %v5516_v36 = vld [vmem:[#allocation3 + $0xa0] sm:$0xff]  ;;  %v5515_v9 = vld [vmem:[#allocation3 + $0x98] sm:$0xff]  ;;  %v5506_v42 = vld [vmem:[#allocation3 + $0x50] sm:$0xff] }
 0x44b   :  { %3619 = vmatpush.bf16.msra.mxu0 %v5518_v29  ;;  %v5524_v49 = vld [vmem:[#allocation3 + $0xe0] sm:$0xff]  ;;  %v5523_v14 = vld [vmem:[#allocation3 + $0xd8] sm:$0xff]  ;;  %v5514_v37 = vld [vmem:[#allocation3 + $0x90] sm:$0xff] }
 0x44c   :  { %3632 = vmatpush.bf16.msra.mxu1 %v5526_v31  ;;  %v5522_v53 = vld [vmem:[#allocation3 + $0xd0] sm:$0xff]  ;;  %v5497_v38 = vld [vmem:[#allocation3 + $0x8] sm:$0xff]  ;;  %v5496_v41 = vld [vmem:[#allocation3] sm:$0xff] }
 0x44d   :  { %3594 = vmatpush.bf16.msrb.mxu2 %v5501_v18  ;;  %v5505_v28 = vld [vmem:[#allocation3 + $0x48] sm:$0xff]  ;;  %v5504_v34 = vld [vmem:[#allocation3 + $0x40] sm:$0xff]  ;;  %v5535_v60 = vld [vmem:[#allocation3 + $0x138] sm:$0xff] }
 0x44e   :  { %3607 = vmatpush.bf16.msrb.mxu3 %v5509_v55  ;;  %v5513_v39 = vld [vmem:[#allocation3 + $0x88] sm:$0xff]  ;;  %v5543_v44 = vld [vmem:[#allocation3 + $0x178] sm:$0xff]  ;;  %v5512_v45 = vld [vmem:[#allocation3 + $0x80] sm:$0xff] }
 0x44f   :  { %3620 = vmatpush.bf16.msra.mxu0 %v5517_v16  ;;  %v5521_v40 = vld [vmem:[#allocation3 + $0xc8] sm:$0xff]  ;;  %v5520_v13 = vld [vmem:[#allocation3 + $0xc0] sm:$0xff]  ;;  %v5551_v47 = vld [vmem:[#allocation3 + $0x1b8] sm:$0xff] }
 0x450   :  { %3633 = vmatpush.bf16.msra.mxu1 %v5525_v33  ;;  %v5559_v27 = vld [vmem:[#allocation3 + $0x1f8] sm:$0xff]  ;;  %v5534_v50 = vld [vmem:[#allocation3 + $0x130] sm:$0xff]  ;;  %v5533_v51 = vld [vmem:[#allocation3 + $0x128] sm:$0xff] }
 0x451   :  { %3595 = vmatpush.bf16.msrb.mxu2 %v5500_v35  ;;  %v5542_v54 = vld [vmem:[#allocation3 + $0x170] sm:$0xff]  ;;  %v5541_v32 = vld [vmem:[#allocation3 + $0x168] sm:$0xff]  ;;  %v5532_v56 = vld [vmem:[#allocation3 + $0x120] sm:$0xff] }
 0x452   :  { %3608 = vmatpush.bf16.msrb.mxu3 %v5508_v4  ;;  %v5550_v48 = vld [vmem:[#allocation3 + $0x1b0] sm:$0xff]  ;;  %v5549_v52 = vld [vmem:[#allocation3 + $0x1a8] sm:$0xff]  ;;  %v5540_v57 = vld [vmem:[#allocation3 + $0x160] sm:$0xff] }
 0x453   :  { %3621 = vmatpush.bf16.msra.mxu0 %v5516_v36  ;;  %v5558_v11 = vld [vmem:[#allocation3 + $0x1f0] sm:$0xff]  ;;  %v5557_v30 = vld [vmem:[#allocation3 + $0x1e8] sm:$0xff]  ;;  %v5548_v58 = vld [vmem:[#allocation3 + $0x1a0] sm:$0xff] }
 0x454   :  { %3634 = vmatpush.bf16.msra.mxu1 %v5524_v49  ;;  %v5556_v59 = vld [vmem:[#allocation3 + $0x1e0] sm:$0xff]  ;;  %v5531_v5 = vld [vmem:[#allocation3 + $0x118] sm:$0xff]  ;;  %v5530_v1 = vld [vmem:[#allocation3 + $0x110] sm:$0xff] }
 0x455   :  { %3596 = vmatpush.bf16.msrb.mxu2 %v5499_v43  ;;  %v5539_v62 = vld [vmem:[#allocation3 + $0x158] sm:$0xff]  ;;  %v5538_v2 = vld [vmem:[#allocation3 + $0x150] sm:$0xff]  ;;  %v5553_v22 = vld [vmem:[#allocation3 + $0x1c8] sm:$0xff] }
 0x456   :  { %3609 = vmatpush.bf16.msrb.mxu3 %v5507_v19  ;;  %v5547_v61 = vld [vmem:[#allocation3 + $0x198] sm:$0xff]  ;;  %v5546_v3 = vld [vmem:[#allocation3 + $0x190] sm:$0xff]  ;;  %v5528_v23 = vld [vmem:[#allocation3 + $0x100] sm:$0xff] }
 0x457   :  { %3622 = vmatpush.bf16.msra.mxu0 %v5515_v9  ;;  %v5555_v63 = vld [vmem:[#allocation3 + $0x1d8] sm:$0xff]  ;;  %v5536_v24 = vld [vmem:[#allocation3 + $0x140] sm:$0xff] }
 0x458   :  { %3635 = vmatpush.bf16.msra.mxu1 %v5523_v14  ;;  %v5544_v0 = vld [vmem:[#allocation3 + $0x180] sm:$0xff] }
 0x459   :  { %3597 = vmatpush.bf16.msrb.mxu2 %v5498_v46  ;;  %v5552_v8 = vld [vmem:[#allocation3 + $0x1c0] sm:$0xff] }
 0x45a   :  { %3610 = vmatpush.bf16.msrb.mxu3 %v5506_v42 }
 0x45b   :  { %3623 = vmatpush.bf16.msra.mxu0 %v5514_v37 }
 0x45c   :  { %3636 = vmatpush.bf16.msra.mxu1 %v5522_v53 }
 0x45d   :  { %3598 = vmatpush.bf16.msrb.mxu2 %v5497_v38 }
 0x45e   :  { %3611 = vmatpush.bf16.msrb.mxu3 %v5505_v28 }
 0x45f   :  { %3624 = vmatpush.bf16.msra.mxu0 %v5513_v39 }
 0x460   :  { %3637 = vmatpush.bf16.msra.mxu1 %v5521_v40 }
 0x461   :  { %3599 = vmatpush.bf16.msrb.mxu2 %v5496_v41 }
 0x462   :  { %3612 = vmatpush.bf16.msrb.mxu3 %v5504_v34 }
 0x463   :  { %3625 = vmatpush.bf16.msra.mxu0 %v5512_v45 }
 0x464   :  { %3638 = vmatpush.bf16.msra.mxu1 %v5520_v13  ;;  %3600 = vmatmul.bf16.vlgmr.msrb.gmra.mxu2 %v6165_v6  ;;  %v5554_v6 = vld [vmem:[#allocation3 + $0x1d0] sm:$0xff] }
 0x465   :  { %3644 = vmatpush.bf16.msra.mxu2 %v5535_v60  ;;  %3613 = vmatmul.bf16.vlgmr.msrb.gmra.mxu3 %v6167_v7  ;;  %v5529_v7 = vld [vmem:[#allocation3 + $0x108] sm:$0xff] }
 0x466   :  { %3657 = vmatpush.bf16.msra.mxu3 %v5543_v44  ;;  %3626 = vmatmul.bf16.vlgmr.msra.gmra.mxu0 %v6169_v10  ;;  %v5537_v10 = vld [vmem:[#allocation3 + $0x148] sm:$0xff] }
 0x467   :  { %3670 = vmatpush.bf16.msrb.mxu0 %v5551_v47  ;;  %3639 = vmatmul.bf16.vlgmr.msra.gmra.mxu1 %v6171_v12  ;;  %v5545_v12 = vld [vmem:[#allocation3 + $0x188] sm:$0xff] }
 0x468   :  { %3683 = vmatpush.bf16.msrb.mxu1 %v5559_v27 }
 0x469   :  { %3645 = vmatpush.bf16.msra.mxu2 %v5534_v50 }
 0x46a   :  { %3658 = vmatpush.bf16.msra.mxu3 %v5542_v54 }
 0x46b   :  { %3671 = vmatpush.bf16.msrb.mxu0 %v5550_v48 }
 0x46c   :  { %3684 = vmatpush.bf16.msrb.mxu1 %v5558_v11 }
 0x46d   :  { %3646 = vmatpush.bf16.msra.mxu2 %v5533_v51 }
 0x46e   :  { %3659 = vmatpush.bf16.msra.mxu3 %v5541_v32 }
 0x46f   :  { %3672 = vmatpush.bf16.msrb.mxu0 %v5549_v52 }
 0x470   :  { %3685 = vmatpush.bf16.msrb.mxu1 %v5557_v30 }
 0x471   :  { %3647 = vmatpush.bf16.msra.mxu2 %v5532_v56 }
 0x472   :  { %3660 = vmatpush.bf16.msra.mxu3 %v5540_v57 }
 0x473   :  { %3673 = vmatpush.bf16.msrb.mxu0 %v5548_v58 }
 0x474   :  { %3686 = vmatpush.bf16.msrb.mxu1 %v5556_v59 }
 0x475   :  { %3648 = vmatpush.bf16.msra.mxu2 %v5531_v5 }
 0x476   :  { %3661 = vmatpush.bf16.msra.mxu3 %v5539_v62 }
 0x477   :  { %3674 = vmatpush.bf16.msrb.mxu0 %v5547_v61  ;;  %v3078_v61 = vld [vmem:[#allocation13 + $0x40] ss:$0 sm:$0xff] }
 0x478   :  { %3687 = vmatpush.bf16.msrb.mxu1 %v5555_v63 }
 0x479   :  { %3649 = vmatpush.bf16.msra.mxu2 %v5530_v1 }
 0x47a   :  { %3662 = vmatpush.bf16.msra.mxu3 %v5538_v2 }
 0x47b   :  { %3675 = vmatpush.bf16.msrb.mxu0 %v5546_v3  ;;  %v3079_v3 = vld [vmem:[#allocation13 + $0x41] ss:$0 sm:$0xff] }
 0x47c   :  { %3688 = vmatpush.bf16.msrb.mxu1 %v5554_v6 }
 0x47d   :  { %3650 = vmatpush.bf16.msra.mxu2 %v5529_v7 }
 0x47e   :  { %3663 = vmatpush.bf16.msra.mxu3 %v5537_v10 }
 0x47f   :  { %3676 = vmatpush.bf16.msrb.mxu0 %v5545_v12 }
 0x480   :  { %3689 = vmatpush.bf16.msrb.mxu1 %v5553_v22 }
 0x481   :  { %3651 = vmatpush.bf16.msra.mxu2 %v5528_v23 }
 0x482   :  { %3664 = vmatpush.bf16.msra.mxu3 %v5536_v24 }
 0x483   :  { %3677 = vmatpush.bf16.msrb.mxu0 %v5544_v0 }
 0x484   :  { %3690 = vmatpush.bf16.msrb.mxu1 %v5552_v8  ;;  %3652 = vmatmul.bf16.vlgmr.msra.gmra.mxu2 %v6173_v15 }
 0x485   :  { %3665 = vmatmul.bf16.vlgmr.msra.gmra.mxu3 %v6175_v17 }
 0x486   :  { %3678 = vmatmul.bf16.vlgmr.msrb.gmra.mxu0 %v6177_v20 }
 0x487   :  { %3691 = vmatmul.bf16.vlgmr.msrb.gmra.mxu1 %v6179_v21 }
 0x4e3   :  { %v3627_v25 = vpop.f32.mrf.mxu0 }
 0x4e4   :  { %v3640_v29 = vpop.f32.mrf.mxu1 }
 0x4e7   :  { %v3601_v31 = vpop.f32.mrf.mxu2 }
 0x4e8   :  { %v3614_v18 = vpop.f32.mrf.mxu3 }
 0x4e9   :  { %v3615_v4 = vadd.f32 %v3614_v18, %v3601_v31 }
 0x4eb   :  { %v3629_v55 = vpop.f32.mrf.mxu0  ;;  %v3628_v36 = vadd.f32 %v3627_v25, %v3615_v4 }
 0x4ec   :  { %v3642_v16 = vpop.f32.mrf.mxu1 }
 0x4ed   :  { %v3641_v19 = vadd.f32 %v3640_v29, %v3628_v36 }
 0x4ef   :  { %v3603_v33 = vpop.f32.mrf.mxu2 }
 0x4f0   :  { %v3616_v35 = vpop.f32.mrf.mxu3 }
 0x503   :  { %v3679_v49 = vpop.f32.mrf.mxu0 }
 0x504   :  { %v3692_v43 = vpop.f32.mrf.mxu1 }
 0x507   :  { %v3653_v15 = vpop.f32.mrf.mxu2 }
 0x508   :  { %v3666_v9 = vpop.f32.mrf.mxu3  ;;  %v3654_v17 = vadd.f32 %v3653_v15, %v3641_v19 }
 0x50a   :  { %v3667_v14 = vadd.f32 %v3666_v9, %v3654_v17 }
 0x50b   :  { %v3681_v20 = vpop.f32.mrf.mxu0 }
 0x50c   :  { %v3694_v46 = vpop.f32.mrf.mxu1  ;;  %v3680_v21 = vadd.f32 %v3679_v49, %v3667_v14 }
 0x50e   :  { %v3693_v42 = vadd.f32 %v3692_v43, %v3680_v21 }
 0x50f   :  { %v3655_v37 = vpop.f32.mrf.mxu2 }
 0x510   :  { %v3668_v53 = vpop.f32.mrf.mxu3  ;;  %v3696_v38 = vsel %vm261_vm7, %v3693_v42, 0.0  ;;  %v3704_v28 = vmul.f32 %v3693_v42, %v3693_v42 }
 0x511   :  { %v3697_v39 = vrot.slane %v3696_v38, 4 }
 0x512   :  { %v3705_v40 = vsel %vm261_vm7, %v3704_v28, 0.0 }
 0x513   :  { %v3698_v41 = vadd.f32 %v3697_v39, %v3696_v38  ;;  %v3706_v34 = vrot.slane %v3705_v40, 4 }
 0x515   :  { %v3699_v60 = vrot.slane %v3698_v41, 2  ;;  %v3707_v44 = vadd.f32 %v3706_v34, %v3705_v40 }
 0x517   :  { %v3700_v45 = vadd.f32 %v3699_v60, %v3698_v41  ;;  %v3708_v13 = vrot.slane %v3707_v44, 2 }
 0x519   :  { %v3701_v47 = vrot.slane %v3700_v45, 1  ;;  %v3709_v27 = vadd.f32 %v3708_v13, %v3707_v44 }
 0x51b   :  { %v3710_v50 = vrot.slane %v3709_v27, 1  ;;  %v3702_v54 = vadd.f32 %v3701_v47, %v3700_v45 }
 0x51d   :  { %v3711_v48 = vadd.f32 %v3710_v50, %v3709_v27  ;;  %v3703_v11 = vmul.f32 %v3702_v54, %v5884_v26 }
 0x51f   :  { %v3712_v51 = vmul.f32 %v3711_v48, %v5884_v26  ;;  %v3713_v32 = vmul.f32 %v3703_v11, %v3703_v11 }
 0x521   :  { %v3714_v52 = vsub.f32 %v3712_v51, %v3713_v32 }
 0x523   :  { %v3715_v30 = vmax.f32 %v3714_v52, 0.0 }
 0x525   :  { %v3716_v56 = vadd.f32 1e-05, %v3715_v30 }
 0x527   :  { %5604 = vrsqrt.f32 %v3716_v56  ;;  %vm3723_vm6 = vweird.f32 %v3716_v56 }
 0x52d   :  { %v5605_v57 = vpop.eup %5604 }
 0x52e   :  { %v3718_v58 = vmul.f32 %v5605_v57, %v3716_v56  ;;  %vm3724_vm7 = vweird.f32 %v5605_v57 }
 0x52f   :  { %vm3725_vm8 = vmor %vm3723_vm6, %vm3724_vm7 }
 0x530   :  { %v3719_v59 = vmul.f32 %v5605_v57, %v3718_v58 }
 0x532   :  { %v3720_v5 = vmul.f32 0.5, %v3719_v59 }
 0x534   :  { %v3721_v62 = vsub.f32 1.5, %v3720_v5 }
 0x536   :  { %v3722_v63 = vmul.f32 %v5605_v57, %v3721_v62 }
 0x538   :  { %v3726_v1 = vsel %vm3725_vm8, %v5605_v57, %v3722_v63 }
 0x539   :  { %v3727_v2 = vmul.f32 %v3726_v1, %v3078_v61 }
 0x53b   :  { %v3728_v6 = vmul.f32 %v3727_v2, %v3703_v11  ;;  %v3730_v7 = vmul.f32 %v3727_v2, %v3693_v42 }
 0x53d   :  { %v3729_v26 = vsub.f32 %v3079_v3, %v3728_v6 }
 0x53f   :  { %v3731_v10 = vadd.f32 %v3730_v7, %v3729_v26 }
 0x541   :  { %v3732_v12 = vmax.f32 %v3731_v10, 0.0 }
 0x543   :  { %3733 = vst [vmem:[#allocation14] sm:$0xf] %v3732_v12 }
 0x544   :  { %3744 = dma.vmem_to_hbm [thread:$0]  %s3740_s6, 64, %s3742_s14, [#allocation7]  }
 0x545   :  { %5808 = dma.done.wait [#allocation7], 64  }
 0x546   :  { %5809 = vsyncadd [#allocation7], 4294967232 }
 0x547   :  { %3749 = vsyncpa [#allocation6], 1 }
 0x548   :  { %3750 = vsyncpa [#allocation9], 1 }
 0x549   :  { %3751 = vsyncpa [#allocation12], 1 }
 0x54a   :  { %3752 = vsyncpa [#allocation7], 1 }
 0x54b   :  { %3753 = vsyncmov [#allocation4] }
 0x54e   :  { %s3754_s15 = vpop.sfrf %3753 }
 0x54f   :  { %p5200_p0 = scmp.ne.s32.totalorder %s3754_s15, 0 }
 0x551   :  { %3758 = shalt.err (%p5200_p0)  }
 0x552   :  { %3760 = vsyncmov [#allocation4 + $0x1] }
 0x555   :  { %s3761_s16 = vpop.sfrf %3760 }
 0x556   :  { %p5201_p1 = scmp.ne.s32.totalorder %s3761_s16, 0 }
 0x558   :  { %3765 = shalt.err (%p5201_p1)  }

</bundles_post_ra>
